<compile_context>
chip_gen: v7x
topology: tpu7x:2x2x1
jax: 0.10.0
libtpu: 0.0.40
codegen_flags: <defaults>
</compile_context>

<pallas_src>
import functools

import jax
import jax.numpy as jnp
from jax.experimental import pallas as pl
from jax.experimental.pallas import tpu as pltpu


# ------------------------------ Pallas kernel -------------------------------
def _faa_kernel(index_ref, x_ref, bdcos_ref, bdsin_ref, mcol_ref, fidx_ref,
                fcol_ref, hemask_ref, wioh_ref, wre_ref, wim_ref,
                bdicos_ref, bdisin_ref, out_ref, *, sign, n_topk, n_freq):
    f32 = jnp.float32
    x = x_ref[...]                                                  # (B, H*E*L)

    # rfft along the sequence axis: block-diagonal DFT matmuls (MXU).
    xre = jnp.dot(x, bdcos_ref[...], preferred_element_type=f32)    # (B, H*E*F)
    xim = jnp.dot(x, bdsin_ref[...], preferred_element_type=f32)    # (B, H*E*F)

    # Build the (H*E*F, H*E*K) block-diagonal frequency-selection matrix.
    fcol = fcol_ref[...]        # (H*E*F, 1): frequency id of each spectrum column
    wioh = wioh_ref[...]        # (K, H*E*K): row k = indicator of output slot k
    sel = jnp.zeros(hemask_ref.shape, f32)

    if sign == 1:
        # First call: data-dependent top-k (descending) of the mean |spectrum|.
        mag = jnp.sqrt(xre * xre + xim * xim)
        tmp = jnp.dot(mag, mcol_ref[...], preferred_element_type=f32)   # (B, F)
        meanf = jnp.dot(jnp.ones((1, tmp.shape[0]), f32), tmp,
                        preferred_element_type=f32)                     # (1, F)
        fidx = fidx_ref[...]                                            # (1, F)
        vals = meanf
        for k in range(n_topk):
            m = jnp.max(vals, axis=-1, keepdims=True)                   # (1, 1)
            idx = jnp.min(jnp.where(vals >= m, fidx, f32(n_freq)),
                          axis=-1, keepdims=True)                       # (1, 1)
            sel = sel + jnp.where(fcol == idx, 1.0, 0.0) * wioh[k:k + 1, :]
            vals = jnp.where(fidx == idx, -jnp.inf, vals)
    else:
        # Later calls: caller-provided indices, read as SMEM scalars.
        for k in range(n_topk):
            idx = index_ref[k].astype(f32)
            sel = sel + jnp.where(fcol == idx, 1.0, 0.0) * wioh[k:k + 1, :]

    sel = sel * hemask_ref[...]          # restrict to the matching (h, e) block

    # Gather the K selected frequencies for every (b, h, e).
    gre = jnp.dot(xre, sel, preferred_element_type=f32)             # (B, H*E*K)
    gim = jnp.dot(xim, sel, preferred_element_type=f32)

    # Complex spectral mixing with the block-diagonal weights.
    ore = (jnp.dot(gre, wre_ref[...], preferred_element_type=f32) -
           jnp.dot(gim, wim_ref[...], preferred_element_type=f32))  # (B, H*O*K)
    oim = (jnp.dot(gre, wim_ref[...], preferred_element_type=f32) +
           jnp.dot(gim, wre_ref[...], preferred_element_type=f32))

    # irfft back to the sequence domain (only the K populated bins contribute).
    y = (jnp.dot(ore, bdicos_ref[...], preferred_element_type=f32) +
         jnp.dot(oim, bdisin_ref[...], preferred_element_type=f32))  # (B, H*O*L)
    out_ref[...] = y.astype(out_ref.dtype)


# -------------------- host-side constant / weight transforms ----------------
def build_constants(wre, wim, B, L, H, E, O):
    """One-time host-side transforms (DFT matrices, block-diag weights)."""
    assert L % 2 == 0, "irfft coefficient table below assumes even L"
    F = L // 2 + 1
    K = wre.shape[-1]
    HE, HO = H * E, H * O
    R, C = HE * F, HE * K

    f32 = jnp.float32
    # forward DFT (rfft): X[f] = sum_l x[l] * (cos - i sin)
    l = jnp.arange(L, dtype=f32)[:, None]
    f = jnp.arange(F, dtype=f32)[None, :]
    ang = 2.0 * jnp.pi * l * f / L
    bdcos = jnp.kron(jnp.eye(HE, dtype=f32), jnp.cos(ang))          # (HE*L, HE*F)
    bdsin = jnp.kron(jnp.eye(HE, dtype=f32), -jnp.sin(ang))         # (HE*L, HE*F)

    # collect |X| into per-frequency means (already divided by B*H*E)
    mcol = ((jnp.arange(R) % F)[:, None] == jnp.arange(F)[None, :]
            ).astype(f32) / (B * HE)                                # (R, F)

    fidx = jnp.arange(F, dtype=f32)[None, :]                        # (1, F)
    fcol = (jnp.arange(R) % F).astype(f32)[:, None]                 # (R, 1)
    hemask = ((jnp.arange(R) // F)[:, None] == (jnp.arange(C) // K)[None, :]
              ).astype(f32)                                         # (R, C)
    wioh = ((jnp.arange(C) % K)[None, :] == jnp.arange(K)[:, None]
            ).astype(f32)                                           # (K, C)

    # block-diagonal complex spectral weights: rows (h,e,wi) -> cols (h,o,wi)
    eyeH = jnp.eye(H, dtype=f32)
    eyeK = jnp.eye(K, dtype=f32)
    wre_bd = jnp.einsum('heok,hg,kl->hekgol', wre, eyeH, eyeK).reshape(HE * K, HO * K)
    wim_bd = jnp.einsum('heok,hg,kl->hekgol', wim, eyeH, eyeK).reshape(HE * K, HO * K)

    # inverse rfft restricted to the K populated bins, block-diag over (h, o).
    # y[l] = (1/L)*Y0.re + (2/L)*sum_{f>=1}(Yf.re cos - Yf.im sin) (+ Nyquist.re)
    coef = jnp.full((F,), 2.0 / L, f32).at[0].set(1.0 / L).at[F - 1].set(1.0 / L)
    fl = jnp.arange(F, dtype=f32)[:, None]
    ll = jnp.arange(L, dtype=f32)[None, :]
    iang = 2.0 * jnp.pi * fl * ll / L
    cinv = (coef[:, None] * jnp.cos(iang))[:K]                      # (K, L)
    sinv = (-(2.0 / L) * jnp.sin(iang))[:K]                         # (K, L)
    bdicos = jnp.kron(jnp.eye(HO, dtype=f32), cinv)                 # (HO*K, HO*L)
    bdisin = jnp.kron(jnp.eye(HO, dtype=f32), sinv)                 # (HO*K, HO*L)

    return dict(bdcos=bdcos, bdsin=bdsin, mcol=mcol, fidx=fidx, fcol=fcol,
                hemask=hemask, wioh=wioh, wre_bd=wre_bd, wim_bd=wim_bd,
                bdicos=bdicos, bdisin=bdisin)


# --------------------------------- wrapper -----------------------------------
@functools.partial(jax.jit, static_argnames=("sign",))
def frequency_adaptive_attention(q, k, v, index, mask, consts, *, sign):
    """Pallas forward of FrequencyAdaptiveAttention; returns (y, None)."""
    del k, v, mask                       # unused, exactly as in the reference
    B, L, H, E = q.shape
    c = consts
    K = c["wioh"].shape[0]
    F = L // 2 + 1
    HO_L = c["bdicos"].shape[1]          # H * O * L
    O = (HO_L // L) // H

    # layout plumbing only: (B, L, H, E) -> (B, (h, e, l)) lane-dense rows
    x2 = jnp.transpose(q, (0, 2, 3, 1)).reshape(B, H * E * L)

    def fullspec(a):
        return pl.BlockSpec(a.shape, lambda i, sref: (0, 0))

    kernel = functools.partial(_faa_kernel, sign=sign, n_topk=K, n_freq=F)
    y2 = pl.pallas_call(
        kernel,
        out_shape=jax.ShapeDtypeStruct((B, HO_L), jnp.float32),
        grid_spec=pltpu.PrefetchScalarGridSpec(
            num_scalar_prefetch=1,       # `index` lands in SMEM
            grid=(1,),                   # single fused step: whole problem in VMEM
            in_specs=[fullspec(x2), fullspec(c["bdcos"]), fullspec(c["bdsin"]),
                      fullspec(c["mcol"]), fullspec(c["fidx"]), fullspec(c["fcol"]),
                      fullspec(c["hemask"]), fullspec(c["wioh"]),
                      fullspec(c["wre_bd"]), fullspec(c["wim_bd"]),
                      fullspec(c["bdicos"]), fullspec(c["bdisin"])],
            out_specs=pl.BlockSpec((B, HO_L), lambda i, sref: (0, 0)),
        ),
        compiler_params=pltpu.CompilerParams(dimension_semantics=("arbitrary",)),
    )(index.astype(jnp.int32), x2, c["bdcos"], c["bdsin"], c["mcol"], c["fidx"],
      c["fcol"], c["hemask"], c["wioh"], c["wre_bd"], c["wim_bd"],
      c["bdicos"], c["bdisin"])

    return y2.reshape(B, H, O, L), None


# ------------------------ pure-JAX reference (sanity) ------------------------
def reference_forward(q, index, wre, wim):
    """jnp.fft reference for the sign==0 path (indices given)."""
    B, L, H, E = q.shape
    O = wre.shape[2]
    x = jnp.transpose(q, (0, 2, 3, 1))
    x_ft = jnp.fft.rfft(x, axis=-1)
    w = wre.astype(jnp.complex64) + 1j * wim.astype(jnp.complex64)
    out_ft = jnp.zeros((B, H, O, L // 2 + 1), jnp.complex64)
    for wi_i in range(index.shape[0]):
        g = x_ft[:, :, :, int(index[wi_i])]
        out_ft = out_ft.at[:, :, :, wi_i].set(
            jnp.einsum('bhe,heo->bho', g, w[:, :, :, wi_i]))
    return jnp.fft.irfft(out_ft, n=L, axis=-1)


# ----------------------------------- main ------------------------------------
if __name__ == "__main__":
    B, L, H = 2, 16, 8
    IN_CH, OUT_CH, MODES = 32, 32, 4
    E, O = IN_CH // 8, OUT_CH // 8
    K = min(MODES, L // 2)

    key = jax.random.PRNGKey(0)
    kq, kk, kv, kw1, kw2 = jax.random.split(key, 5)
    q = jax.random.normal(kq, (B, L, H, E), jnp.float32)
    k = jax.random.normal(kk, (B, L, H, E), jnp.float32)      # unused by the module
    v = jax.random.normal(kv, (B, L, H, E), jnp.float32)      # unused by the module
    index = jnp.array([1, 3, 5, 7], dtype=jnp.int32)          # used when sign == 0

    scale = 1.0 / (IN_CH * OUT_CH)                            # reference init scale
    wre = scale * jax.random.uniform(kw1, (H, E, O, K), jnp.float32)
    wim = scale * jax.random.uniform(kw2, (H, E, O, K), jnp.float32)

    consts = build_constants(wre, wim, B, L, H, E, O)

    # sign == 1: first-call behaviour (data-dependent top-k inside the kernel)
    y1, attn = frequency_adaptive_attention(q, k, v, index, None, consts, sign=1)
    jax.block_until_ready(y1)
    assert y1.shape == (B, H, O, L) and attn is None
    assert bool(jnp.all(jnp.isfinite(y1)))

    # sign == 0: caller-supplied indices; sanity-check against a jnp.fft reference
    y0, _ = frequency_adaptive_attention(q, k, v, index, None, consts, sign=0)
    y_ref = reference_forward(q, index, wre, wim)
    jax.block_until_ready((y0, y_ref))
    err = float(jnp.max(jnp.abs(y0 - y_ref)))
    ref = float(jnp.max(jnp.abs(y_ref))) + 1e-12
    assert err <= 0.05 * ref, f"kernel/reference mismatch: {err:.3e} vs scale {ref:.3e}"

    print("KERNEL_OK")
</pallas_src>

<mosaic_0001>
module attributes {stable_mosaic.version = 11 : i64} {
  func.func @_faa_kernel(%arg0: i32, %arg1: memref<4xi32, #tpu.memory_space<smem>>, %arg2: memref<2x512xf32, #tpu.memory_space<vmem>>, %arg3: memref<512x288xf32, #tpu.memory_space<vmem>>, %arg4: memref<512x288xf32, #tpu.memory_space<vmem>>, %arg5: memref<288x9xf32, #tpu.memory_space<vmem>>, %arg6: memref<1x9xf32, #tpu.memory_space<vmem>>, %arg7: memref<288x1xf32, #tpu.memory_space<vmem>>, %arg8: memref<288x128xf32, #tpu.memory_space<vmem>>, %arg9: memref<4x128xf32, #tpu.memory_space<vmem>>, %arg10: memref<128x128xf32, #tpu.memory_space<vmem>>, %arg11: memref<128x128xf32, #tpu.memory_space<vmem>>, %arg12: memref<128x512xf32, #tpu.memory_space<vmem>>, %arg13: memref<128x512xf32, #tpu.memory_space<vmem>>, %arg14: memref<2x512xf32, #tpu.memory_space<vmem>>) attributes {dimension_semantics = [#tpu.dimension_semantics<arbitrary>], iteration_bounds = array<i64: 1>, scalar_prefetch = 1 : i64, scratch_operands = 0 : i64, tpu.core_type = #tpu.core_type<tc>, window_params = [{pipeline_mode = #tpu.pipeline_mode<synchronous>, transform_indices = @transform_0, window_bounds = array<i64: 2, 512>}, {pipeline_mode = #tpu.pipeline_mode<synchronous>, transform_indices = @transform_1, window_bounds = array<i64: 512, 288>}, {pipeline_mode = #tpu.pipeline_mode<synchronous>, transform_indices = @transform_2, window_bounds = array<i64: 512, 288>}, {pipeline_mode = #tpu.pipeline_mode<synchronous>, transform_indices = @transform_3, window_bounds = array<i64: 288, 9>}, {pipeline_mode = #tpu.pipeline_mode<synchronous>, transform_indices = @transform_4, window_bounds = array<i64: 1, 9>}, {pipeline_mode = #tpu.pipeline_mode<synchronous>, transform_indices = @transform_5, window_bounds = array<i64: 288, 1>}, {pipeline_mode = #tpu.pipeline_mode<synchronous>, transform_indices = @transform_6, window_bounds = array<i64: 288, 128>}, {pipeline_mode = #tpu.pipeline_mode<synchronous>, transform_indices = @transform_7, window_bounds = array<i64: 4, 128>}, {pipeline_mode = #tpu.pipeline_mode<synchronous>, transform_indices = @transform_8, window_bounds = array<i64: 128, 128>}, {pipeline_mode = #tpu.pipeline_mode<synchronous>, transform_indices = @transform_9, window_bounds = array<i64: 128, 128>}, {pipeline_mode = #tpu.pipeline_mode<synchronous>, transform_indices = @transform_10, window_bounds = array<i64: 128, 512>}, {pipeline_mode = #tpu.pipeline_mode<synchronous>, transform_indices = @transform_11, window_bounds = array<i64: 128, 512>}, {pipeline_mode = #tpu.pipeline_mode<synchronous>, transform_indices = @transform_12, window_bounds = array<i64: 2, 512>}]} {
    %c0 = arith.constant 0 : index
    %c0_0 = arith.constant 0 : index
    %0 = vector.load %arg2[%c0, %c0_0] : memref<2x512xf32, #tpu.memory_space<vmem>>, vector<2x512xf32>
    %c0_1 = arith.constant 0 : index
    %c0_2 = arith.constant 0 : index
    %1 = vector.load %arg3[%c0_1, %c0_2] : memref<512x288xf32, #tpu.memory_space<vmem>>, vector<512x288xf32>
    %cst = arith.constant dense<0.000000e+00> : vector<2x288xf32>
    %2 = tpu.matmul %0, %1, %cst {dimension_numbers = #tpu.dot_dimension_numbers<[1], [0], [0], [1], [0, 0, 1, 1], [], []>} : vector<2x512xf32>, vector<512x288xf32>, vector<2x288xf32> -> vector<2x288xf32>
    %c0_3 = arith.constant 0 : index
    %c0_4 = arith.constant 0 : index
    %3 = vector.load %arg4[%c0_3, %c0_4] : memref<512x288xf32, #tpu.memory_space<vmem>>, vector<512x288xf32>
    %cst_5 = arith.constant dense<0.000000e+00> : vector<2x288xf32>
    %4 = tpu.matmul %0, %3, %cst_5 {dimension_numbers = #tpu.dot_dimension_numbers<[1], [0], [0], [1], [0, 0, 1, 1], [], []>} : vector<2x512xf32>, vector<512x288xf32>, vector<2x288xf32> -> vector<2x288xf32>
    %c0_6 = arith.constant 0 : index
    %c0_7 = arith.constant 0 : index
    %5 = vector.load %arg7[%c0_6, %c0_7] : memref<288x1xf32, #tpu.memory_space<vmem>>, vector<288x1xf32>
    %c0_8 = arith.constant 0 : index
    %c0_9 = arith.constant 0 : index
    %6 = vector.load %arg9[%c0_8, %c0_9] : memref<4x128xf32, #tpu.memory_space<vmem>>, vector<4x128xf32>
    %cst_10 = arith.constant 0.000000e+00 : f32
    %7 = vector.broadcast %cst_10 : f32 to vector<288x128xf32>
    %8 = arith.mulf %2, %2 : vector<2x288xf32>
    %9 = arith.mulf %4, %4 : vector<2x288xf32>
    %10 = arith.addf %8, %9 : vector<2x288xf32>
    %11 = math.sqrt %10 : vector<2x288xf32>
    %c0_11 = arith.constant 0 : index
    %c0_12 = arith.constant 0 : index
    %12 = vector.load %arg5[%c0_11, %c0_12] : memref<288x9xf32, #tpu.memory_space<vmem>>, vector<288x9xf32>
    %cst_13 = arith.constant dense<0.000000e+00> : vector<2x9xf32>
    %13 = tpu.matmul %11, %12, %cst_13 {dimension_numbers = #tpu.dot_dimension_numbers<[1], [0], [0], [1], [0, 0, 1, 1], [], []>} : vector<2x288xf32>, vector<288x9xf32>, vector<2x9xf32> -> vector<2x9xf32>
    %cst_14 = arith.constant 1.000000e+00 : f32
    %14 = vector.broadcast %cst_14 : f32 to vector<1x2xf32>
    %cst_15 = arith.constant dense<0.000000e+00> : vector<1x9xf32>
    %15 = tpu.matmul %14, %13, %cst_15 {dimension_numbers = #tpu.dot_dimension_numbers<[1], [0], [0], [1], [0, 0, 1, 1], [], []>} : vector<1x2xf32>, vector<2x9xf32>, vector<1x9xf32> -> vector<1x9xf32>
    %c0_16 = arith.constant 0 : index
    %c0_17 = arith.constant 0 : index
    %16 = vector.load %arg6[%c0_16, %c0_17] : memref<1x9xf32, #tpu.memory_space<vmem>>, vector<1x9xf32>
    %cst_18 = arith.constant dense<0xFF800000> : vector<1xf32>
    %17 = vector.multi_reduction <maximumf>, %15, %cst_18 [1] : vector<1x9xf32> to vector<1xf32>
    %18 = vector.shape_cast %17 : vector<1xf32> to vector<1x1xf32>
    %19 = vector.broadcast %18 : vector<1x1xf32> to vector<1x9xf32>
    %20 = arith.cmpf oge, %15, %19 : vector<1x9xf32>
    %cst_19 = arith.constant 9.000000e+00 : f32
    %21 = vector.broadcast %cst_19 : f32 to vector<1x9xf32>
    %22 = arith.select %20, %16, %21 : vector<1x9xi1>, vector<1x9xf32>
    %cst_20 = arith.constant dense<0x7F800000> : vector<1xf32>
    %23 = vector.multi_reduction <minimumf>, %22, %cst_20 [1] : vector<1x9xf32> to vector<1xf32>
    %24 = vector.shape_cast %23 : vector<1xf32> to vector<1x1xf32>
    %25 = vector.broadcast %24 : vector<1x1xf32> to vector<288x1xf32>
    %26 = arith.cmpf oeq, %5, %25 : vector<288x1xf32>
    %cst_21 = arith.constant 1.000000e+00 : f32
    %cst_22 = arith.constant 0.000000e+00 : f32
    %27 = vector.broadcast %cst_21 : f32 to vector<288x1xf32>
    %28 = vector.broadcast %cst_22 : f32 to vector<288x1xf32>
    %29 = arith.select %26, %27, %28 : vector<288x1xi1>, vector<288x1xf32>
    %30 = vector.extract_strided_slice %6 {offsets = [0, 0], sizes = [1, 128], strides = [1, 1]} : vector<4x128xf32> to vector<1x128xf32>
    %31 = vector.broadcast %29 : vector<288x1xf32> to vector<288x128xf32>
    %32 = vector.broadcast %30 : vector<1x128xf32> to vector<288x128xf32>
    %33 = arith.mulf %31, %32 : vector<288x128xf32>
    %34 = arith.addf %7, %33 : vector<288x128xf32>
    %35 = vector.broadcast %24 : vector<1x1xf32> to vector<1x9xf32>
    %36 = arith.cmpf oeq, %16, %35 : vector<1x9xf32>
    %cst_23 = arith.constant 0xFF800000 : f32
    %37 = vector.broadcast %cst_23 : f32 to vector<1x9xf32>
    %38 = arith.select %36, %37, %15 : vector<1x9xi1>, vector<1x9xf32>
    %cst_24 = arith.constant dense<0xFF800000> : vector<1xf32>
    %39 = vector.multi_reduction <maximumf>, %38, %cst_24 [1] : vector<1x9xf32> to vector<1xf32>
    %40 = vector.shape_cast %39 : vector<1xf32> to vector<1x1xf32>
    %41 = vector.broadcast %40 : vector<1x1xf32> to vector<1x9xf32>
    %42 = arith.cmpf oge, %38, %41 : vector<1x9xf32>
    %cst_25 = arith.constant 9.000000e+00 : f32
    %43 = vector.broadcast %cst_25 : f32 to vector<1x9xf32>
    %44 = arith.select %42, %16, %43 : vector<1x9xi1>, vector<1x9xf32>
    %cst_26 = arith.constant dense<0x7F800000> : vector<1xf32>
    %45 = vector.multi_reduction <minimumf>, %44, %cst_26 [1] : vector<1x9xf32> to vector<1xf32>
    %46 = vector.shape_cast %45 : vector<1xf32> to vector<1x1xf32>
    %47 = vector.broadcast %46 : vector<1x1xf32> to vector<288x1xf32>
    %48 = arith.cmpf oeq, %5, %47 : vector<288x1xf32>
    %cst_27 = arith.constant 1.000000e+00 : f32
    %cst_28 = arith.constant 0.000000e+00 : f32
    %49 = vector.broadcast %cst_27 : f32 to vector<288x1xf32>
    %50 = vector.broadcast %cst_28 : f32 to vector<288x1xf32>
    %51 = arith.select %48, %49, %50 : vector<288x1xi1>, vector<288x1xf32>
    %52 = vector.extract_strided_slice %6 {offsets = [1, 0], sizes = [1, 128], strides = [1, 1]} : vector<4x128xf32> to vector<1x128xf32>
    %53 = vector.broadcast %51 : vector<288x1xf32> to vector<288x128xf32>
    %54 = vector.broadcast %52 : vector<1x128xf32> to vector<288x128xf32>
    %55 = arith.mulf %53, %54 : vector<288x128xf32>
    %56 = arith.addf %34, %55 : vector<288x128xf32>
    %57 = vector.broadcast %46 : vector<1x1xf32> to vector<1x9xf32>
    %58 = arith.cmpf oeq, %16, %57 : vector<1x9xf32>
    %cst_29 = arith.constant 0xFF800000 : f32
    %59 = vector.broadcast %cst_29 : f32 to vector<1x9xf32>
    %60 = arith.select %58, %59, %38 : vector<1x9xi1>, vector<1x9xf32>
    %cst_30 = arith.constant dense<0xFF800000> : vector<1xf32>
    %61 = vector.multi_reduction <maximumf>, %60, %cst_30 [1] : vector<1x9xf32> to vector<1xf32>
    %62 = vector.shape_cast %61 : vector<1xf32> to vector<1x1xf32>
    %63 = vector.broadcast %62 : vector<1x1xf32> to vector<1x9xf32>
    %64 = arith.cmpf oge, %60, %63 : vector<1x9xf32>
    %cst_31 = arith.constant 9.000000e+00 : f32
    %65 = vector.broadcast %cst_31 : f32 to vector<1x9xf32>
    %66 = arith.select %64, %16, %65 : vector<1x9xi1>, vector<1x9xf32>
    %cst_32 = arith.constant dense<0x7F800000> : vector<1xf32>
    %67 = vector.multi_reduction <minimumf>, %66, %cst_32 [1] : vector<1x9xf32> to vector<1xf32>
    %68 = vector.shape_cast %67 : vector<1xf32> to vector<1x1xf32>
    %69 = vector.broadcast %68 : vector<1x1xf32> to vector<288x1xf32>
    %70 = arith.cmpf oeq, %5, %69 : vector<288x1xf32>
    %cst_33 = arith.constant 1.000000e+00 : f32
    %cst_34 = arith.constant 0.000000e+00 : f32
    %71 = vector.broadcast %cst_33 : f32 to vector<288x1xf32>
    %72 = vector.broadcast %cst_34 : f32 to vector<288x1xf32>
    %73 = arith.select %70, %71, %72 : vector<288x1xi1>, vector<288x1xf32>
    %74 = vector.extract_strided_slice %6 {offsets = [2, 0], sizes = [1, 128], strides = [1, 1]} : vector<4x128xf32> to vector<1x128xf32>
    %75 = vector.broadcast %73 : vector<288x1xf32> to vector<288x128xf32>
    %76 = vector.broadcast %74 : vector<1x128xf32> to vector<288x128xf32>
    %77 = arith.mulf %75, %76 : vector<288x128xf32>
    %78 = arith.addf %56, %77 : vector<288x128xf32>
    %79 = vector.broadcast %68 : vector<1x1xf32> to vector<1x9xf32>
    %80 = arith.cmpf oeq, %16, %79 : vector<1x9xf32>
    %cst_35 = arith.constant 0xFF800000 : f32
    %81 = vector.broadcast %cst_35 : f32 to vector<1x9xf32>
    %82 = arith.select %80, %81, %60 : vector<1x9xi1>, vector<1x9xf32>
    %cst_36 = arith.constant dense<0xFF800000> : vector<1xf32>
    %83 = vector.multi_reduction <maximumf>, %82, %cst_36 [1] : vector<1x9xf32> to vector<1xf32>
    %84 = vector.shape_cast %83 : vector<1xf32> to vector<1x1xf32>
    %85 = vector.broadcast %84 : vector<1x1xf32> to vector<1x9xf32>
    %86 = arith.cmpf oge, %82, %85 : vector<1x9xf32>
    %cst_37 = arith.constant 9.000000e+00 : f32
    %87 = vector.broadcast %cst_37 : f32 to vector<1x9xf32>
    %88 = arith.select %86, %16, %87 : vector<1x9xi1>, vector<1x9xf32>
    %cst_38 = arith.constant dense<0x7F800000> : vector<1xf32>
    %89 = vector.multi_reduction <minimumf>, %88, %cst_38 [1] : vector<1x9xf32> to vector<1xf32>
    %90 = vector.shape_cast %89 : vector<1xf32> to vector<1x1xf32>
    %91 = vector.broadcast %90 : vector<1x1xf32> to vector<288x1xf32>
    %92 = arith.cmpf oeq, %5, %91 : vector<288x1xf32>
    %cst_39 = arith.constant 1.000000e+00 : f32
    %cst_40 = arith.constant 0.000000e+00 : f32
    %93 = vector.broadcast %cst_39 : f32 to vector<288x1xf32>
    %94 = vector.broadcast %cst_40 : f32 to vector<288x1xf32>
    %95 = arith.select %92, %93, %94 : vector<288x1xi1>, vector<288x1xf32>
    %96 = vector.extract_strided_slice %6 {offsets = [3, 0], sizes = [1, 128], strides = [1, 1]} : vector<4x128xf32> to vector<1x128xf32>
    %97 = vector.broadcast %95 : vector<288x1xf32> to vector<288x128xf32>
    %98 = vector.broadcast %96 : vector<1x128xf32> to vector<288x128xf32>
    %99 = arith.mulf %97, %98 : vector<288x128xf32>
    %100 = arith.addf %78, %99 : vector<288x128xf32>
    %c0_41 = arith.constant 0 : index
    %c0_42 = arith.constant 0 : index
    %101 = vector.load %arg8[%c0_41, %c0_42] : memref<288x128xf32, #tpu.memory_space<vmem>>, vector<288x128xf32>
    %102 = arith.mulf %100, %101 : vector<288x128xf32>
    %cst_43 = arith.constant dense<0.000000e+00> : vector<2x128xf32>
    %103 = tpu.matmul %2, %102, %cst_43 {dimension_numbers = #tpu.dot_dimension_numbers<[1], [0], [0], [1], [0, 0, 1, 1], [], []>} : vector<2x288xf32>, vector<288x128xf32>, vector<2x128xf32> -> vector<2x128xf32>
    %cst_44 = arith.constant dense<0.000000e+00> : vector<2x128xf32>
    %104 = tpu.matmul %4, %102, %cst_44 {dimension_numbers = #tpu.dot_dimension_numbers<[1], [0], [0], [1], [0, 0, 1, 1], [], []>} : vector<2x288xf32>, vector<288x128xf32>, vector<2x128xf32> -> vector<2x128xf32>
    %c0_45 = arith.constant 0 : index
    %c0_46 = arith.constant 0 : index
    %105 = vector.load %arg10[%c0_45, %c0_46] : memref<128x128xf32, #tpu.memory_space<vmem>>, vector<128x128xf32>
    %cst_47 = arith.constant dense<0.000000e+00> : vector<2x128xf32>
    %106 = tpu.matmul %103, %105, %cst_47 {dimension_numbers = #tpu.dot_dimension_numbers<[1], [0], [0], [1], [0, 0, 1, 1], [], []>} : vector<2x128xf32>, vector<128x128xf32>, vector<2x128xf32> -> vector<2x128xf32>
    %c0_48 = arith.constant 0 : index
    %c0_49 = arith.constant 0 : index
    %107 = vector.load %arg11[%c0_48, %c0_49] : memref<128x128xf32, #tpu.memory_space<vmem>>, vector<128x128xf32>
    %cst_50 = arith.constant dense<0.000000e+00> : vector<2x128xf32>
    %108 = tpu.matmul %104, %107, %cst_50 {dimension_numbers = #tpu.dot_dimension_numbers<[1], [0], [0], [1], [0, 0, 1, 1], [], []>} : vector<2x128xf32>, vector<128x128xf32>, vector<2x128xf32> -> vector<2x128xf32>
    %109 = arith.subf %106, %108 : vector<2x128xf32>
    %c0_51 = arith.constant 0 : index
    %c0_52 = arith.constant 0 : index
    %110 = vector.load %arg11[%c0_51, %c0_52] : memref<128x128xf32, #tpu.memory_space<vmem>>, vector<128x128xf32>
    %cst_53 = arith.constant dense<0.000000e+00> : vector<2x128xf32>
    %111 = tpu.matmul %103, %110, %cst_53 {dimension_numbers = #tpu.dot_dimension_numbers<[1], [0], [0], [1], [0, 0, 1, 1], [], []>} : vector<2x128xf32>, vector<128x128xf32>, vector<2x128xf32> -> vector<2x128xf32>
    %c0_54 = arith.constant 0 : index
    %c0_55 = arith.constant 0 : index
    %112 = vector.load %arg10[%c0_54, %c0_55] : memref<128x128xf32, #tpu.memory_space<vmem>>, vector<128x128xf32>
    %cst_56 = arith.constant dense<0.000000e+00> : vector<2x128xf32>
    %113 = tpu.matmul %104, %112, %cst_56 {dimension_numbers = #tpu.dot_dimension_numbers<[1], [0], [0], [1], [0, 0, 1, 1], [], []>} : vector<2x128xf32>, vector<128x128xf32>, vector<2x128xf32> -> vector<2x128xf32>
    %114 = arith.addf %111, %113 : vector<2x128xf32>
    %c0_57 = arith.constant 0 : index
    %c0_58 = arith.constant 0 : index
    %115 = vector.load %arg12[%c0_57, %c0_58] : memref<128x512xf32, #tpu.memory_space<vmem>>, vector<128x512xf32>
    %cst_59 = arith.constant dense<0.000000e+00> : vector<2x512xf32>
    %116 = tpu.matmul %109, %115, %cst_59 {dimension_numbers = #tpu.dot_dimension_numbers<[1], [0], [0], [1], [0, 0, 1, 1], [], []>} : vector<2x128xf32>, vector<128x512xf32>, vector<2x512xf32> -> vector<2x512xf32>
    %c0_60 = arith.constant 0 : index
    %c0_61 = arith.constant 0 : index
    %117 = vector.load %arg13[%c0_60, %c0_61] : memref<128x512xf32, #tpu.memory_space<vmem>>, vector<128x512xf32>
    %cst_62 = arith.constant dense<0.000000e+00> : vector<2x512xf32>
    %118 = tpu.matmul %114, %117, %cst_62 {dimension_numbers = #tpu.dot_dimension_numbers<[1], [0], [0], [1], [0, 0, 1, 1], [], []>} : vector<2x128xf32>, vector<128x512xf32>, vector<2x512xf32> -> vector<2x512xf32>
    %119 = arith.addf %116, %118 : vector<2x512xf32>
    %c0_63 = arith.constant 0 : index
    %c0_64 = arith.constant 0 : index
    %120 = vector.load %arg14[%c0_63, %c0_64] : memref<2x512xf32, #tpu.memory_space<vmem>>, vector<2x512xf32>
    tpu.vector_store %arg14[%c0_63, %c0_64], %119 {strides = array<i32>} : memref<2x512xf32, #tpu.memory_space<vmem>>, vector<2x512xf32>,
    return
  }
  func.func @transform_0(%arg0: i32, %arg1: memref<4xi32, #tpu.memory_space<smem>>) -> (i32, i32) {
    %c0_i32 = arith.constant 0 : i32
    %c0_i32_0 = arith.constant 0 : i32
    %c0_i32_1 = arith.constant 0 : i32
    return %c0_i32, %c0_i32_0 : i32, i32
  }
  func.func @transform_1(%arg0: i32, %arg1: memref<4xi32, #tpu.memory_space<smem>>) -> (i32, i32) {
    %c0_i32 = arith.constant 0 : i32
    %c0_i32_0 = arith.constant 0 : i32
    %c0_i32_1 = arith.constant 0 : i32
    return %c0_i32, %c0_i32_0 : i32, i32
  }
  func.func @transform_2(%arg0: i32, %arg1: memref<4xi32, #tpu.memory_space<smem>>) -> (i32, i32) {
    %c0_i32 = arith.constant 0 : i32
    %c0_i32_0 = arith.constant 0 : i32
    %c0_i32_1 = arith.constant 0 : i32
    return %c0_i32, %c0_i32_0 : i32, i32
  }
  func.func @transform_3(%arg0: i32, %arg1: memref<4xi32, #tpu.memory_space<smem>>) -> (i32, i32) {
    %c0_i32 = arith.constant 0 : i32
    %c0_i32_0 = arith.constant 0 : i32
    %c0_i32_1 = arith.constant 0 : i32
    return %c0_i32, %c0_i32_0 : i32, i32
  }
  func.func @transform_4(%arg0: i32, %arg1: memref<4xi32, #tpu.memory_space<smem>>) -> (i32, i32) {
    %c0_i32 = arith.constant 0 : i32
    %c0_i32_0 = arith.constant 0 : i32
    %c0_i32_1 = arith.constant 0 : i32
    return %c0_i32, %c0_i32_0 : i32, i32
  }
  func.func @transform_5(%arg0: i32, %arg1: memref<4xi32, #tpu.memory_space<smem>>) -> (i32, i32) {
    %c0_i32 = arith.constant 0 : i32
    %c0_i32_0 = arith.constant 0 : i32
    %c0_i32_1 = arith.constant 0 : i32
    return %c0_i32, %c0_i32_0 : i32, i32
  }
  func.func @transform_6(%arg0: i32, %arg1: memref<4xi32, #tpu.memory_space<smem>>) -> (i32, i32) {
    %c0_i32 = arith.constant 0 : i32
    %c0_i32_0 = arith.constant 0 : i32
    %c0_i32_1 = arith.constant 0 : i32
    return %c0_i32, %c0_i32_0 : i32, i32
  }
  func.func @transform_7(%arg0: i32, %arg1: memref<4xi32, #tpu.memory_space<smem>>) -> (i32, i32) {
    %c0_i32 = arith.constant 0 : i32
    %c0_i32_0 = arith.constant 0 : i32
    %c0_i32_1 = arith.constant 0 : i32
    return %c0_i32, %c0_i32_0 : i32, i32
  }
  func.func @transform_8(%arg0: i32, %arg1: memref<4xi32, #tpu.memory_space<smem>>) -> (i32, i32) {
    %c0_i32 = arith.constant 0 : i32
    %c0_i32_0 = arith.constant 0 : i32
    %c0_i32_1 = arith.constant 0 : i32
    return %c0_i32, %c0_i32_0 : i32, i32
  }
  func.func @transform_9(%arg0: i32, %arg1: memref<4xi32, #tpu.memory_space<smem>>) -> (i32, i32) {
    %c0_i32 = arith.constant 0 : i32
    %c0_i32_0 = arith.constant 0 : i32
    %c0_i32_1 = arith.constant 0 : i32
    return %c0_i32, %c0_i32_0 : i32, i32
  }
  func.func @transform_10(%arg0: i32, %arg1: memref<4xi32, #tpu.memory_space<smem>>) -> (i32, i32) {
    %c0_i32 = arith.constant 0 : i32
    %c0_i32_0 = arith.constant 0 : i32
    %c0_i32_1 = arith.constant 0 : i32
    return %c0_i32, %c0_i32_0 : i32, i32
  }
  func.func @transform_11(%arg0: i32, %arg1: memref<4xi32, #tpu.memory_space<smem>>) -> (i32, i32) {
    %c0_i32 = arith.constant 0 : i32
    %c0_i32_0 = arith.constant 0 : i32
    %c0_i32_1 = arith.constant 0 : i32
    return %c0_i32, %c0_i32_0 : i32, i32
  }
  func.func @transform_12(%arg0: i32, %arg1: memref<4xi32, #tpu.memory_space<smem>>) -> (i32, i32) {
    %c0_i32 = arith.constant 0 : i32
    %c0_i32_0 = arith.constant 0 : i32
    %c0_i32_1 = arith.constant 0 : i32
    return %c0_i32, %c0_i32_0 : i32, i32
  }
}

</mosaic_0001>

<bundles_post_ra>
// kernel: frequency_adaptive_attention.1
= control target key start
LH: loop header
LB: loop body
LE: loop exit
PB: predicated region body
PF: predicated region fallthrough
CT: control target
= control target key end

     0   :  { %s8687_s0 = inlined_call_operand.vmem [shape: s32[4], index: 0, kind: input, shape index: {}]   ;;  %s8688_s1 = inlined_call_operand.vmem [shape: f32[2,512], index: 1, kind: input, shape index: {}]   ;;  %s8689_s2 = inlined_call_operand.vmem [shape: f32[512,288], index: 2, kind: input, shape index: {}]   ;;  %s8690_s3 = inlined_call_operand.vmem [shape: f32[512,288], index: 3, kind: input, shape index: {}]   ;;  %s8691_s4 = inlined_call_operand.vmem [shape: f32[288,9], index: 4, kind: input, shape index: {}]   ;;  %s8692_s5 = inlined_call_operand.vmem [shape: f32[1,9], index: 5, kind: input, shape index: {}]   ;;  %s8693_s6 = inlined_call_operand.vmem [shape: f32[288,1], index: 6, kind: input, shape index: {}]   ;;  %s8694_s7 = inlined_call_operand.vmem [shape: f32[288,128], index: 7, kind: input, shape index: {}]   ;;  %s8695_s8 = inlined_call_operand.vmem [shape: f32[4,128], index: 8, kind: input, shape index: {}]   ;;  %s8696_s9 = inlined_call_operand.vmem [shape: f32[128,128], index: 9, kind: input, shape index: {}]   ;;  %s8697_s10 = inlined_call_operand.vmem [shape: f32[128,128], index: 10, kind: input, shape index: {}]   ;;  %s8698_s11 = inlined_call_operand.vmem [shape: f32[128,512], index: 11, kind: input, shape index: {}]   ;;  %s8699_s12 = inlined_call_operand.vmem [shape: f32[128,512], index: 12, kind: input, shape index: {}]   ;;  %s8700_s13 = inlined_call_operand.vmem [shape: f32[2,512], index: 13, kind: output, shape index: {}]  }
   0x1   :  { %s18_s27 = sshll.u32 %s8687_s0, 4  ;;  %s19_s27 = int_to_ptr.vmem [resolvable:$true] %s18_s27 }
   0x2   :  { %s5466_s28 = scalar_lea.vmem %s19_s27, 16  ;;  %p5471_p1 = scmp.lt.s32.totalorder %s19_s27, %s19_s27 }
   0x3   :  { %p5467_p0 = scmp.ne.s32.totalorder %s19_s27, %s5466_s28  ;;  %p5472_p2 = scmp.lt.s32.totalorder %s5466_s28, %s5466_s28 }
   0x5   :  { %p5473_p3 = por %p5472_p2, %p5471_p1 }
   0x7   :  { %p5474_p4 = pnand %p5473_p3, %p5467_p0 }
   0x9   :  { %5477 = shalt.err (!%p5474_p4)  }
   0xa   :  { %s5480_s29 = smov [#allocation3]  }
   0xb   :  { %21 = dma.vmem_to_smem %s19_s27, 16, %s5480_s29, [#allocation2] }
   0xc   :  { %5478 = dma.done.wait [#allocation2], 16 }
   0xd   :  { %5479 = vsyncadd [#allocation2], 4294967280 }
   0xe   :  { %23 = sfence }
   0xf   :  { %v50_v0 = vld [vmem:[%s8689_s2 + $0x8] sm:$0xff]  ;;  %v53_v1 = vld [vmem:[%s8689_s2 + $0x20] sm:$0xff]  ;;  %v99_v2 = vld [vmem:[%s8689_s2 + $0x190] sm:$0xff]  ;;  %v5481_v47 = vmov 1983009808   ;;  %v246_v49 = vlaneseq  ;;  %vm5483_vm0 = vmmov 0  }
  0x10   :  { %v4335_v3 = vpack.c.bf16 %v53_v1, %v50_v0  ;;  %v102_v4 = vld [vmem:[%s8689_s2 + $0x1a8] sm:$0xff]  ;;  %v49_v5 = vld [vmem:[%s8689_s2] sm:$0xff]  ;;  %v52_v6 = vld [vmem:[%s8689_s2 + $0x18] sm:$0xff]  ;;  %v244_v48 = vunpack.c.l.s4 %v5481_v47  ;;  %vm1122_vm6 = vcmask 261120   ;;  %vm1270_vm8 = vcmask 1041408  }
  0x11   :  { %v4463_v7 = vpack.c.bf16 %v102_v4, %v99_v2  ;;  %v4337_v8 = vpack.c.bf16 %v52_v6, %v49_v5  ;;  %v51_v9 = vld [vmem:[%s8689_s2 + $0x10] sm:$0xff]  ;;  %v54_v10 = vld [vmem:[%s8689_s2 + $0x28] sm:$0xff]  ;;  %v56_v11 = vld [vmem:[%s8689_s2 + $0x38] sm:$0xff]  ;;  %v5686_v0 = vshrl.u32 %v246_v49, 7  ;;  %vm1266_vm9 = vcmask 15360  }
  0x12   :  { %4336 = vmatprep.subr.bf16.mxu0 %v4335_v3  ;;  %v4465_v12 = vpack.c.bf16 %v54_v10, %v51_v9  ;;  %v59_v13 = vld [vmem:[%s8689_s2 + $0x50] sm:$0xff]  ;;  %v105_v14 = vld [vmem:[%s8689_s2 + $0x1c0] sm:$0xff]  ;;  %v108_v15 = vld [vmem:[%s8689_s2 + $0x1d8] sm:$0xff]  ;;  %v245_v63 = vunpack.c.0.s8 %v244_v48  ;;  %vm1345_vm10 = vcmask 65536  }
  0x13   :  { %4464 = vmatprep.subr.bf16.mxu1 %v4463_v7  ;;  %4338 = vmatpush1.bf16.msra.mxu0 %v4337_v8  ;;  %v4339_v16 = vpack.c.bf16 %v59_v13, %v56_v11  ;;  %v4467_v17 = vpack.c.bf16 %v108_v15, %v105_v14  ;;  %v55_v18 = vld [vmem:[%s8689_s2 + $0x30] sm:$0xff]  ;;  %v58_v19 = vld [vmem:[%s8689_s2 + $0x48] sm:$0xff]  ;;  %v57_v20 = vld [vmem:[%s8689_s2 + $0x40] sm:$0xff] }
  0x14   :  { %4466 = vmatpush3.bf16.msra.mxu1 %v4465_v12  ;;  %v4341_v21 = vpack.c.bf16 %v58_v19, %v55_v18  ;;  %v60_v22 = vld [vmem:[%s8689_s2 + $0x58] sm:$0xff]  ;;  %v62_v23 = vld [vmem:[%s8689_s2 + $0x68] sm:$0xff]  ;;  %v65_v24 = vld [vmem:[%s8689_s2 + $0x80] sm:$0xff]  ;;  %v5713_v13 = vsub.s32 %v245_v63, %v5686_v0 }
  0x15   :  { %4340 = vmatprep.subr.bf16.mxu0 %v4339_v16  ;;  %4468 = vmatprep.subr.bf16.mxu1 %v4467_v17  ;;  %v4469_v25 = vpack.c.bf16 %v60_v22, %v57_v20  ;;  %v4343_v26 = vpack.c.bf16 %v65_v24, %v62_v23  ;;  %v111_v27 = vld [vmem:[%s8689_s2 + $0x1f0] sm:$0xff]  ;;  %v114_v28 = vld [vmem:[%s8689_s2 + $0x208] sm:$0xff]  ;;  %v61_v29 = vld [vmem:[%s8689_s2 + $0x60] sm:$0xff] }
  0x16   :  { %v4471_v30 = vpack.c.bf16 %v114_v28, %v111_v27  ;;  %v64_v31 = vld [vmem:[%s8689_s2 + $0x78] sm:$0xff]  ;;  %v63_v32 = vld [vmem:[%s8689_s2 + $0x70] sm:$0xff]  ;;  %v66_v33 = vld [vmem:[%s8689_s2 + $0x88] sm:$0xff]  ;;  %8712 = vst [vmem:[#allocation5_spill] sm:$0xff] %v5713_v13 }
  0x17   :  { %4342 = vmatpush1.bf16.msra.mxu0 %v4341_v21  ;;  %v4345_v34 = vpack.c.bf16 %v64_v31, %v61_v29  ;;  %v68_v35 = vld [vmem:[%s8689_s2 + $0x98] sm:$0xff]  ;;  %v71_v36 = vld [vmem:[%s8689_s2 + $0xb0] sm:$0xff]  ;;  %v117_v37 = vld [vmem:[%s8689_s2 + $0x220] sm:$0xff]  ;;  %v4473_v38 = vpack.c.bf16 %v66_v33, %v63_v32 }
  0x18   :  { %4470 = vmatpush3.bf16.msra.mxu1 %v4469_v25  ;;  %4344 = vmatprep.subr.bf16.mxu0 %v4343_v26  ;;  %v4347_v39 = vpack.c.bf16 %v71_v36, %v68_v35  ;;  %v120_v40 = vld [vmem:[%s8689_s2 + $0x238] sm:$0xff]  ;;  %v67_v41 = vld [vmem:[%s8689_s2 + $0x90] sm:$0xff]  ;;  %v70_v42 = vld [vmem:[%s8689_s2 + $0xa8] sm:$0xff] }
  0x19   :  { %4472 = vmatprep.subr.bf16.mxu1 %v4471_v30  ;;  %v4475_v43 = vpack.c.bf16 %v120_v40, %v117_v37  ;;  %v69_v44 = vld [vmem:[%s8689_s2 + $0xa0] sm:$0xff]  ;;  %v72_v45 = vld [vmem:[%s8689_s2 + $0xb8] sm:$0xff]  ;;  %v74_v46 = vld [vmem:[%s8689_s2 + $0xc8] sm:$0xff]  ;;  %v4349_v53 = vpack.c.bf16 %v70_v42, %v67_v41 }
  0x1a   :  { %v77_v50 = vld [vmem:[%s8689_s2 + $0xe0] sm:$0xff]  ;;  %v123_v51 = vld [vmem:[%s8689_s2 + $0x250] sm:$0xff]  ;;  %v126_v52 = vld [vmem:[%s8689_s2 + $0x268] sm:$0xff]  ;;  %v4477_v54 = vpack.c.bf16 %v72_v45, %v69_v44 }
  0x1b   :  { %4346 = vmatpush1.bf16.msra.mxu0 %v4345_v34  ;;  %v4351_v55 = vpack.c.bf16 %v77_v50, %v74_v46  ;;  %v73_v56 = vld [vmem:[%s8689_s2 + $0xc0] sm:$0xff]  ;;  %v76_v57 = vld [vmem:[%s8689_s2 + $0xd8] sm:$0xff]  ;;  %v75_v58 = vld [vmem:[%s8689_s2 + $0xd0] sm:$0xff]  ;;  %v4479_v59 = vpack.c.bf16 %v126_v52, %v123_v51 }
  0x1c   :  { %4474 = vmatpush3.bf16.msra.mxu1 %v4473_v38  ;;  %4348 = vmatprep.subr.bf16.mxu0 %v4347_v39  ;;  %v78_v60 = vld [vmem:[%s8689_s2 + $0xe8] sm:$0xff]  ;;  %v80_v61 = vld [vmem:[%s8689_s2 + $0xf8] sm:$0xff]  ;;  %v83_v62 = vld [vmem:[%s8689_s2 + $0x110] sm:$0xff]  ;;  %v4353_v3 = vpack.c.bf16 %v76_v57, %v73_v56 }
  0x1d   :  { %4476 = vmatprep.subr.bf16.mxu1 %v4475_v43  ;;  %v129_v1 = vld [vmem:[%s8689_s2 + $0x280] sm:$0xff]  ;;  %v132_v2 = vld [vmem:[%s8689_s2 + $0x298] sm:$0xff]  ;;  %v4481_v4 = vpack.c.bf16 %v78_v60, %v75_v58  ;;  %v4355_v5 = vpack.c.bf16 %v83_v62, %v80_v61  ;;  %v79_v6 = vld [vmem:[%s8689_s2 + $0xf0] sm:$0xff] }
  0x1e   :  { %v82_v7 = vld [vmem:[%s8689_s2 + $0x108] sm:$0xff]  ;;  %v81_v8 = vld [vmem:[%s8689_s2 + $0x100] sm:$0xff]  ;;  %v4483_v9 = vpack.c.bf16 %v132_v2, %v129_v1  ;;  %v84_v10 = vld [vmem:[%s8689_s2 + $0x118] sm:$0xff] }
  0x1f   :  { %4350 = vmatpush1.bf16.msra.mxu0 %v4349_v53  ;;  %v86_v11 = vld [vmem:[%s8689_s2 + $0x128] sm:$0xff]  ;;  %v89_v12 = vld [vmem:[%s8689_s2 + $0x140] sm:$0xff]  ;;  %v135_v14 = vld [vmem:[%s8689_s2 + $0x2b0] sm:$0xff]  ;;  %v4357_v16 = vpack.c.bf16 %v82_v7, %v79_v6  ;;  %v4485_v18 = vpack.c.bf16 %v84_v10, %v81_v8 }
  0x20   :  { %4478 = vmatpush3.bf16.msra.mxu1 %v4477_v54  ;;  %4352 = vmatprep.subr.bf16.mxu0 %v4351_v55  ;;  %v138_v15 = vld [vmem:[%s8689_s2 + $0x2c8] sm:$0xff]  ;;  %v85_v17 = vld [vmem:[%s8689_s2 + $0x120] sm:$0xff]  ;;  %v4359_v19 = vpack.c.bf16 %v89_v12, %v86_v11  ;;  %v88_v20 = vld [vmem:[%s8689_s2 + $0x138] sm:$0xff] }
  0x21   :  { %4480 = vmatprep.subr.bf16.mxu1 %v4479_v59  ;;  %v87_v21 = vld [vmem:[%s8689_s2 + $0x130] sm:$0xff]  ;;  %v48_v22 = vld [vmem:[%s8688_s1] sm:$0xff]  ;;  %v4487_v23 = vpack.c.bf16 %v138_v15, %v135_v14  ;;  %v90_v24 = vld [vmem:[%s8689_s2 + $0x148] sm:$0xff]  ;;  %v4361_v30 = vpack.c.bf16 %v88_v20, %v85_v17 }
  0x22   :  { %v92_v25 = vld [vmem:[%s8689_s2 + $0x158] sm:$0xff]  ;;  %v95_v26 = vld [vmem:[%s8689_s2 + $0x170] sm:$0xff]  ;;  %v5743_v27 = vrot.slane %v48_v22, %v5713_v13  ;;  %v141_v28 = vld [vmem:[%s8689_s2 + $0x2e0] sm:$0xff]  ;;  %v4489_v32 = vpack.c.bf16 %v90_v24, %v87_v21  ;;  %v242_v41 = vcombine.high %v48_v22, %v48_v22 }
  0x23   :  { %4354 = vmatpush1.bf16.msra.mxu0 %v4353_v3  ;;  %v144_v29 = vld [vmem:[%s8689_s2 + $0x2f8] sm:$0xff]  ;;  %v4363_v33 = vpack.c.bf16 %v95_v26, %v92_v25  ;;  %v91_v34 = vld [vmem:[%s8689_s2 + $0x150] sm:$0xff]  ;;  %v94_v35 = vld [vmem:[%s8689_s2 + $0x168] sm:$0xff] }
  0x24   :  { %4482 = vmatpush3.bf16.msra.mxu1 %v4481_v4  ;;  %4356 = vmatprep.subr.bf16.mxu0 %v4355_v5  ;;  %v5753_v31 = vcombine.high %v5743_v27, %v5743_v27  ;;  %v93_v36 = vld [vmem:[%s8689_s2 + $0x160] sm:$0xff]  ;;  %v4491_v37 = vpack.c.bf16 %v144_v29, %v141_v28  ;;  %v96_v38 = vld [vmem:[%s8689_s2 + $0x178] sm:$0xff]  ;;  %v98_v39 = vld [vmem:[%s8689_s2 + $0x188] sm:$0xff]  ;;  %v4365_v44 = vpack.c.bf16 %v94_v35, %v91_v34 }
  0x25   :  { %4484 = vmatprep.subr.bf16.mxu1 %v4483_v9  ;;  %v101_v40 = vld [vmem:[%s8689_s2 + $0x1a0] sm:$0xff]  ;;  %v195_v42 = vld [vmem:[%s8689_s2 + $0x490] sm:$0xff]  ;;  %v198_v43 = vld [vmem:[%s8689_s2 + $0x4a8] sm:$0xff]  ;;  %v4493_v45 = vpack.c.bf16 %v96_v38, %v93_v36  ;;  %v5800_v54 = vrot.slane %v242_v41, %v5713_v13 }
  0x26   :  { %469 = vmatprep.mubr.f32.mxu1 %v5753_v31  ;;  %327 = vmatprep.mubr.f32.mxu0 %v5753_v31  ;;  %v4367_v46 = vpack.c.bf16 %v101_v40, %v98_v39  ;;  %v97_v47 = vld [vmem:[%s8689_s2 + $0x180] sm:$0xff]  ;;  %v100_v48 = vld [vmem:[%s8689_s2 + $0x198] sm:$0xff]  ;;  %v147_v49 = vld [vmem:[%s8689_s2 + $0x310] sm:$0xff]  ;;  %v4495_v50 = vpack.c.bf16 %v198_v43, %v195_v42 }
  0x27   :  { %4358 = vmatpush1.bf16.msra.mxu0 %v4357_v16  ;;  %v150_v51 = vld [vmem:[%s8689_s2 + $0x328] sm:$0xff]  ;;  %v104_v52 = vld [vmem:[%s8689_s2 + $0x1b8] sm:$0xff]  ;;  %v107_v53 = vld [vmem:[%s8689_s2 + $0x1d0] sm:$0xff]  ;;  %v4369_v57 = vpack.c.bf16 %v100_v48, %v97_v47  ;;  %v5828_v4 = vcombine.high %v5800_v54, %v5800_v54 }
  0x28   :  { %4486 = vmatpush3.bf16.msra.mxu1 %v4485_v18  ;;  %4360 = vmatprep.subr.bf16.mxu0 %v4359_v19  ;;  %v201_v55 = vld [vmem:[%s8689_s2 + $0x4c0] sm:$0xff]  ;;  %v204_v56 = vld [vmem:[%s8689_s2 + $0x4d8] sm:$0xff]  ;;  %v4497_v58 = vpack.c.bf16 %v150_v51, %v147_v49  ;;  %v4371_v59 = vpack.c.bf16 %v107_v53, %v104_v52  ;;  %v103_v60 = vld [vmem:[%s8689_s2 + $0x1b0] sm:$0xff] }
  0x29   :  { %4488 = vmatprep.subr.bf16.mxu1 %v4487_v23  ;;  %v106_v61 = vld [vmem:[%s8689_s2 + $0x1c8] sm:$0xff]  ;;  %v153_v62 = vld [vmem:[%s8689_s2 + $0x340] sm:$0xff]  ;;  %v4499_v63 = vpack.c.bf16 %v204_v56, %v201_v55  ;;  %v156_v1 = vld [vmem:[%s8689_s2 + $0x358] sm:$0xff] }
  0x2a   :  { %v110_v2 = vld [vmem:[%s8689_s2 + $0x1e8] sm:$0xff]  ;;  %v113_v3 = vld [vmem:[%s8689_s2 + $0x200] sm:$0xff]  ;;  %v207_v5 = vld [vmem:[%s8689_s2 + $0x4f0] sm:$0xff]  ;;  %v4373_v7 = vpack.c.bf16 %v106_v61, %v103_v60  ;;  %v4501_v8 = vpack.c.bf16 %v156_v1, %v153_v62 }
  0x2b   :  { %4362 = vmatpush1.bf16.msra.mxu0 %v4361_v30  ;;  %v210_v6 = vld [vmem:[%s8689_s2 + $0x508] sm:$0xff]  ;;  %v4375_v9 = vpack.c.bf16 %v113_v3, %v110_v2  ;;  %v109_v10 = vld [vmem:[%s8689_s2 + $0x1e0] sm:$0xff]  ;;  %v112_v11 = vld [vmem:[%s8689_s2 + $0x1f8] sm:$0xff] }
  0x2c   :  { %4490 = vmatpush3.bf16.msra.mxu1 %v4489_v32  ;;  %4364 = vmatprep.subr.bf16.mxu0 %v4363_v33  ;;  %v159_v12 = vld [vmem:[%s8689_s2 + $0x370] sm:$0xff]  ;;  %v4503_v14 = vpack.c.bf16 %v210_v6, %v207_v5  ;;  %v162_v15 = vld [vmem:[%s8689_s2 + $0x388] sm:$0xff]  ;;  %v116_v16 = vld [vmem:[%s8689_s2 + $0x218] sm:$0xff]  ;;  %v4377_v20 = vpack.c.bf16 %v112_v11, %v109_v10 }
  0x2d   :  { %4492 = vmatprep.subr.bf16.mxu1 %v4491_v37  ;;  %v119_v17 = vld [vmem:[%s8689_s2 + $0x230] sm:$0xff]  ;;  %v213_v18 = vld [vmem:[%s8689_s2 + $0x520] sm:$0xff]  ;;  %v216_v19 = vld [vmem:[%s8689_s2 + $0x538] sm:$0xff]  ;;  %v4505_v21 = vpack.c.bf16 %v162_v15, %v159_v12 }
  0x2e   :  { %v4379_v22 = vpack.c.bf16 %v119_v17, %v116_v16  ;;  %v115_v23 = vld [vmem:[%s8689_s2 + $0x210] sm:$0xff]  ;;  %v118_v24 = vld [vmem:[%s8689_s2 + $0x228] sm:$0xff]  ;;  %v165_v25 = vld [vmem:[%s8689_s2 + $0x3a0] sm:$0xff]  ;;  %v4507_v26 = vpack.c.bf16 %v216_v19, %v213_v18 }
  0x2f   :  { %4366 = vmatpush1.bf16.msra.mxu0 %v4365_v44  ;;  %v168_v28 = vld [vmem:[%s8689_s2 + $0x3b8] sm:$0xff]  ;;  %v122_v29 = vld [vmem:[%s8689_s2 + $0x248] sm:$0xff]  ;;  %v125_v30 = vld [vmem:[%s8689_s2 + $0x260] sm:$0xff]  ;;  %v4381_v34 = vpack.c.bf16 %v118_v24, %v115_v23 }
  0x30   :  { %4494 = vmatpush3.bf16.msra.mxu1 %v4493_v45  ;;  %4368 = vmatprep.subr.bf16.mxu0 %v4367_v46  ;;  %v219_v32 = vld [vmem:[%s8689_s2 + $0x550] sm:$0xff]  ;;  %v222_v33 = vld [vmem:[%s8689_s2 + $0x568] sm:$0xff]  ;;  %v4509_v35 = vpack.c.bf16 %v168_v28, %v165_v25  ;;  %v4383_v36 = vpack.c.bf16 %v125_v30, %v122_v29  ;;  %v121_v37 = vld [vmem:[%s8689_s2 + $0x240] sm:$0xff] }
  0x31   :  { %4496 = vmatprep.subr.bf16.mxu1 %v4495_v50  ;;  %v124_v38 = vld [vmem:[%s8689_s2 + $0x258] sm:$0xff]  ;;  %v171_v39 = vld [vmem:[%s8689_s2 + $0x3d0] sm:$0xff]  ;;  %v4511_v40 = vpack.c.bf16 %v222_v33, %v219_v32  ;;  %v174_v41 = vld [vmem:[%s8689_s2 + $0x3e8] sm:$0xff] }
  0x32   :  { %v128_v42 = vld [vmem:[%s8689_s2 + $0x278] sm:$0xff]  ;;  %v131_v43 = vld [vmem:[%s8689_s2 + $0x290] sm:$0xff]  ;;  %v225_v44 = vld [vmem:[%s8689_s2 + $0x580] sm:$0xff]  ;;  %v4385_v46 = vpack.c.bf16 %v124_v38, %v121_v37  ;;  %v4513_v47 = vpack.c.bf16 %v174_v41, %v171_v39 }
  0x33   :  { %470 = vmatmul.mubr.f32.vlgmr.msra.gmra.mrb[0].mxu1 %v5743_v27  ;;  %4370 = vmatpush1.bf16.msra.mxu0 %v4369_v57  ;;  %v228_v45 = vld [vmem:[%s8689_s2 + $0x598] sm:$0xff]  ;;  %v4387_v48 = vpack.c.bf16 %v131_v43, %v128_v42  ;;  %v127_v49 = vld [vmem:[%s8689_s2 + $0x270] sm:$0xff]  ;;  %v130_v50 = vld [vmem:[%s8689_s2 + $0x288] sm:$0xff] }
  0x34   :  { %4498 = vmatpush3.bf16.msra.mxu1 %v4497_v58  ;;  %4372 = vmatprep.subr.bf16.mxu0 %v4371_v59  ;;  %v177_v51 = vld [vmem:[%s8689_s2 + $0x400] sm:$0xff]  ;;  %v4515_v52 = vpack.c.bf16 %v228_v45, %v225_v44  ;;  %v180_v53 = vld [vmem:[%s8689_s2 + $0x418] sm:$0xff]  ;;  %v134_v55 = vld [vmem:[%s8689_s2 + $0x2a8] sm:$0xff]  ;;  %v4389_v59 = vpack.c.bf16 %v130_v50, %v127_v49 }
  0x35   :  { %4500 = vmatprep.subr.bf16.mxu1 %v4499_v63  ;;  %539 = vmatprep.mubr.f32.mxu1 %v5828_v4  ;;  %v137_v56 = vld [vmem:[%s8689_s2 + $0x2c0] sm:$0xff]  ;;  %v231_v57 = vld [vmem:[%s8689_s2 + $0x5b0] sm:$0xff]  ;;  %v234_v58 = vld [vmem:[%s8689_s2 + $0x5c8] sm:$0xff]  ;;  %v4517_v60 = vpack.c.bf16 %v180_v53, %v177_v51 }
  0x36   :  { %v4391_v61 = vpack.c.bf16 %v137_v56, %v134_v55  ;;  %v133_v62 = vld [vmem:[%s8689_s2 + $0x2a0] sm:$0xff]  ;;  %v136_v63 = vld [vmem:[%s8689_s2 + $0x2b8] sm:$0xff]  ;;  %v183_v1 = vld [vmem:[%s8689_s2 + $0x430] sm:$0xff]  ;;  %v4519_v2 = vpack.c.bf16 %v234_v58, %v231_v57 }
  0x37   :  { %4374 = vmatpush1.bf16.msra.mxu0 %v4373_v7  ;;  %v186_v3 = vld [vmem:[%s8689_s2 + $0x448] sm:$0xff]  ;;  %v140_v5 = vld [vmem:[%s8689_s2 + $0x2d8] sm:$0xff]  ;;  %v143_v6 = vld [vmem:[%s8689_s2 + $0x2f0] sm:$0xff] }
  0x38   :  { %4502 = vmatpush3.bf16.msra.mxu1 %v4501_v8  ;;  %4376 = vmatprep.subr.bf16.mxu0 %v4375_v9  ;;  %v237_v7 = vld [vmem:[%s8689_s2 + $0x5e0] sm:$0xff]  ;;  %v240_v8 = vld [vmem:[%s8689_s2 + $0x5f8] sm:$0xff]  ;;  %v4393_v9 = vpack.c.bf16 %v136_v63, %v133_v62  ;;  %v4521_v10 = vpack.c.bf16 %v186_v3, %v183_v1  ;;  %v4395_v11 = vpack.c.bf16 %v143_v6, %v140_v5  ;;  %v139_v12 = vld [vmem:[%s8689_s2 + $0x2d0] sm:$0xff] }
  0x39   :  { %4504 = vmatprep.subr.bf16.mxu1 %v4503_v14  ;;  %v142_v14 = vld [vmem:[%s8689_s2 + $0x2e8] sm:$0xff]  ;;  %v189_v15 = vld [vmem:[%s8689_s2 + $0x460] sm:$0xff]  ;;  %v4523_v16 = vpack.c.bf16 %v240_v8, %v237_v7  ;;  %v192_v17 = vld [vmem:[%s8689_s2 + $0x478] sm:$0xff] }
  0x3a   :  { %v146_v18 = vld [vmem:[%s8689_s2 + $0x308] sm:$0xff]  ;;  %v149_v19 = vld [vmem:[%s8689_s2 + $0x320] sm:$0xff]  ;;  %v4525_v23 = vpack.c.bf16 %v192_v17, %v189_v15  ;;  %v548_v30 = vld [vmem:[%s8690_s3 + $0x18] sm:$0xff] }
  0x3b   :  { %4378 = vmatpush1.bf16.msra.mxu0 %v4377_v20  ;;  %v546_v20 = vld [vmem:[%s8690_s3 + $0x8] sm:$0xff]  ;;  %v4399_v24 = vpack.c.bf16 %v149_v19, %v146_v18  ;;  %v145_v25 = vld [vmem:[%s8689_s2 + $0x300] sm:$0xff]  ;;  %v152_v32 = vld [vmem:[%s8689_s2 + $0x338] sm:$0xff] }
  0x3c   :  { %4506 = vmatpush3.bf16.msra.mxu1 %v4505_v21  ;;  %4380 = vmatprep.subr.bf16.mxu0 %v4379_v22  ;;  %v549_v21 = vld [vmem:[%s8690_s3 + $0x20] sm:$0xff]  ;;  %v4397_v22 = vpack.c.bf16 %v142_v14, %v139_v12  ;;  %v155_v33 = vld [vmem:[%s8689_s2 + $0x350] sm:$0xff]  ;;  %v554_v43 = vld [vmem:[%s8690_s3 + $0x48] sm:$0xff] }
  0x3d   :  { %4508 = vmatprep.subr.bf16.mxu1 %v4507_v26  ;;  %v148_v26 = vld [vmem:[%s8689_s2 + $0x318] sm:$0xff]  ;;  %v545_v28 = vld [vmem:[%s8690_s3] sm:$0xff]  ;;  %v4527_v29 = vpack.c.bf16 %v549_v21, %v546_v20  ;;  %v4403_v38 = vpack.c.bf16 %v155_v33, %v152_v32  ;;  %v151_v39 = vld [vmem:[%s8689_s2 + $0x330] sm:$0xff] }
  0x3e   :  { %v4529_v37 = vpack.c.bf16 %v548_v30, %v545_v28  ;;  %v551_v41 = vld [vmem:[%s8690_s3 + $0x30] sm:$0xff]  ;;  %v158_v44 = vld [vmem:[%s8689_s2 + $0x368] sm:$0xff]  ;;  %v161_v45 = vld [vmem:[%s8689_s2 + $0x380] sm:$0xff] }
  0x3f   :  { %4382 = vmatpush1.bf16.msra.mxu0 %v4381_v34  ;;  %v552_v34 = vld [vmem:[%s8690_s3 + $0x38] sm:$0xff]  ;;  %v4533_v49 = vpack.c.bf16 %v554_v43, %v551_v41  ;;  %v4407_v50 = vpack.c.bf16 %v161_v45, %v158_v44  ;;  %v157_v51 = vld [vmem:[%s8689_s2 + $0x360] sm:$0xff]  ;;  %v167_v58 = vld [vmem:[%s8689_s2 + $0x3b0] sm:$0xff] }
  0x40   :  { %4510 = vmatpush3.bf16.msra.mxu1 %v4509_v35  ;;  %4384 = vmatprep.subr.bf16.mxu0 %v4383_v36  ;;  %v555_v35 = vld [vmem:[%s8690_s3 + $0x50] sm:$0xff]  ;;  %v4401_v36 = vpack.c.bf16 %v148_v26, %v145_v25  ;;  %v557_v53 = vld [vmem:[%s8690_s3 + $0x60] sm:$0xff]  ;;  %v560_v56 = vld [vmem:[%s8690_s3 + $0x78] sm:$0xff] }
  0x41   :  { %4512 = vmatprep.subr.bf16.mxu1 %v4511_v40  ;;  %v154_v40 = vld [vmem:[%s8689_s2 + $0x348] sm:$0xff]  ;;  %v4531_v42 = vpack.c.bf16 %v555_v35, %v552_v34  ;;  %v164_v57 = vld [vmem:[%s8689_s2 + $0x398] sm:$0xff]  ;;  %v4537_v62 = vpack.c.bf16 %v560_v56, %v557_v53  ;;  %v163_v1 = vld [vmem:[%s8689_s2 + $0x390] sm:$0xff] }
  0x42   :  { %v4411_v63 = vpack.c.bf16 %v167_v58, %v164_v57  ;;  %v563_v3 = vld [vmem:[%s8690_s3 + $0x90] sm:$0xff]  ;;  %v566_v6 = vld [vmem:[%s8690_s3 + $0xa8] sm:$0xff]  ;;  %v173_v8 = vld [vmem:[%s8689_s2 + $0x3e0] sm:$0xff] }
  0x43   :  { %4386 = vmatpush1.bf16.msra.mxu0 %v4385_v46  ;;  %v558_v46 = vld [vmem:[%s8690_s3 + $0x68] sm:$0xff]  ;;  %v4541_v12 = vpack.c.bf16 %v566_v6, %v563_v3  ;;  %v169_v15 = vld [vmem:[%s8689_s2 + $0x3c0] sm:$0xff]  ;;  %v572_v19 = vld [vmem:[%s8690_s3 + $0xd8] sm:$0xff] }
  0x44   :  { %4514 = vmatpush3.bf16.msra.mxu1 %v4513_v47  ;;  %4388 = vmatprep.subr.bf16.mxu0 %v4387_v48  ;;  %v561_v47 = vld [vmem:[%s8690_s3 + $0x80] sm:$0xff]  ;;  %v4405_v48 = vpack.c.bf16 %v154_v40, %v151_v39  ;;  %v170_v7 = vld [vmem:[%s8689_s2 + $0x3c8] sm:$0xff]  ;;  %v176_v20 = vld [vmem:[%s8689_s2 + $0x3f8] sm:$0xff] }
  0x45   :  { %4516 = vmatprep.subr.bf16.mxu1 %v4515_v52  ;;  %v160_v52 = vld [vmem:[%s8689_s2 + $0x378] sm:$0xff]  ;;  %v4535_v55 = vpack.c.bf16 %v561_v47, %v558_v46  ;;  %v4415_v14 = vpack.c.bf16 %v173_v8, %v170_v7  ;;  %v569_v17 = vld [vmem:[%s8690_s3 + $0xc0] sm:$0xff]  ;;  %v179_v21 = vld [vmem:[%s8689_s2 + $0x410] sm:$0xff] }
  0x46   :  { %v4545_v25 = vpack.c.bf16 %v572_v19, %v569_v17  ;;  %v4419_v26 = vpack.c.bf16 %v179_v21, %v176_v20  ;;  %v175_v28 = vld [vmem:[%s8689_s2 + $0x3f0] sm:$0xff]  ;;  %v578_v33 = vld [vmem:[%s8690_s3 + $0x108] sm:$0xff]  ;;  %v185_v35 = vld [vmem:[%s8689_s2 + $0x440] sm:$0xff] }
  0x47   :  { %4390 = vmatpush1.bf16.msra.mxu0 %v4389_v59  ;;  %v564_v59 = vld [vmem:[%s8690_s3 + $0x98] sm:$0xff]  ;;  %v575_v30 = vld [vmem:[%s8690_s3 + $0xf0] sm:$0xff]  ;;  %v182_v34 = vld [vmem:[%s8689_s2 + $0x428] sm:$0xff] }
  0x48   :  { %4518 = vmatpush3.bf16.msra.mxu1 %v4517_v60  ;;  %4392 = vmatprep.subr.bf16.mxu0 %v4391_v61  ;;  %v567_v60 = vld [vmem:[%s8690_s3 + $0xb0] sm:$0xff]  ;;  %v4409_v61 = vpack.c.bf16 %v160_v52, %v157_v51  ;;  %v4549_v39 = vpack.c.bf16 %v578_v33, %v575_v30  ;;  %v4423_v40 = vpack.c.bf16 %v185_v35, %v182_v34  ;;  %v181_v41 = vld [vmem:[%s8689_s2 + $0x420] sm:$0xff]  ;;  %v584_v45 = vld [vmem:[%s8690_s3 + $0x138] sm:$0xff] }
  0x49   :  { %4520 = vmatprep.subr.bf16.mxu1 %v4519_v2  ;;  %v166_v2 = vld [vmem:[%s8689_s2 + $0x3a8] sm:$0xff]  ;;  %v4539_v5 = vpack.c.bf16 %v567_v60, %v564_v59  ;;  %v581_v43 = vld [vmem:[%s8690_s3 + $0x120] sm:$0xff]  ;;  %v188_v46 = vld [vmem:[%s8689_s2 + $0x458] sm:$0xff] }
  0x4a   :  { %v191_v47 = vld [vmem:[%s8689_s2 + $0x470] sm:$0xff]  ;;  %v4553_v51 = vpack.c.bf16 %v584_v45, %v581_v43  ;;  %v590_v58 = vld [vmem:[%s8690_s3 + $0x168] sm:$0xff]  ;;  %v197_v60 = vld [vmem:[%s8689_s2 + $0x4a0] sm:$0xff] }
  0x4b   :  { %4394 = vmatpush1.bf16.msra.mxu0 %v4393_v9  ;;  %v570_v9 = vld [vmem:[%s8690_s3 + $0xc8] sm:$0xff]  ;;  %v4427_v52 = vpack.c.bf16 %v191_v47, %v188_v46  ;;  %v187_v53 = vld [vmem:[%s8689_s2 + $0x450] sm:$0xff]  ;;  %v193_v3 = vld [vmem:[%s8689_s2 + $0x480] sm:$0xff] }
  0x4c   :  { %4522 = vmatpush3.bf16.msra.mxu1 %v4521_v10  ;;  %4396 = vmatprep.subr.bf16.mxu0 %v4395_v11  ;;  %v573_v10 = vld [vmem:[%s8690_s3 + $0xe0] sm:$0xff]  ;;  %v4413_v11 = vpack.c.bf16 %v166_v2, %v163_v1  ;;  %v587_v56 = vld [vmem:[%s8690_s3 + $0x150] sm:$0xff]  ;;  %v194_v59 = vld [vmem:[%s8689_s2 + $0x488] sm:$0xff] }
  0x4d   :  { %4524 = vmatprep.subr.bf16.mxu1 %v4523_v16  ;;  %v172_v16 = vld [vmem:[%s8689_s2 + $0x3d8] sm:$0xff]  ;;  %v4543_v18 = vpack.c.bf16 %v573_v10, %v570_v9  ;;  %v4557_v1 = vpack.c.bf16 %v590_v58, %v587_v56  ;;  %v4431_v2 = vpack.c.bf16 %v197_v60, %v194_v59  ;;  %v593_v6 = vld [vmem:[%s8690_s3 + $0x180] sm:$0xff]  ;;  %v203_v10 = vld [vmem:[%s8689_s2 + $0x4d0] sm:$0xff] }
  0x4e   :  { %v596_v8 = vld [vmem:[%s8690_s3 + $0x198] sm:$0xff]  ;;  %v199_v17 = vld [vmem:[%s8689_s2 + $0x4b0] sm:$0xff]  ;;  %v602_v21 = vld [vmem:[%s8690_s3 + $0x1c8] sm:$0xff] }
  0x4f   :  { %4398 = vmatpush1.bf16.msra.mxu0 %v4397_v22  ;;  %v576_v22 = vld [vmem:[%s8690_s3 + $0xf8] sm:$0xff]  ;;  %v599_v19 = vld [vmem:[%s8690_s3 + $0x1b0] sm:$0xff]  ;;  %v205_v30 = vld [vmem:[%s8689_s2 + $0x4e0] sm:$0xff] }
  0x50   :  { %4526 = vmatpush3.bf16.msra.mxu1 %v4525_v23  ;;  %4400 = vmatprep.subr.bf16.mxu0 %v4399_v24  ;;  %v579_v23 = vld [vmem:[%s8690_s3 + $0x110] sm:$0xff]  ;;  %v4417_v24 = vpack.c.bf16 %v172_v16, %v169_v15  ;;  %v200_v9 = vld [vmem:[%s8689_s2 + $0x4b8] sm:$0xff]  ;;  %v4561_v15 = vpack.c.bf16 %v596_v8, %v593_v6  ;;  %v605_v33 = vld [vmem:[%s8690_s3 + $0x1e0] sm:$0xff] }
  0x51   :  { %4528 = vmatprep.subr.bf16.mxu1 %v4527_v29  ;;  %v178_v29 = vld [vmem:[%s8689_s2 + $0x408] sm:$0xff]  ;;  %v4547_v32 = vpack.c.bf16 %v579_v23, %v576_v22  ;;  %v4435_v16 = vpack.c.bf16 %v203_v10, %v200_v9  ;;  %v209_v23 = vld [vmem:[%s8689_s2 + $0x500] sm:$0xff]  ;;  %v608_v35 = vld [vmem:[%s8690_s3 + $0x1f8] sm:$0xff] }
  0x52   :  { %328 = vmatmul.mubr.f32.vlgmr.msra.gmra.mrb[0].mxu0 %v5743_v27  ;;  %v206_v22 = vld [vmem:[%s8689_s2 + $0x4e8] sm:$0xff]  ;;  %v211_v43 = vld [vmem:[%s8689_s2 + $0x510] sm:$0xff]  ;;  %v217_v56 = vld [vmem:[%s8689_s2 + $0x540] sm:$0xff] }
  0x53   :  { %540 = vmatmul.mubr.f32.vlgmr.msra.gmra.mrb[2].mxu1 %v5800_v54  ;;  %4402 = vmatpush1.bf16.msra.mxu0 %v4401_v36  ;;  %v582_v36 = vld [vmem:[%s8690_s3 + $0x128] sm:$0xff]  ;;  %v611_v45 = vld [vmem:[%s8690_s3 + $0x210] sm:$0xff]  ;;  %v617_v58 = vld [vmem:[%s8690_s3 + $0x240] sm:$0xff] }
  0x54   :  { %4530 = vmatpush1.bf16.msra.mxu1 %v4529_v37  ;;  %4404 = vmatprep.subr.bf16.mxu0 %v4403_v38  ;;  %v585_v37 = vld [vmem:[%s8690_s3 + $0x140] sm:$0xff]  ;;  %v4421_v38 = vpack.c.bf16 %v178_v29, %v175_v28  ;;  %v4565_v28 = vpack.c.bf16 %v602_v21, %v599_v19  ;;  %v4439_v29 = vpack.c.bf16 %v209_v23, %v206_v22  ;;  %v614_v47 = vld [vmem:[%s8690_s3 + $0x228] sm:$0xff]  ;;  %v620_v60 = vld [vmem:[%s8690_s3 + $0x258] sm:$0xff] }
  0x55   :  { %4532 = vmatprep.subr.bf16.mxu1 %v4531_v42  ;;  %398 = vmatprep.mubr.f32.mxu0 %v5828_v4  ;;  %v184_v42 = vld [vmem:[%s8689_s2 + $0x438] sm:$0xff]  ;;  %v4551_v44 = vpack.c.bf16 %v585_v37, %v582_v36  ;;  %v215_v37 = vld [vmem:[%s8689_s2 + $0x530] sm:$0xff]  ;;  %v626_v10 = vld [vmem:[%s8690_s3 + $0x288] sm:$0xff] }
  0x56   :  { %801 = vmatprep.mubr.f32.mxu1 %v5753_v31  ;;  %v212_v36 = vld [vmem:[%s8689_s2 + $0x518] sm:$0xff]  ;;  %v223_v6 = vld [vmem:[%s8689_s2 + $0x570] sm:$0xff]  ;;  %v229_v19 = vld [vmem:[%s8689_s2 + $0x5a0] sm:$0xff] }
  0x57   :  { %4406 = vmatpush1.bf16.msra.mxu0 %v4405_v48  ;;  %v588_v48 = vld [vmem:[%s8690_s3 + $0x158] sm:$0xff]  ;;  %v623_v8 = vld [vmem:[%s8690_s3 + $0x270] sm:$0xff]  ;;  %v629_v21 = vld [vmem:[%s8690_s3 + $0x2a0] sm:$0xff] }
  0x58   :  { %4534 = vmatpush1.bf16.msra.mxu1 %v4533_v49  ;;  %4408 = vmatprep.subr.bf16.mxu0 %v4407_v50  ;;  %v591_v49 = vld [vmem:[%s8690_s3 + $0x170] sm:$0xff]  ;;  %v4425_v50 = vpack.c.bf16 %v184_v42, %v181_v41  ;;  %v4569_v41 = vpack.c.bf16 %v608_v35, %v605_v33  ;;  %v4443_v42 = vpack.c.bf16 %v215_v37, %v212_v36  ;;  %v632_v23 = vld [vmem:[%s8690_s3 + $0x2b8] sm:$0xff]  ;;  %v638_v37 = vld [vmem:[%s8690_s3 + $0x2e8] sm:$0xff] }
  0x59   :  { %4536 = vmatprep.subr.bf16.mxu1 %v4535_v55  ;;  %v190_v55 = vld [vmem:[%s8689_s2 + $0x468] sm:$0xff]  ;;  %v4555_v57 = vpack.c.bf16 %v591_v49, %v588_v48  ;;  %v221_v49 = vld [vmem:[%s8689_s2 + $0x560] sm:$0xff]  ;;  %v235_v33 = vld [vmem:[%s8689_s2 + $0x5d0] sm:$0xff] }
  0x5a   :  { %v218_v48 = vld [vmem:[%s8689_s2 + $0x548] sm:$0xff]  ;;  %v635_v35 = vld [vmem:[%s8690_s3 + $0x2d0] sm:$0xff] }
  0x5b   :  { %4410 = vmatpush1.bf16.msra.mxu0 %v4409_v61  ;;  %v594_v61 = vld [vmem:[%s8690_s3 + $0x188] sm:$0xff] }
  0x5c   :  { %4538 = vmatpush1.bf16.msra.mxu1 %v4537_v62  ;;  %4412 = vmatprep.subr.bf16.mxu0 %v4411_v63  ;;  %v597_v62 = vld [vmem:[%s8690_s3 + $0x1a0] sm:$0xff]  ;;  %v4429_v63 = vpack.c.bf16 %v190_v55, %v187_v53  ;;  %v4573_v53 = vpack.c.bf16 %v614_v47, %v611_v45  ;;  %v4447_v55 = vpack.c.bf16 %v221_v49, %v218_v48  ;;  %v643_v45 = vld [vmem:[%s8690_s3 + $0x310] sm:$0xff]  ;;  %v644_v49 = vld [vmem:[%s8690_s3 + $0x318] sm:$0xff] }
  0x5d   :  { %4540 = vmatprep.subr.bf16.mxu1 %v4539_v5  ;;  %v196_v5 = vld [vmem:[%s8689_s2 + $0x498] sm:$0xff]  ;;  %v4559_v7 = vpack.c.bf16 %v597_v62, %v594_v61  ;;  %v227_v62 = vld [vmem:[%s8689_s2 + $0x590] sm:$0xff]  ;;  %v641_v48 = vld [vmem:[%s8690_s3 + $0x300] sm:$0xff] }
  0x5e   :  { %v224_v61 = vld [vmem:[%s8689_s2 + $0x578] sm:$0xff] }
  0x5f   :  { %4414 = vmatpush1.bf16.msra.mxu0 %v4413_v11  ;;  %v600_v11 = vld [vmem:[%s8690_s3 + $0x1b8] sm:$0xff] }
  0x60   :  { %4542 = vmatpush1.bf16.msra.mxu1 %v4541_v12  ;;  %4416 = vmatprep.subr.bf16.mxu0 %v4415_v14  ;;  %v603_v12 = vld [vmem:[%s8690_s3 + $0x1d0] sm:$0xff]  ;;  %v4433_v14 = vpack.c.bf16 %v196_v5, %v193_v3  ;;  %v4577_v3 = vpack.c.bf16 %v620_v60, %v617_v58  ;;  %v4451_v5 = vpack.c.bf16 %v227_v62, %v224_v61  ;;  %v649_v58 = vld [vmem:[%s8690_s3 + $0x340] sm:$0xff]  ;;  %v650_v61 = vld [vmem:[%s8690_s3 + $0x348] sm:$0xff] }
  0x61   :  { %4544 = vmatprep.subr.bf16.mxu1 %v4543_v18  ;;  %v202_v18 = vld [vmem:[%s8689_s2 + $0x4c8] sm:$0xff]  ;;  %v4563_v20 = vpack.c.bf16 %v603_v12, %v600_v11  ;;  %v233_v12 = vld [vmem:[%s8689_s2 + $0x5c0] sm:$0xff] }
  0x62   :  { %v230_v11 = vld [vmem:[%s8689_s2 + $0x5a8] sm:$0xff] }
  0x63   :  { %4418 = vmatpush1.bf16.msra.mxu0 %v4417_v24  ;;  %v606_v24 = vld [vmem:[%s8690_s3 + $0x1e8] sm:$0xff] }
  0x64   :  { %4546 = vmatpush1.bf16.msra.mxu1 %v4545_v25  ;;  %4420 = vmatprep.subr.bf16.mxu0 %v4419_v26  ;;  %v609_v25 = vld [vmem:[%s8690_s3 + $0x200] sm:$0xff]  ;;  %v4437_v26 = vpack.c.bf16 %v202_v18, %v199_v17  ;;  %v4581_v17 = vpack.c.bf16 %v626_v10, %v623_v8  ;;  %v4455_v18 = vpack.c.bf16 %v233_v12, %v230_v11  ;;  %v658_v10 = vld [vmem:[%s8690_s3 + $0x388] sm:$0xff]  ;;  %v656_v12 = vld [vmem:[%s8690_s3 + $0x378] sm:$0xff] }
  0x65   :  { %4548 = vmatprep.subr.bf16.mxu1 %v4547_v32  ;;  %v208_v32 = vld [vmem:[%s8689_s2 + $0x4f8] sm:$0xff]  ;;  %v4567_v34 = vpack.c.bf16 %v609_v25, %v606_v24  ;;  %v239_v25 = vld [vmem:[%s8689_s2 + $0x5f0] sm:$0xff] }
  0x66   :  { %v236_v24 = vld [vmem:[%s8689_s2 + $0x5d8] sm:$0xff] }
  0x67   :  { %4422 = vmatpush1.bf16.msra.mxu0 %v4421_v38  ;;  %v612_v38 = vld [vmem:[%s8690_s3 + $0x218] sm:$0xff] }
  0x68   :  { %4550 = vmatpush1.bf16.msra.mxu1 %v4549_v39  ;;  %4424 = vmatprep.subr.bf16.mxu0 %v4423_v40  ;;  %v615_v39 = vld [vmem:[%s8690_s3 + $0x230] sm:$0xff]  ;;  %v4441_v40 = vpack.c.bf16 %v208_v32, %v205_v30  ;;  %v4585_v30 = vpack.c.bf16 %v632_v23, %v629_v21  ;;  %v4459_v32 = vpack.c.bf16 %v239_v25, %v236_v24  ;;  %v664_v23 = vld [vmem:[%s8690_s3 + $0x3b8] sm:$0xff]  ;;  %v662_v24 = vld [vmem:[%s8690_s3 + $0x3a8] sm:$0xff] }
  0x69   :  { %4552 = vmatprep.subr.bf16.mxu1 %v4551_v44  ;;  %v214_v44 = vld [vmem:[%s8689_s2 + $0x528] sm:$0xff]  ;;  %v4571_v46 = vpack.c.bf16 %v615_v39, %v612_v38  ;;  %v691_v38 = vld [vmem:[%s8690_s3 + $0x490] sm:$0xff] }
  0x6a   :  { %v694_v39 = vld [vmem:[%s8690_s3 + $0x4a8] sm:$0xff]  ;;  %v715_v25 = vld [vmem:[%s8690_s3 + $0x550] sm:$0xff] }
  0x6b   :  { %4426 = vmatpush1.bf16.msra.mxu0 %v4425_v50  ;;  %v618_v50 = vld [vmem:[%s8690_s3 + $0x248] sm:$0xff] }
  0x6c   :  { %4554 = vmatpush1.bf16.msra.mxu1 %v4553_v51  ;;  %4428 = vmatprep.subr.bf16.mxu0 %v4427_v52  ;;  %v621_v51 = vld [vmem:[%s8690_s3 + $0x260] sm:$0xff]  ;;  %v4445_v52 = vpack.c.bf16 %v214_v44, %v211_v43  ;;  %v4589_v43 = vpack.c.bf16 %v638_v37, %v635_v35  ;;  %v4687_v44 = vpack.c.bf16 %v694_v39, %v691_v38  ;;  %v667_v35 = vld [vmem:[%s8690_s3 + $0x3d0] sm:$0xff]  ;;  %v668_v38 = vld [vmem:[%s8690_s3 + $0x3d8] sm:$0xff] }
  0x6d   :  { %4556 = vmatprep.subr.bf16.mxu1 %v4555_v57  ;;  %v220_v57 = vld [vmem:[%s8689_s2 + $0x558] sm:$0xff]  ;;  %v4575_v59 = vpack.c.bf16 %v621_v51, %v618_v50  ;;  %v651_v51 = vld [vmem:[%s8690_s3 + $0x350] sm:$0xff]  ;;  %v721_v39 = vld [vmem:[%s8690_s3 + $0x580] sm:$0xff] }
  0x6e   :  { %v648_v50 = vld [vmem:[%s8690_s3 + $0x338] sm:$0xff] }
  0x6f   :  { %4430 = vmatpush1.bf16.msra.mxu0 %v4429_v63  ;;  %v624_v63 = vld [vmem:[%s8690_s3 + $0x278] sm:$0xff]  ;;  %v4595_v60 = vpack.c.bf16 %v651_v51, %v648_v50  ;;  %v674_v50 = vld [vmem:[%s8690_s3 + $0x408] sm:$0xff]  ;;  %v727_v51 = vld [vmem:[%s8690_s3 + $0x5b0] sm:$0xff] }
  0x70   :  { %4558 = vmatpush1.bf16.msra.mxu1 %v4557_v1  ;;  %4432 = vmatprep.subr.bf16.mxu0 %v4431_v2  ;;  %v627_v1 = vld [vmem:[%s8690_s3 + $0x290] sm:$0xff]  ;;  %v4449_v2 = vpack.c.bf16 %v220_v57, %v217_v56  ;;  %v4593_v56 = vpack.c.bf16 %v644_v49, %v641_v48  ;;  %v676_v48 = vld [vmem:[%s8690_s3 + $0x418] sm:$0xff] }
  0x71   :  { %4560 = vmatprep.subr.bf16.mxu1 %v4559_v7  ;;  %v226_v7 = vld [vmem:[%s8689_s2 + $0x588] sm:$0xff]  ;;  %v4579_v9 = vpack.c.bf16 %v627_v1, %v624_v63  ;;  %v647_v57 = vld [vmem:[%s8690_s3 + $0x330] sm:$0xff] }
  0x72   :  { %v703_v63 = vld [vmem:[%s8690_s3 + $0x4f0] sm:$0xff]  ;;  %v706_v1 = vld [vmem:[%s8690_s3 + $0x508] sm:$0xff] }
  0x73   :  { %4434 = vmatpush1.bf16.msra.mxu0 %v4433_v14  ;;  %v630_v14 = vld [vmem:[%s8690_s3 + $0x2a8] sm:$0xff]  ;;  %v4695_v8 = vpack.c.bf16 %v706_v1, %v703_v63  ;;  %v680_v63 = vld [vmem:[%s8690_s3 + $0x438] sm:$0xff]  ;;  %v733_v1 = vld [vmem:[%s8690_s3 + $0x5e0] sm:$0xff] }
  0x74   :  { %4562 = vmatpush1.bf16.msra.mxu1 %v4561_v15  ;;  %4436 = vmatprep.subr.bf16.mxu0 %v4435_v16  ;;  %v633_v15 = vld [vmem:[%s8690_s3 + $0x2c0] sm:$0xff]  ;;  %v4453_v16 = vpack.c.bf16 %v226_v7, %v223_v6  ;;  %v4597_v6 = vpack.c.bf16 %v650_v61, %v647_v57  ;;  %v682_v61 = vld [vmem:[%s8690_s3 + $0x448] sm:$0xff] }
  0x75   :  { %4564 = vmatprep.subr.bf16.mxu1 %v4563_v20  ;;  %v232_v20 = vld [vmem:[%s8689_s2 + $0x5b8] sm:$0xff]  ;;  %v4583_v22 = vpack.c.bf16 %v633_v15, %v630_v14  ;;  %v653_v7 = vld [vmem:[%s8690_s3 + $0x360] sm:$0xff] }
  0x76   :  { %v709_v14 = vld [vmem:[%s8690_s3 + $0x520] sm:$0xff]  ;;  %v712_v15 = vld [vmem:[%s8690_s3 + $0x538] sm:$0xff] }
  0x77   :  { %4438 = vmatpush1.bf16.msra.mxu0 %v4437_v26  ;;  %v636_v26 = vld [vmem:[%s8690_s3 + $0x2d8] sm:$0xff]  ;;  %v4699_v21 = vpack.c.bf16 %v712_v15, %v709_v14  ;;  %v686_v14 = vld [vmem:[%s8690_s3 + $0x468] sm:$0xff] }
  0x78   :  { %4566 = vmatpush1.bf16.msra.mxu1 %v4565_v28  ;;  %4440 = vmatprep.subr.bf16.mxu0 %v4439_v29  ;;  %v639_v28 = vld [vmem:[%s8690_s3 + $0x2f0] sm:$0xff]  ;;  %v4457_v29 = vpack.c.bf16 %v232_v20, %v229_v19  ;;  %v4601_v19 = vpack.c.bf16 %v656_v12, %v653_v7  ;;  %v690_v15 = vld [vmem:[%s8690_s3 + $0x488] sm:$0xff] }
  0x79   :  { %4568 = vmatprep.subr.bf16.mxu1 %v4567_v34  ;;  %v238_v34 = vld [vmem:[%s8689_s2 + $0x5e8] sm:$0xff]  ;;  %v4587_v36 = vpack.c.bf16 %v639_v28, %v636_v26  ;;  %v659_v20 = vld [vmem:[%s8690_s3 + $0x390] sm:$0xff] }
  0x7a   :  { %v718_v26 = vld [vmem:[%s8690_s3 + $0x568] sm:$0xff]  ;;  %v683_v12 = vld [vmem:[%s8690_s3 + $0x450] sm:$0xff] }
  0x7b   :  { %4442 = vmatpush1.bf16.msra.mxu0 %v4441_v40  ;;  %v642_v40 = vld [vmem:[%s8690_s3 + $0x308] sm:$0xff] }
  0x7c   :  { %4570 = vmatpush1.bf16.msra.mxu1 %v4569_v41  ;;  %4444 = vmatprep.subr.bf16.mxu0 %v4443_v42  ;;  %v645_v41 = vld [vmem:[%s8690_s3 + $0x320] sm:$0xff]  ;;  %v4461_v42 = vpack.c.bf16 %v238_v34, %v235_v33  ;;  %v666_v28 = vld [vmem:[%s8690_s3 + $0x3c8] sm:$0xff]  ;;  %v4703_v34 = vpack.c.bf16 %v718_v26, %v715_v25  ;;  %v695_v25 = vld [vmem:[%s8690_s3 + $0x4b0] sm:$0xff] }
  0x7d   :  { %4572 = vmatprep.subr.bf16.mxu1 %v4571_v46  ;;  %v646_v46 = vld [vmem:[%s8690_s3 + $0x328] sm:$0xff]  ;;  %v4591_v47 = vpack.c.bf16 %v645_v41, %v642_v40  ;;  %v665_v33 = vld [vmem:[%s8690_s3 + $0x3c0] sm:$0xff]  ;;  %v724_v40 = vld [vmem:[%s8690_s3 + $0x598] sm:$0xff] }
  0x7e   :  { %v672_v41 = vld [vmem:[%s8690_s3 + $0x3f8] sm:$0xff]  ;;  %v698_v26 = vld [vmem:[%s8690_s3 + $0x4c8] sm:$0xff] }
  0x7f   :  { %4446 = vmatpush1.bf16.msra.mxu0 %v4445_v52  ;;  %v697_v52 = vld [vmem:[%s8690_s3 + $0x4c0] sm:$0xff] }
  0x80   :  { %4574 = vmatpush1.bf16.msra.mxu1 %v4573_v53  ;;  %4448 = vmatprep.subr.bf16.mxu0 %v4447_v55  ;;  %v700_v53 = vld [vmem:[%s8690_s3 + $0x4d8] sm:$0xff]  ;;  %v4689_v55 = vpack.c.bf16 %v646_v46, %v643_v45  ;;  %v671_v45 = vld [vmem:[%s8690_s3 + $0x3f0] sm:$0xff]  ;;  %v4707_v46 = vpack.c.bf16 %v724_v40, %v721_v39  ;;  %v710_v40 = vld [vmem:[%s8690_s3 + $0x528] sm:$0xff] }
  0x81   :  { %4576 = vmatprep.subr.bf16.mxu1 %v4575_v59  ;;  %v652_v59 = vld [vmem:[%s8690_s3 + $0x358] sm:$0xff]  ;;  %v4691_v62 = vpack.c.bf16 %v700_v53, %v697_v52  ;;  %v730_v52 = vld [vmem:[%s8690_s3 + $0x5c8] sm:$0xff]  ;;  %v4613_v57 = vpack.c.bf16 %v674_v50, %v671_v45  ;;  %v707_v39 = vld [vmem:[%s8690_s3 + $0x510] sm:$0xff] }
  0x82   :  { %v678_v53 = vld [vmem:[%s8690_s3 + $0x428] sm:$0xff]  ;;  %v713_v45 = vld [vmem:[%s8690_s3 + $0x540] sm:$0xff] }
  0x83   :  { %4450 = vmatpush1.bf16.msra.mxu0 %v4449_v2  ;;  %v654_v2 = vld [vmem:[%s8690_s3 + $0x368] sm:$0xff] }
  0x84   :  { %4578 = vmatpush1.bf16.msra.mxu1 %v4577_v3  ;;  %4452 = vmatprep.subr.bf16.mxu0 %v4451_v5  ;;  %v657_v3 = vld [vmem:[%s8690_s3 + $0x380] sm:$0xff]  ;;  %v4693_v5 = vpack.c.bf16 %v652_v59, %v649_v58  ;;  %v4711_v59 = vpack.c.bf16 %v730_v52, %v727_v51  ;;  %v719_v51 = vld [vmem:[%s8690_s3 + $0x570] sm:$0xff]  ;;  %v722_v52 = vld [vmem:[%s8690_s3 + $0x588] sm:$0xff] }
  0x85   :  { %4580 = vmatprep.subr.bf16.mxu1 %v4579_v9  ;;  %v655_v9 = vld [vmem:[%s8690_s3 + $0x370] sm:$0xff]  ;;  %v4599_v11 = vpack.c.bf16 %v657_v3, %v654_v2  ;;  %v677_v58 = vld [vmem:[%s8690_s3 + $0x420] sm:$0xff]  ;;  %v736_v2 = vld [vmem:[%s8690_s3 + $0x5f8] sm:$0xff] }
  0x86   :  { %v684_v3 = vld [vmem:[%s8690_s3 + $0x458] sm:$0xff]  ;;  %v4617_v7 = vpack.c.bf16 %v680_v63, %v677_v58  ;;  %v725_v58 = vld [vmem:[%s8690_s3 + $0x5a0] sm:$0xff] }
  0x87   :  { %4454 = vmatpush1.bf16.msra.mxu0 %v4453_v16  ;;  %v660_v16 = vld [vmem:[%s8690_s3 + $0x398] sm:$0xff] }
  0x88   :  { %4582 = vmatpush1.bf16.msra.mxu1 %v4581_v17  ;;  %4456 = vmatprep.subr.bf16.mxu0 %v4455_v18  ;;  %v663_v17 = vld [vmem:[%s8690_s3 + $0x3b0] sm:$0xff]  ;;  %v4697_v18 = vpack.c.bf16 %v658_v10, %v655_v9  ;;  %v685_v9 = vld [vmem:[%s8690_s3 + $0x460] sm:$0xff]  ;;  %v688_v10 = vld [vmem:[%s8690_s3 + $0x478] sm:$0xff] }
  0x89   :  { %4584 = vmatprep.subr.bf16.mxu1 %v4583_v22  ;;  %v661_v22 = vld [vmem:[%s8690_s3 + $0x3a0] sm:$0xff] }
  0x8b   :  { %4458 = vmatpush1.bf16.msra.mxu0 %v4457_v29  ;;  %v669_v29 = vld [vmem:[%s8690_s3 + $0x3e0] sm:$0xff] }
  0x8c   :  { %4586 = vmatpush1.bf16.msra.mxu1 %v4585_v30  ;;  %4460 = vmatprep.subr.bf16.mxu0 %v4459_v32  ;;  %v4701_v30 = vpack.c.bf16 %v664_v23, %v661_v22  ;;  %v4605_v32 = vpack.c.bf16 %v662_v24, %v659_v20  ;;  %v4607_v37 = vpack.c.bf16 %v669_v29, %v666_v28  ;;  %v689_v20 = vld [vmem:[%s8690_s3 + $0x480] sm:$0xff]  ;;  %v696_v22 = vld [vmem:[%s8690_s3 + $0x4b8] sm:$0xff]  ;;  %v699_v23 = vld [vmem:[%s8690_s3 + $0x4d0] sm:$0xff] }
  0x8d   :  { %4588 = vmatprep.subr.bf16.mxu1 %v4587_v36  ;;  %v670_v36 = vld [vmem:[%s8690_s3 + $0x3e8] sm:$0xff]  ;;  %v4627_v24 = vpack.c.bf16 %v699_v23, %v696_v22  ;;  %v705_v29 = vld [vmem:[%s8690_s3 + $0x500] sm:$0xff] }
  0x8e   :  { %v702_v28 = vld [vmem:[%s8690_s3 + $0x4e8] sm:$0xff]  ;;  %v613_v23 = vld [vmem:[%s8690_s3 + $0x220] sm:$0xff] }
  0x8f   :  { %4462 = vmatpush1.bf16.msra.mxu0 %v4461_v42  ;;  %v675_v42 = vld [vmem:[%s8690_s3 + $0x410] sm:$0xff]  ;;  %v562_v22 = vld [vmem:[%s8690_s3 + $0x88] sm:$0xff] }
  0x90   :  { %4590 = vmatpush1.bf16.msra.mxu1 %v4589_v43  ;;  %4688 = vmatprep.subr.bf16.mxu0 %v4687_v44  ;;  %v4705_v43 = vpack.c.bf16 %v670_v36, %v667_v35  ;;  %v4609_v44 = vpack.c.bf16 %v668_v38, %v665_v33  ;;  %v4611_v49 = vpack.c.bf16 %v675_v42, %v672_v41  ;;  %v701_v33 = vld [vmem:[%s8690_s3 + $0x4e0] sm:$0xff]  ;;  %v708_v35 = vld [vmem:[%s8690_s3 + $0x518] sm:$0xff]  ;;  %v711_v36 = vld [vmem:[%s8690_s3 + $0x530] sm:$0xff] }
  0x91   :  { %4592 = vmatprep.subr.bf16.mxu1 %v4591_v47  ;;  %v673_v47 = vld [vmem:[%s8690_s3 + $0x400] sm:$0xff]  ;;  %v4635_v38 = vpack.c.bf16 %v711_v36, %v708_v35  ;;  %v714_v41 = vld [vmem:[%s8690_s3 + $0x548] sm:$0xff]  ;;  %v628_v35 = vld [vmem:[%s8690_s3 + $0x298] sm:$0xff] }
  0x92   :  { %399 = vmatmul.mubr.f32.vlgmr.msra.gmra.mrb[0].mxu0 %v5800_v54  ;;  %v717_v42 = vld [vmem:[%s8690_s3 + $0x560] sm:$0xff] }
  0x93   :  { %802 = vmatmul.mubr.f32.vlgmr.msra.gmra.mrb[4].mxu1 %v5743_v27  ;;  %4690 = vmatpush3.bf16.msra.mxu0 %v4689_v55  ;;  %v681_v55 = vld [vmem:[%s8690_s3 + $0x440] sm:$0xff] }
  0x94   :  { %4594 = vmatpush1.bf16.msra.mxu1 %v4593_v56  ;;  %872 = vmatprep.mubr.f32.mxu1 %v5828_v4  ;;  %v4709_v56 = vpack.c.bf16 %v676_v48, %v673_v47  ;;  %v720_v47 = vld [vmem:[%s8690_s3 + $0x578] sm:$0xff]  ;;  %v723_v48 = vld [vmem:[%s8690_s3 + $0x590] sm:$0xff] }
  0x95   :  { %4596 = vmatprep.subr.bf16.mxu1 %v4595_v60  ;;  %4692 = vmatprep.subr.bf16.mxu0 %v4691_v62  ;;  %v679_v60 = vld [vmem:[%s8690_s3 + $0x430] sm:$0xff]  ;;  %v4615_v62 = vpack.c.bf16 %v681_v55, %v678_v53  ;;  %v4643_v50 = vpack.c.bf16 %v723_v48, %v720_v47  ;;  %v726_v53 = vld [vmem:[%s8690_s3 + $0x5a8] sm:$0xff]  ;;  %v729_v55 = vld [vmem:[%s8690_s3 + $0x5c0] sm:$0xff] }
  0x96   :  { %1013 = vmatprep.mubr.f32.mxu0 %v5828_v4  ;;  %v4603_v4 = vpack.c.bf16 %v663_v17, %v660_v16  ;;  %v693_v16 = vld [vmem:[%s8690_s3 + $0x4a0] sm:$0xff]  ;;  %v4717_v17 = vpack.c.bf16 %v688_v10, %v685_v9  ;;  %v550_v9 = vld [vmem:[%s8690_s3 + $0x28] sm:$0xff]  ;;  %v640_v47 = vld [vmem:[%s8690_s3 + $0x2f8] sm:$0xff] }
  0x97   :  { %4694 = vmatpush3.bf16.msra.mxu0 %v4693_v5  ;;  %v687_v5 = vld [vmem:[%s8690_s3 + $0x470] sm:$0xff]  ;;  %v601_v10 = vld [vmem:[%s8690_s3 + $0x1c0] sm:$0xff] }
  0x98   :  { %4598 = vmatpush1.bf16.msra.mxu1 %v4597_v6  ;;  %4696 = vmatprep.subr.bf16.mxu0 %v4695_v8  ;;  %v4713_v6 = vpack.c.bf16 %v682_v61, %v679_v60  ;;  %v4715_v8 = vpack.c.bf16 %v736_v2, %v733_v1  ;;  %v732_v60 = vld [vmem:[%s8690_s3 + $0x5d8] sm:$0xff]  ;;  %v735_v61 = vld [vmem:[%s8690_s3 + $0x5f0] sm:$0xff]  ;;  %v734_v2 = vld [vmem:[%s8690_s3 + $0x5e8] sm:$0xff] }
  0x99   :  { %4600 = vmatprep.subr.bf16.mxu1 %v4599_v11  ;;  %v4619_v11 = vpack.c.bf16 %v687_v5, %v684_v3  ;;  %v4651_v63 = vpack.c.bf16 %v735_v61, %v732_v60  ;;  %v731_v1 = vld [vmem:[%s8690_s3 + $0x5d0] sm:$0xff]  ;;  %v598_v5 = vld [vmem:[%s8690_s3 + $0x1a8] sm:$0xff]  ;;  %v589_v48 = vld [vmem:[%s8690_s3 + $0x160] sm:$0xff] }
  0x9a   :  { %v595_v3 = vld [vmem:[%s8690_s3 + $0x190] sm:$0xff] }
  0x9b   :  { %4698 = vmatpush3.bf16.msra.mxu0 %v4697_v18  ;;  %v4621_v18 = vpack.c.bf16 %v686_v14, %v683_v12 }
  0x9c   :  { %4602 = vmatpush1.bf16.msra.mxu1 %v4601_v19  ;;  %4700 = vmatprep.subr.bf16.mxu0 %v4699_v21  ;;  %v4623_v19 = vpack.c.bf16 %v693_v16, %v690_v15  ;;  %v692_v21 = vld [vmem:[%s8690_s3 + $0x498] sm:$0xff]  ;;  %v553_v15 = vld [vmem:[%s8690_s3 + $0x40] sm:$0xff] }
  0x9d   :  { %4604 = vmatprep.subr.bf16.mxu1 %v4603_v4  ;;  %v4625_v4 = vpack.c.bf16 %v692_v21, %v689_v20  ;;  %v556_v16 = vld [vmem:[%s8690_s3 + $0x58] sm:$0xff]  ;;  %v559_v21 = vld [vmem:[%s8690_s3 + $0x70] sm:$0xff] }
  0x9f   :  { %4702 = vmatpush3.bf16.msra.mxu0 %v4701_v30  ;;  %v4629_v30 = vpack.c.bf16 %v698_v26, %v695_v25  ;;  %v568_v25 = vld [vmem:[%s8690_s3 + $0xb8] sm:$0xff]  ;;  %v619_v26 = vld [vmem:[%s8690_s3 + $0x250] sm:$0xff] }
  0xa0   :  { %4606 = vmatpush1.bf16.msra.mxu1 %v4605_v32  ;;  %4704 = vmatprep.subr.bf16.mxu0 %v4703_v34  ;;  %v4631_v32 = vpack.c.bf16 %v705_v29, %v702_v28  ;;  %v704_v34 = vld [vmem:[%s8690_s3 + $0x4f8] sm:$0xff]  ;;  %v622_v28 = vld [vmem:[%s8690_s3 + $0x268] sm:$0xff] }
  0xa1   :  { %4608 = vmatprep.subr.bf16.mxu1 %v4607_v37  ;;  %v4633_v37 = vpack.c.bf16 %v704_v34, %v701_v33  ;;  %v574_v33 = vld [vmem:[%s8690_s3 + $0xe8] sm:$0xff]  ;;  %v625_v34 = vld [vmem:[%s8690_s3 + $0x280] sm:$0xff] }
  0xa3   :  { %4706 = vmatpush3.bf16.msra.mxu0 %v4705_v43  ;;  %v4637_v43 = vpack.c.bf16 %v710_v40, %v707_v39  ;;  %v580_v39 = vld [vmem:[%s8690_s3 + $0x118] sm:$0xff]  ;;  %v631_v40 = vld [vmem:[%s8690_s3 + $0x2b0] sm:$0xff] }
  0xa4   :  { %4610 = vmatpush1.bf16.msra.mxu1 %v4609_v44  ;;  %4708 = vmatprep.subr.bf16.mxu0 %v4707_v46  ;;  %v4639_v44 = vpack.c.bf16 %v717_v42, %v714_v41  ;;  %v716_v46 = vld [vmem:[%s8690_s3 + $0x558] sm:$0xff]  ;;  %v634_v41 = vld [vmem:[%s8690_s3 + $0x2c8] sm:$0xff] }
  0xa5   :  { %4612 = vmatprep.subr.bf16.mxu1 %v4611_v49  ;;  %v4641_v49 = vpack.c.bf16 %v716_v46, %v713_v45  ;;  %v586_v45 = vld [vmem:[%s8690_s3 + $0x148] sm:$0xff]  ;;  %v637_v46 = vld [vmem:[%s8690_s3 + $0x2e0] sm:$0xff] }
  0xa7   :  { %4710 = vmatpush3.bf16.msra.mxu0 %v4709_v56  ;;  %v4645_v56 = vpack.c.bf16 %v722_v52, %v719_v51  ;;  %v1103_v51 = vld [vmem:[%s8691_s4 + $0x88] sm:$0xff]  ;;  %v1086_v52 = vld [vmem:[%s8691_s4] sm:$0xff] }
  0xa8   :  { %4614 = vmatpush1.bf16.msra.mxu1 %v4613_v57  ;;  %4712 = vmatprep.subr.bf16.mxu0 %v4711_v59  ;;  %v4647_v57 = vpack.c.bf16 %v729_v55, %v726_v53  ;;  %v728_v59 = vld [vmem:[%s8690_s3 + $0x5b8] sm:$0xff] }
  0xa9   :  { %4616 = vmatprep.subr.bf16.mxu1 %v4615_v62  ;;  %v4649_v62 = vpack.c.bf16 %v728_v59, %v725_v58  ;;  %v1105_v58 = vld [vmem:[%s8691_s4 + $0x98] sm:$0xff]  ;;  %v4683_v59 = vpack.c.bf16 %v640_v47, %v637_v46  ;;  %v1118_v46 = vld [vmem:[%s8691_s4 + $0x100] sm:$0xff]  ;;  %v1119_v47 = vld [vmem:[%s8691_s4 + $0x108] sm:$0xff] }
  0xab   :  { %4714 = vmatpush3.bf16.msra.mxu0 %v4713_v6  ;;  %v4653_v6 = vpack.c.bf16 %v734_v2, %v731_v1  ;;  %v1106_v1 = vld [vmem:[%s8691_s4 + $0xa0] sm:$0xff]  ;;  %v1107_v2 = vld [vmem:[%s8691_s4 + $0xa8] sm:$0xff] }
  0xac   :  { %4618 = vmatpush1.bf16.msra.mxu1 %v4617_v7  ;;  %4716 = vmatprep.subr.bf16.mxu0 %v4715_v8  ;;  %v4655_v7 = vpack.c.bf16 %v598_v5, %v595_v3  ;;  %v547_v8 = vld [vmem:[%s8690_s3 + $0x10] sm:$0xff] }
  0xad   :  { %4620 = vmatprep.subr.bf16.mxu1 %v4619_v11  ;;  %v604_v11 = vld [vmem:[%s8690_s3 + $0x1d8] sm:$0xff]  ;;  %v4657_v12 = vpack.c.bf16 %v550_v9, %v547_v8  ;;  %v1091_v8 = vld [vmem:[%s8691_s4 + $0x28] sm:$0xff] }
  0xae   :  { %v4659_v14 = vpack.c.bf16 %v604_v11, %v601_v10 }
  0xaf   :  { %4718 = vmatpush3.bf16.msra.mxu0 %v4717_v17  ;;  %v607_v17 = vld [vmem:[%s8690_s3 + $0x1f0] sm:$0xff] }
  0xb0   :  { %4622 = vmatpush1.bf16.msra.mxu1 %v4621_v18  ;;  %v610_v18 = vld [vmem:[%s8690_s3 + $0x208] sm:$0xff] }
  0xb1   :  { %4624 = vmatprep.subr.bf16.mxu1 %v4623_v19  ;;  %v4661_v19 = vpack.c.bf16 %v556_v16, %v553_v15  ;;  %v4663_v20 = vpack.c.bf16 %v610_v18, %v607_v17  ;;  %v1109_v15 = vld [vmem:[%s8691_s4 + $0xb8] sm:$0xff]  ;;  %v1092_v18 = vld [vmem:[%s8691_s4 + $0x30] sm:$0xff] }
  0xb2   :  { %1014 = vmatmul.mubr.f32.vlgmr.msra.gmra.mrb[2].mxu0 %v5800_v54 }
  0xb4   :  { %4626 = vmatpush1.bf16.msra.mxu1 %v4625_v4 }
  0xb5   :  { %4628 = vmatprep.subr.bf16.mxu1 %v4627_v24  ;;  %v565_v24 = vld [vmem:[%s8690_s3 + $0xa0] sm:$0xff] }
  0xb6   :  { %v4669_v29 = vpack.c.bf16 %v568_v25, %v565_v24  ;;  %v1095_v24 = vld [vmem:[%s8691_s4 + $0x48] sm:$0xff]  ;;  %v1112_v25 = vld [vmem:[%s8691_s4 + $0xd0] sm:$0xff] }
  0xb8   :  { %4630 = vmatpush1.bf16.msra.mxu1 %v4629_v30  ;;  %v4671_v30 = vpack.c.bf16 %v622_v28, %v619_v26  ;;  %v1113_v28 = vld [vmem:[%s8691_s4 + $0xd8] sm:$0xff] }
  0xb9   :  { %4632 = vmatprep.subr.bf16.mxu1 %v4631_v32  ;;  %v571_v32 = vld [vmem:[%s8690_s3 + $0xd0] sm:$0xff] }
  0xba   :  { %v4673_v36 = vpack.c.bf16 %v574_v33, %v571_v32  ;;  %v4739_v32 = vpack.c.bf16 %v1113_v28, %v1112_v25  ;;  %v1114_v33 = vld [vmem:[%s8691_s4 + $0xe0] sm:$0xff] }
  0xbc   :  { %4634 = vmatpush1.bf16.msra.mxu1 %v4633_v37  ;;  %v4675_v37 = vpack.c.bf16 %v628_v35, %v625_v34  ;;  %v1115_v34 = vld [vmem:[%s8691_s4 + $0xe8] sm:$0xff] }
  0xbd   :  { %4636 = vmatprep.subr.bf16.mxu1 %v4635_v38  ;;  %v577_v38 = vld [vmem:[%s8690_s3 + $0x100] sm:$0xff] }
  0xbe   :  { %v4677_v42 = vpack.c.bf16 %v580_v39, %v577_v38  ;;  %v1099_v38 = vld [vmem:[%s8691_s4 + $0x68] sm:$0xff]  ;;  %v1116_v39 = vld [vmem:[%s8691_s4 + $0xf0] sm:$0xff] }
  0xc0   :  { %4638 = vmatpush1.bf16.msra.mxu1 %v4637_v43  ;;  %v4679_v43 = vpack.c.bf16 %v634_v41, %v631_v40  ;;  %v1117_v40 = vld [vmem:[%s8691_s4 + $0xf8] sm:$0xff] }
  0xc1   :  { %4640 = vmatprep.subr.bf16.mxu1 %v4639_v44  ;;  %v583_v44 = vld [vmem:[%s8690_s3 + $0x130] sm:$0xff] }
  0xc2   :  { %v4681_v53 = vpack.c.bf16 %v586_v45, %v583_v44  ;;  %v1101_v44 = vld [vmem:[%s8691_s4 + $0x78] sm:$0xff] }
  0xc4   :  { %4642 = vmatpush1.bf16.msra.mxu1 %v4641_v49  ;;  %v592_v49 = vld [vmem:[%s8690_s3 + $0x178] sm:$0xff] }
  0xc5   :  { %4644 = vmatprep.subr.bf16.mxu1 %v4643_v50  ;;  %v1102_v50 = vld [vmem:[%s8691_s4 + $0x80] sm:$0xff]  ;;  %v4685_v5 = vpack.c.bf16 %v592_v49, %v589_v48  ;;  %v1120_v48 = vld [vmem:[%s8691_s4 + $0x110] sm:$0xff]  ;;  %v8701_v49 = vmov 0.0|0.0  }
  0xc6   :  { %v4719_v55 = vpack.c.bf16 %v1103_v51, %v1102_v50  ;;  %v4752_v50 = vpack.c.bf16 %v1119_v47, %v1118_v46  ;;  %v1121_v51 = vld [vmem:[%s8691_s4 + $0x118] sm:$0xff] }
  0xc8   :  { %4646 = vmatpush1.bf16.msra.mxu1 %v4645_v56  ;;  %v1087_v56 = vld [vmem:[%s8691_s4 + $0x8] sm:$0xff]  ;;  %4720 = vmatprep.subr.bf16.mxu0 %v4719_v55 }
  0xc9   :  { %4648 = vmatprep.subr.bf16.mxu1 %v4647_v57  ;;  %v1104_v57 = vld [vmem:[%s8691_s4 + $0x90] sm:$0xff]  ;;  %v4721_v60 = vpack.c.bf16 %v1087_v56, %v1086_v52  ;;  %v8703_v52 = vmov 0.0  }
  0xca   :  { %v4723_v61 = vpack.c.bf16 %v1105_v58, %v1104_v57 }
  0xcb   :  { %4722 = vmatpush3.bf16.msra.mxu0 %v4721_v60 }
  0xcc   :  { %4650 = vmatpush1.bf16.msra.mxu1 %v4649_v62  ;;  %v1088_v62 = vld [vmem:[%s8691_s4 + $0x10] sm:$0xff]  ;;  %4724 = vmatprep.subr.bf16.mxu0 %v4723_v61 }
  0xcd   :  { %4652 = vmatprep.subr.bf16.mxu1 %v4651_v63  ;;  %v1089_v63 = vld [vmem:[%s8691_s4 + $0x18] sm:$0xff] }
  0xce   :  { %v4725_v3 = vpack.c.bf16 %v1089_v63, %v1088_v62 }
  0xd0   :  { %4654 = vmatpush1.bf16.msra.mxu1 %v4653_v6  ;;  %v4727_v6 = vpack.c.bf16 %v1107_v2, %v1106_v1  ;;  %4726 = vmatpush3.bf16.msra.mxu0 %v4725_v3 }
  0xd1   :  { %4656 = vmatprep.subr.bf16.mxu1 %v4655_v7  ;;  %v1090_v7 = vld [vmem:[%s8691_s4 + $0x20] sm:$0xff] }
  0xd2   :  { %v4729_v9 = vpack.c.bf16 %v1091_v8, %v1090_v7  ;;  %4728 = vmatprep.subr.bf16.mxu0 %v4727_v6 }
  0xd3   :  { %873 = vmatmul.mubr.f32.vlgmr.msra.gmra.mrb[4].mxu1 %v5800_v54  ;;  %v616_v54 = vld [vmem:[%s8690_s3 + $0x238] sm:$0xff] }
  0xd4   :  { %4658 = vmatpush3.bf16.msra.mxu1 %v4657_v12  ;;  %943 = vmatprep.mubr.f32.mxu1 %v5753_v31  ;;  %v4665_v31 = vpack.c.bf16 %v562_v22, %v559_v21  ;;  %v4667_v4 = vpack.c.bf16 %v616_v54, %v613_v23  ;;  %v1110_v22 = vld [vmem:[%s8691_s4 + $0xc0] sm:$0xff]  ;;  %v1111_v23 = vld [vmem:[%s8691_s4 + $0xc8] sm:$0xff] }
  0xd5   :  { %4660 = vmatprep.subr.bf16.mxu1 %v4659_v14  ;;  %4730 = vmatpush3.bf16.msra.mxu0 %v4729_v9  ;;  %v1108_v14 = vld [vmem:[%s8691_s4 + $0xb0] sm:$0xff] }
  0xd6   :  { %v4731_v17 = vpack.c.bf16 %v1109_v15, %v1108_v14 }
  0xd8   :  { %4662 = vmatpush3.bf16.msra.mxu1 %v4661_v19  ;;  %4732 = vmatprep.subr.bf16.mxu0 %v4731_v17 }
  0xd9   :  { %4664 = vmatprep.subr.bf16.mxu1 %v4663_v20 }
  0xdc   :  { %4666 = vmatpush3.bf16.msra.mxu1 %v4665_v31  ;;  %v4735_v31 = vpack.c.bf16 %v1111_v23, %v1110_v22 }
  0xdd   :  { %4668 = vmatprep.subr.bf16.mxu1 %v4667_v4  ;;  %v1094_v4 = vld [vmem:[%s8691_s4 + $0x40] sm:$0xff] }
  0xde   :  { %v4737_v26 = vpack.c.bf16 %v1095_v24, %v1094_v4 }
  0xe0   :  { %4670 = vmatpush3.bf16.msra.mxu1 %v4669_v29  ;;  %v1096_v29 = vld [vmem:[%s8691_s4 + $0x50] sm:$0xff] }
  0xe1   :  { %4672 = vmatprep.subr.bf16.mxu1 %v4671_v30  ;;  %v1097_v30 = vld [vmem:[%s8691_s4 + $0x58] sm:$0xff] }
  0xe2   :  { %v4741_v35 = vpack.c.bf16 %v1097_v30, %v1096_v29 }
  0xe4   :  { %4674 = vmatpush3.bf16.msra.mxu1 %v4673_v36  ;;  %v4743_v36 = vpack.c.bf16 %v1115_v34, %v1114_v33  ;;  %v5485_v34 = vmov 1.0  }
  0xe5   :  { %4676 = vmatprep.subr.bf16.mxu1 %v4675_v37  ;;  %v1098_v37 = vld [vmem:[%s8691_s4 + $0x60] sm:$0xff] }
  0xe6   :  { %v4745_v41 = vpack.c.bf16 %v1099_v38, %v1098_v37  ;;  %v6886_v38 = vld [vmem:[%s8692_s5] sm:$0x1] }
  0xe8   :  { %4678 = vmatpush3.bf16.msra.mxu1 %v4677_v42  ;;  %v4747_v42 = vpack.c.bf16 %v1117_v40, %v1116_v39 }
  0xe9   :  { %4680 = vmatprep.subr.bf16.mxu1 %v4679_v43  ;;  %v1100_v43 = vld [vmem:[%s8691_s4 + $0x70] sm:$0xff] }
  0xea   :  { %v4749_v45 = vpack.c.bf16 %v1101_v44, %v1100_v43 }
  0xec   :  { %4682 = vmatpush3.bf16.msra.mxu1 %v4681_v53  ;;  %v4755_v53 = vpack.c.bf16 %v1121_v51, %v1120_v48 }
  0xed   :  { %4684 = vmatprep.subr.bf16.mxu1 %v4683_v59 }
  0xf0   :  { %4686 = vmatpush3.bf16.msra.mxu1 %v4685_v5 }
  0xf1   :  { %4751 = vmatprep.subr.bf16.mxu1 %v8701_v49 }
  0xf3   :  { %944 = vmatmul.mubr.f32.vlgmr.msra.gmra.mrb[6].mxu1 %v5743_v27  ;;  %v1093_v27 = vld [vmem:[%s8691_s4 + $0x38] sm:$0xff] }
  0xf4   :  { %v4733_v20 = vpack.c.bf16 %v1093_v27, %v1092_v18  ;;  %4165 = vmatprep.mubr.msk.f32.mxu1 %vm5483_vm0, %v8703_v52  ;;  %4753 = vmatpush3.bf16.msra.mxu1 %v4752_v50 }
  0xf5   :  { %4754 = vmatprep.subr.bf16.mxu1 %v8701_v49 }
  0xf6   :  { %4734 = vmatpush3.bf16.msra.mxu0 %v4733_v20 }
  0xf7   :  { %4736 = vmatprep.subr.bf16.mxu0 %v4735_v31 }
  0xf8   :  { %4756 = vmatpush3.bf16.msra.mxu1 %v4755_v53  ;;  %v5486_v53 = vmov 0  }
  0xf9   :  { %4168 = vmatprep.subr.mxu1 %v8703_v52  ;;  %5080 = vset.pattern.permute.xlu1 %v5486_v53 }
  0xfa   :  { %4738 = vmatpush3.bf16.msra.mxu0 %v4737_v26  ;;  %5074 = vset.pattern.permute.xlu0 %v5486_v53 }
  0xfb   :  { %4740 = vmatprep.subr.bf16.mxu0 %v4739_v32 }
  0xfe   :  { %4742 = vmatpush3.bf16.msra.mxu0 %v4741_v35 }
  0xff   :  { %4744 = vmatprep.subr.bf16.mxu0 %v4743_v36 }
 0x102   :  { %4746 = vmatpush3.bf16.msra.mxu0 %v4745_v41 }
 0x103   :  { %4748 = vmatprep.subr.bf16.mxu0 %v4747_v42 }
 0x106   :  { %v3859_v10 = vpop.f32.mrb[0].mxu1  ;;  %4750 = vmatpush3.bf16.msra.mxu0 %v4749_v45 }
 0x107   :  { %v3860_v11 = vpop.f32.mrb[1].mxu1 }
 0x108   :  { %v3861_v12 = vadd.f32 %v3860_v11, %v3859_v10 }
 0x126   :  { %v3894_v16 = vpop.f32.mrb[2].mxu1 }
 0x127   :  { %v3895_v19 = vpop.f32.mrb[3].mxu1 }
 0x128   :  { %v3896_v21 = vadd.f32 %v3895_v19, %v3894_v16 }
 0x12a   :  { %v6804_v54 = vadd.f32 %v3896_v21, %v3861_v12 }
 0x12c   :  { %8713 = vst [vmem:[#allocation6_spill] sm:$0xff] %v6804_v54  ;;  %v1058_v20 = vmul.f32 %v6804_v54, %v6804_v54 }
 0x165   :  { %v6865_v55 = vpop.f32.mrb[0].mxu0 }
 0x166   :  { %8714 = vst [vmem:[#allocation7_spill] sm:$0xff] %v6865_v55  ;;  %v402_v56 = vpop.f32.mrb[1].mxu0  ;;  %v1056_v61 = vmul.f32 %v6865_v55, %v6865_v55 }
 0x167   :  { %v1057_v1 = vmul.f32 %v402_v56, %v402_v56 }
 0x185   :  { %v3964_v57 = vpop.f32.mrb[2].mxu0 }
 0x186   :  { %v3965_v58 = vpop.f32.mrb[3].mxu0 }
 0x187   :  { %v3966_v59 = vadd.f32 %v3965_v58, %v3964_v57 }
 0x1a6   :  { %v6867_v60 = vpop.f32.mrb[4].mxu1 }
 0x1a7   :  { %8715 = vst [vmem:[#allocation8_spill] sm:$0xff] %v6867_v60  ;;  %v1059_v62 = vmul.f32 %v6867_v60, %v6867_v60  ;;  %v876_v63 = vpop.f32.mrb[5].mxu1  ;;  %v8717_v60 = vmov 0.0  }
 0x1a8   :  { %v1060_v2 = vmul.f32 %v876_v63, %v876_v63 }
 0x1a9   :  { %v1062_v3 = vadd.f32 %v1059_v62, %v1056_v61  ;;  %v6911_v62 = vld [vmem:[%s8693_s6 + $0x80] sm:$0xff] }
 0x1aa   :  { %v1063_v5 = vadd.f32 %v1060_v2, %v1057_v1  ;;  %v6928_v2 = vld [vmem:[%s8693_s6] sm:$0xff] }
 0x1ab   :  { %5437 = vrsqrt.f32 %v1062_v3  ;;  %vm1067_vm1 = vcmp.eq.f32.partialorder %v1062_v3, inf  ;;  %v1070_v14 = vand.u32 2147483648, %v1062_v3  ;;  %vm1069_vm4 = vcmp.eq.f32.partialorder %v1062_v3, 0.0 }
 0x1ac   :  { %5439 = vrsqrt.f32 %v1063_v5  ;;  %vm1074_vm2 = vcmp.eq.f32.partialorder %v1063_v5, inf  ;;  %v1077_v10 = vand.u32 2147483648, %v1063_v5  ;;  %vm1076_vm3 = vcmp.eq.f32.partialorder %v1063_v5, 0.0 }
 0x1b5   :  { %v5438_v6 = vpop.eup %5437 }
 0x1b6   :  { %v5440_v7 = vpop.eup %5439  ;;  %v1066_v8 = vmul.f32 %v5438_v6, %v1062_v3 }
 0x1b7   :  { %v1073_v9 = vmul.f32 %v5440_v7, %v1063_v5 }
 0x1b8   :  { %v1068_v11 = vsel %vm1067_vm1, %v1062_v3, %v1066_v8  ;;  %v6933_v3 = vld [vmem:[%s8693_s6 + $0x8] sm:$0xff] }
 0x1b9   :  { %v1075_v12 = vsel %vm1074_vm2, %v1063_v5, %v1073_v9  ;;  %v1071_v16 = vsel %vm1069_vm4, %v1070_v14, %v1068_v11  ;;  %v6955_v11 = vld [vmem:[%s8693_s6 + $0x98] sm:$0xff] }
 0x1ba   :  { %v1078_v15 = vsel %vm1076_vm3, %v1077_v10, %v1075_v12  ;;  %v6950_v10 = vld [vmem:[%s8693_s6 + $0x90] sm:$0xff] }
 0x1bb   :  { %1190 = vmatprep.mubr.f32.mxu0 %v1078_v15 }
 0x1bc   :  { %1191 = vmatmul.mubr.f32.vlgmr.msra.gmra.mrb[4].mxu0 %v1071_v16 }
 0x1bd   :  { %2994 = vmatprep.mubr.f32.mxu0 %v876_v63  ;;  %v6916_v63 = vld [vmem:[%s8693_s6 + $0x88] sm:$0xff] }
 0x1c6   :  { %v3929_v17 = vpop.f32.mrb[6].mxu1 }
 0x1c7   :  { %v3930_v18 = vpop.f32.mrb[7].mxu1 }
 0x1c8   :  { %v3931_v27 = vadd.f32 %v3930_v18, %v3929_v17 }
 0x1ca   :  { %v6873_v19 = vadd.f32 %v3966_v59, %v3931_v27  ;;  %v6903_v59 = vsub.s32 0, %v5686_v0 }
 0x1cc   :  { %8716 = vst [vmem:[#allocation9_spill] sm:$0xff] %v6873_v19  ;;  %v1061_v21 = vmul.f32 %v6873_v19, %v6873_v19 }
 0x1ce   :  { %v1064_v22 = vadd.f32 %v1061_v21, %v1058_v20 }
 0x1d0   :  { %5441 = vrsqrt.f32 %v1064_v22  ;;  %vm1081_vm5 = vcmp.eq.f32.partialorder %v1064_v22, inf  ;;  %v1084_v4 = vand.u32 2147483648, %v1064_v22  ;;  %vm1083_vm7 = vcmp.eq.f32.partialorder %v1064_v22, 0.0 }
 0x1da   :  { %v5442_v23 = vpop.eup %5441 }
 0x1db   :  { %v1080_v31 = vmul.f32 %v5442_v23, %v1064_v22  ;;  %v6979_v23 = vld [vmem:[%s8693_s6 + $0x18] sm:$0xff] }
 0x1dd   :  { %v1082_v24 = vsel %vm1081_vm5, %v1064_v22, %v1080_v31  ;;  %v6974_v22 = vld [vmem:[%s8693_s6 + $0x10] sm:$0xff]  ;;  %v6988_v31 = vld [vmem:[%s8693_s6 + $0xa0] sm:$0xff] }
 0x1de   :  { %v1085_v25 = vsel %vm1083_vm7, %v1084_v4, %v1082_v24  ;;  %v6993_v4 = vld [vmem:[%s8693_s6 + $0xa8] sm:$0xff] }
 0x1df   :  { %4166 = vmatmul.mubr.msk.f32.vlgmr.msra.gmra.mrb[8].mxu1 %vm1122_vm6, %v1085_v25 }
 0x1e0   :  { %4170 = vmatprep.mubr.msk.f32.mxu1 %vm5483_vm0, %v8703_v52 }
 0x28f   :  { %v3999_v26 = vpop.f32.mrb[4].mxu0 }
 0x290   :  { %v4000_v28 = vpop.f32.mrb[5].mxu0 }
 0x291   :  { %v4001_v29 = vadd.f32 %v4000_v28, %v3999_v26 }
 0x2b2   :  { %v1262_v30 = vpop.f32.mrb[8].mxu1 }
 0x2b3   :  { %v1263_v32 = vadd.f32 %v4001_v29, %v1262_v30  ;;  %v4167_v33 = vpop.f32.mrb[9].mxu1 }
 0x2b4   :  { %v7011_v33 = vld [vmem:[%s8693_s6 + $0x28] sm:$0xff] }
 0x2b5   :  { %4169 = vmatpush3.msk.msra.mxu1 %vm1270_vm8, %v1263_v32  ;;  %v7006_v32 = vld [vmem:[%s8693_s6 + $0x20] sm:$0xff] }
 0x2b6   :  { %4171 = vmatmul.mubr.msk.f32.vlgmr.msra.gmra.mrb[10].mxu1 %vm1266_vm9, %v5485_v34  ;;  %v7020_v34 = vld [vmem:[%s8693_s6 + $0xb0] sm:$0xff] }
 0x2b7   :  { %2851 = vmatprep.mubr.f32.mxu1 %v402_v56 }
 0x389   :  { %v1340_v35 = vpop.f32.mrb[10].mxu1 }
 0x38a   :  { %v1346_v36 = vsel %vm1345_vm10, %v1340_v35, -inf  ;;  %v4172_v37 = vpop.f32.mrb[11].mxu1 }
 0x38b   :  { %1347 = vmax.xlane.f32.xlu0 %v1346_v36 }
 0x418   :  { %v1348_v39 = vpop.xlane.xlu0 %1347 }
 0x419   :  { %vm1349_vm11 = vcmp.ge.f32.partialorder %v1340_v35, %v1348_v39 }
 0x41a   :  { %v1350_v40 = vsel %vm1349_vm11, %v6886_v38, 9.0 }
 0x41b   :  { %v1351_v41 = vsel %vm1345_vm10, %v1350_v40, inf }
 0x41c   :  { %1352 = vmin.xlane.f32.xlu0 %v1351_v41 }
 0x4a9   :  { %v1353_v42 = vpop.xlane.xlu0 %1352 }
 0x4aa   :  { %vm1686_vm12 = vcmp.eq.f32.partialorder %v6886_v38, %v1353_v42  ;;  %v6919_v1 = vrot.slane %v1353_v42, %v6903_v59 }
 0x4ab   :  { %v1687_v43 = vsel %vm1686_vm12, -inf, %v1340_v35  ;;  %v7025_v35 = vld [vmem:[%s8693_s6 + $0xb8] sm:$0xff] }
 0x4ac   :  { %v1688_v44 = vsel %vm1345_vm10, %v1687_v43, -inf  ;;  %vm1358_vm3 = vcmp.eq.f32.partialorder %v6928_v2, %v6919_v1  ;;  %vm1359_vm4 = vcmp.eq.f32.partialorder %v6933_v3, %v6919_v1  ;;  %vm1376_vm8 = vcmp.eq.f32.partialorder %v6950_v10, %v6919_v1 }
 0x4ad   :  { %1689 = vmax.xlane.f32.xlu1 %v1688_v44  ;;  %v1394_v8 = vsel %vm1358_vm3, 1.0, %v8703_v52  ;;  %v1395_v9 = vsel %vm1359_vm4, 1.0, %v8703_v52  ;;  %vm1377_vm9 = vcmp.eq.f32.partialorder %v6955_v11, %v6919_v1  ;;  %v1412_v17 = vsel %vm1376_vm8, 1.0, %v8703_v52  ;;  %v7043_v44 = vld [vmem:[%s8693_s6 + $0x38] sm:$0xff] }
 0x4ae   :  { %v5086_v12 = vpack.i.bf16 %v1395_v9, %v1394_v8  ;;  %v1413_v18 = vsel %vm1377_vm9, 1.0, %v8703_v52  ;;  %vm1380_vm4 = vcmp.eq.f32.partialorder %v7020_v34, %v6919_v1 }
 0x4af   :  { %v5096_v27 = vpack.i.bf16 %v1413_v18, %v1412_v17  ;;  %v1416_v41 = vsel %vm1380_vm4, 1.0, %v8703_v52  ;;  %v1954_v18 = vsub.s32 1, %v5686_v0 }
 0x53a   :  { %v1690_v45 = vpop.xlane.xlu1 %1689 }
 0x53b   :  { %vm1691_vm13 = vcmp.ge.f32.partialorder %v1687_v43, %v1690_v45  ;;  %v7052_v45 = vld [vmem:[%s8693_s6 + $0xc0] sm:$0xff] }
 0x53c   :  { %v1692_v46 = vsel %vm1691_vm13, %v6886_v38, 9.0  ;;  %vm1382_vm9 = vcmp.eq.f32.partialorder %v7052_v45, %v6919_v1 }
 0x53d   :  { %v1693_v47 = vsel %vm1345_vm10, %v1692_v46, inf  ;;  %v7057_v46 = vld [vmem:[%s8693_s6 + $0xc8] sm:$0xff] }
 0x53e   :  { %1694 = vmin.xlane.f32.xlu1 %v1693_v47 }
 0x5cb   :  { %v1695_v48 = vpop.xlane.xlu1 %1694 }
 0x5cc   :  { %vm2028_vm14 = vcmp.eq.f32.partialorder %v6886_v38, %v1695_v48  ;;  %v6906_v61 = vrot.slane %v1695_v48, %v6903_v59 }
 0x5cd   :  { %v6895_v50 = vsel %vm2028_vm14, -inf, %v1687_v43  ;;  %v7038_v43 = vld [vmem:[%s8693_s6 + $0x30] sm:$0xff] }
 0x5ce   :  { %v2030_v51 = vsel %vm1345_vm10, %v6895_v50, -inf  ;;  %vm1716_vm1 = vcmp.eq.f32.partialorder %v6911_v62, %v6906_v61  ;;  %vm1717_vm2 = vcmp.eq.f32.partialorder %v6916_v63, %v6906_v61  ;;  %vm1700_vm5 = vcmp.eq.f32.partialorder %v6928_v2, %v6906_v61 }
 0x5cf   :  { %2031 = vmax.xlane.f32.xlu0 %v2030_v51  ;;  %v1752_v5 = vsel %vm1716_vm1, 1.0, %v8703_v52  ;;  %v1753_v6 = vsel %vm1717_vm2, 1.0, %v8703_v52  ;;  %vm1701_vm7 = vcmp.eq.f32.partialorder %v6933_v3, %v6906_v61  ;;  %v1736_v14 = vsel %vm1700_vm5, 1.0, %v8703_v52 }
 0x5d0   :  { %v5081_v7 = vpack.i.bf16 %v1753_v6, %v1752_v5  ;;  %v1737_v15 = vsel %vm1701_vm7, 1.0, %v8703_v52  ;;  %vm1718_vm11 = vcmp.eq.f32.partialorder %v6950_v10, %v6906_v61  ;;  %vm1719_vm12 = vcmp.eq.f32.partialorder %v6955_v11, %v6906_v61  ;;  %v7075_v5 = vld [vmem:[%s8693_s6 + $0x48] sm:$0xff]  ;;  %v7084_v6 = vld [vmem:[%s8693_s6 + $0xd0] sm:$0xff] }
 0x5d1   :  { %v5091_v16 = vpack.i.bf16 %v1737_v15, %v1736_v14  ;;  %v1754_v20 = vsel %vm1718_vm11, 1.0, %v8703_v52  ;;  %v1755_v21 = vsel %vm1719_vm12, 1.0, %v8703_v52  ;;  %vm1702_vm13 = vcmp.eq.f32.partialorder %v6974_v22, %v6906_v61 }
 0x5d2   :  { %vm1703_vm14 = vcmp.eq.f32.partialorder %v6979_v23, %v6906_v61  ;;  %v5101_v24 = vpack.i.bf16 %v1755_v21, %v1754_v20  ;;  %v1738_v25 = vsel %vm1702_vm13, 1.0, %v8703_v52  ;;  %vm1379_vm1 = vcmp.eq.f32.partialorder %v6993_v4, %v6919_v1 }
 0x5d3   :  { %v1739_v26 = vsel %vm1703_vm14, 1.0, %v8703_v52  ;;  %v1415_v30 = vsel %vm1379_vm1, 1.0, %v8703_v52  ;;  %vm1704_vm2 = vcmp.eq.f32.partialorder %v7006_v32, %v6906_v61  ;;  %vm1705_vm3 = vcmp.eq.f32.partialorder %v7011_v33, %v6906_v61 }
 0x5d4   :  { %v5111_v28 = vpack.i.bf16 %v1739_v26, %v1738_v25  ;;  %v1740_v37 = vsel %vm1704_vm2, 1.0, %v8703_v52  ;;  %v1741_v39 = vsel %vm1705_vm3, 1.0, %v8703_v52  ;;  %vm1381_vm5 = vcmp.eq.f32.partialorder %v7025_v35, %v6919_v1 }
 0x5d5   :  { %v5131_v40 = vpack.i.bf16 %v1741_v39, %v1740_v37  ;;  %v1417_v42 = vsel %vm1381_vm5, 1.0, %v8703_v52  ;;  %vm1706_vm7 = vcmp.eq.f32.partialorder %v7038_v43, %v6906_v61  ;;  %vm1707_vm8 = vcmp.eq.f32.partialorder %v7043_v44, %v6906_v61 }
 0x5d6   :  { %v5136_v47 = vpack.i.bf16 %v1417_v42, %v1416_v41  ;;  %v1742_v48 = vsel %vm1706_vm7, 1.0, %v8703_v52  ;;  %v1743_v51 = vsel %vm1707_vm8, 1.0, %v8703_v52  ;;  %vm1383_vm11 = vcmp.eq.f32.partialorder %v7057_v46, %v6919_v1 }
 0x5d7   :  { %v5151_v53 = vpack.i.bf16 %v1743_v51, %v1742_v48  ;;  %vm1709_vm13 = vcmp.eq.f32.partialorder %v7075_v5, %v6906_v61  ;;  %vm1384_vm14 = vcmp.eq.f32.partialorder %v7084_v6, %v6919_v1 }
 0x5d8   :  { %v1420_v15 = vsel %vm1384_vm14, 1.0, %v8703_v52  ;;  %vm1374_vm14 = vcmp.eq.f32.partialorder %v6911_v62, %v6919_v1 }
 0x65c   :  { %v2032_v56 = vpop.xlane.xlu0 %2031 }
 0x65d   :  { %vm2033_vm15 = vcmp.ge.f32.partialorder %v6895_v50, %v2032_v56  ;;  %v1418_v56 = vsel %vm1382_vm9, 1.0, %v8703_v52 }
 0x65e   :  { %v2034_v57 = vsel %vm2033_vm15, %v6886_v38, 9.0  ;;  %vm1378_vm15 = vcmp.eq.f32.partialorder %v6988_v31, %v6919_v1 }
 0x65f   :  { %v2035_v58 = vsel %vm1345_vm10, %v2034_v57, inf  ;;  %v1414_v29 = vsel %vm1378_vm15, 1.0, %v8703_v52  ;;  %v1419_v57 = vsel %vm1383_vm11, 1.0, %v8703_v52 }
 0x660   :  { %2036 = vmin.xlane.f32.xlu1 %v2035_v58  ;;  %v5116_v36 = vpack.i.bf16 %v1415_v30, %v1414_v29  ;;  %v7070_v58 = vld [vmem:[%s8693_s6 + $0x40] sm:$0xff]  ;;  %v5156_v8 = vpack.i.bf16 %v1419_v57, %v1418_v56 }
 0x661   :  { %vm1708_vm12 = vcmp.eq.f32.partialorder %v7070_v58, %v6906_v61 }
 0x662   :  { %v1744_v9 = vsel %vm1708_vm12, 1.0, %v8703_v52 }
 0x671   :  { %5082 = vperm.xlu1 %5080, %v5081_v7   ;;  %v7089_v7 = vld [vmem:[%s8693_s6 + $0xd8] sm:$0xff] }
 0x672   :  { %vm1385_vm15 = vcmp.eq.f32.partialorder %v7089_v7, %v6919_v1 }
 0x675   :  { %5087 = vperm.xlu1 %5080, %v5086_v12   ;;  %v1745_v12 = vsel %vm1709_vm13, 1.0, %v8703_v52 }
 0x676   :  { %v5171_v14 = vpack.i.bf16 %v1745_v12, %v1744_v9 }
 0x679   :  { %5092 = vperm.xlu1 %5080, %v5091_v16   ;;  %v1421_v16 = vsel %vm1385_vm15, 1.0, %v8703_v52  ;;  %vm1375_vm15 = vcmp.eq.f32.partialorder %v6916_v63, %v6919_v1 }
 0x67a   :  { %v5176_v17 = vpack.i.bf16 %v1421_v16, %v1420_v15 }
 0x67d   :  { %5097 = vperm.xlu1 %5080, %v5096_v27   ;;  %v7103_v27 = vld [vmem:[%s8695_s8] sm:$0xf] }
 0x681   :  { %5102 = vperm.xlu1 %5080, %v5101_v24   ;;  %v7110_v24 = vrot.slane %v7103_v27, %v1954_v18 }
 0x685   :  { %5112 = vperm.xlu1 %5080, %v5111_v28  }
 0x689   :  { %5117 = vperm.xlu1 %5080, %v5116_v36  }
 0x68d   :  { %5132 = vperm.xlu1 %5080, %v5131_v40  }
 0x691   :  { %5137 = vperm.xlu1 %5080, %v5136_v47  }
 0x695   :  { %5152 = vperm.xlu1 %5080, %v5151_v53  }
 0x699   :  { %5157 = vperm.xlu1 %5080, %v5156_v8  }
 0x69d   :  { %5172 = vperm.xlu1 %5080, %v5171_v14  }
 0x6a1   :  { %5177 = vperm.xlu1 %5080, %v5176_v17  }
 0x6ed   :  { %v2037_v20 = vpop.xlane.xlu1 %2036 }
 0x6ee   :  { %v7106_v21 = vrot.slane %v2037_v20, %v6903_v59  ;;  %vm2370_vm1 = vcmp.eq.f32.partialorder %v6886_v38, %v2037_v20 }
 0x6ef   :  { %v7113_v25 = vsel %vm2370_vm1, -inf, %v6895_v50 }
 0x6f0   :  { %v2372_v26 = vsel %vm1345_vm10, %v7113_v25, -inf  ;;  %vm2058_vm2 = vcmp.eq.f32.partialorder %v6911_v62, %v7106_v21  ;;  %vm2059_vm3 = vcmp.eq.f32.partialorder %v6916_v63, %v7106_v21  ;;  %vm2042_vm4 = vcmp.eq.f32.partialorder %v6928_v2, %v7106_v21 }
 0x6f1   :  { %2373 = vmax.xlane.f32.xlu0 %v2372_v26  ;;  %v5083_v28 = vpop.permute.xlu1 %5082  ;;  %v2094_v29 = vsel %vm2058_vm2, 1.0, %v8703_v52  ;;  %v2095_v30 = vsel %vm2059_vm3, 1.0, %v8703_v52  ;;  %vm2043_vm5 = vcmp.eq.f32.partialorder %v6933_v3, %v7106_v21  ;;  %v2078_v39 = vsel %vm2042_vm4, 1.0, %v8703_v52 }
 0x6f2   :  { %v5085_v50 = vunpack.i.h.bf16 %v5083_v28  ;;  %v5084_v36 = vunpack.i.l.bf16 %v5083_v28  ;;  %v5191_v37 = vpack.i.bf16 %v2095_v30, %v2094_v29  ;;  %v2079_v40 = vsel %vm2043_vm5, 1.0, %v8703_v52 }
 0x6f3   :  { %vm2060_vm7 = vcmp.eq.f32.partialorder %v6950_v10, %v7106_v21  ;;  %vm2061_vm8 = vcmp.eq.f32.partialorder %v6955_v11, %v7106_v21  ;;  %v5196_v42 = vpack.i.bf16 %v2079_v40, %v2078_v39  ;;  %vm2062_vm9 = vcmp.eq.f32.partialorder %v6988_v31, %v7106_v21 }
 0x6f4   :  { %v7134_v2 = vmul.f32 %v5085_v50, %v7110_v24  ;;  %v7137_v41 = vmul.f32 %v5084_v36, %v7110_v24  ;;  %5192 = vperm.xlu1 %5080, %v5191_v37   ;;  %v2096_v47 = vsel %vm2060_vm7, 1.0, %v8703_v52  ;;  %v2097_v48 = vsel %vm2061_vm8, 1.0, %v8703_v52 }
 0x6f5   :  { %v5088_v3 = vpop.permute.xlu1 %5087  ;;  %vm2063_vm11 = vcmp.eq.f32.partialorder %v6993_v4, %v7106_v21  ;;  %v7147_v10 = vrot.slane %v7103_v27, %v6903_v59  ;;  %v5201_v56 = vpack.i.bf16 %v2097_v48, %v2096_v47  ;;  %v2098_v9 = vsel %vm2062_vm9, 1.0, %v8703_v52 }
 0x6f6   :  { %v5090_v11 = vunpack.i.h.bf16 %v5088_v3  ;;  %v5089_v51 = vunpack.i.l.bf16 %v5088_v3  ;;  %v2099_v12 = vsel %vm2063_vm11, 1.0, %v8703_v52  ;;  %vm2064_vm12 = vcmp.eq.f32.partialorder %v7020_v34, %v7106_v21 }
 0x6f7   :  { %vm2065_vm13 = vcmp.eq.f32.partialorder %v7025_v35, %v7106_v21  ;;  %v5211_v20 = vpack.i.bf16 %v2099_v12, %v2098_v9  ;;  %v2100_v29 = vsel %vm2064_vm12, 1.0, %v8703_v52  ;;  %vm2066_vm1 = vcmp.eq.f32.partialorder %v7052_v45, %v7106_v21 }
 0x6f8   :  { %5197 = vperm.xlu1 %5080, %v5196_v42   ;;  %v1615_v14 = vmul.f32 %v5090_v11, %v7147_v10  ;;  %v1614_v15 = vmul.f32 %v5089_v51, %v7147_v10  ;;  %v2101_v30 = vsel %vm2065_vm13, 1.0, %v8703_v52  ;;  %vm2067_vm2 = vcmp.eq.f32.partialorder %v7057_v46, %v7106_v21 }
 0x6f9   :  { %v5093_v53 = vpop.permute.xlu1 %5092  ;;  %v1410_v62 = vsel %vm1374_vm14, 1.0, %v8703_v52  ;;  %v5221_v37 = vpack.i.bf16 %v2101_v30, %v2100_v29  ;;  %v1411_v39 = vsel %vm1375_vm15, 1.0, %v8703_v52  ;;  %vm1360_vm3 = vcmp.eq.f32.partialorder %v6974_v22, %v6919_v1 }
 0x6fa   :  { %v5095_v57 = vunpack.i.h.bf16 %v5093_v53  ;;  %v5094_v8 = vunpack.i.l.bf16 %v5093_v53  ;;  %vm1361_vm4 = vcmp.eq.f32.partialorder %v6979_v23, %v6919_v1  ;;  %v2102_v42 = vsel %vm2066_vm1, 1.0, %v8703_v52 }
 0x6fb   :  { %v2103_v47 = vsel %vm2067_vm2, 1.0, %v8703_v52  ;;  %v1396_v9 = vsel %vm1360_vm3, 1.0, %v8703_v52  ;;  %v1397_v12 = vsel %vm1361_vm4, 1.0, %v8703_v52  ;;  %vm1720_vm5 = vcmp.eq.f32.partialorder %v6988_v31, %v6906_v61 }
 0x6fc   :  { %v1957_v16 = vmul.f32 %v5095_v57, %v7110_v24  ;;  %v1956_v17 = vmul.f32 %v5094_v8, %v7110_v24  ;;  %5202 = vperm.xlu1 %5080, %v5201_v56   ;;  %v5075_v57 = vpack.i.bf16 %v1411_v39, %v1410_v62  ;;  %v5231_v8 = vpack.i.bf16 %v2103_v47, %v2102_v42 }
 0x6fd   :  { %v5098_v18 = vpop.permute.xlu1 %5097  ;;  %vm1721_vm7 = vcmp.eq.f32.partialorder %v6993_v4, %v6906_v61  ;;  %v5106_v30 = vpack.i.bf16 %v1397_v12, %v1396_v9  ;;  %vm1362_vm8 = vcmp.eq.f32.partialorder %v7006_v32, %v6919_v1  ;;  %vm1363_vm9 = vcmp.eq.f32.partialorder %v7011_v33, %v6919_v1 }
 0x6fe   :  { %v7163_v26 = vadd.f32 %v1956_v17, %v1614_v15  ;;  %v7165_v28 = vadd.f32 %v1957_v16, %v1615_v14  ;;  %v5100_v50 = vunpack.i.h.bf16 %v5098_v18  ;;  %v5099_v36 = vunpack.i.l.bf16 %v5098_v18 }
 0x6ff   :  { %v1399_v39 = vsel %vm1363_vm9, 1.0, %v8703_v52  ;;  %vm1722_vm11 = vcmp.eq.f32.partialorder %v7020_v34, %v6906_v61  ;;  %vm1723_vm12 = vcmp.eq.f32.partialorder %v7025_v35, %v6906_v61  ;;  %vm1364_vm13 = vcmp.eq.f32.partialorder %v7038_v43, %v6919_v1 }
 0x700   :  { %5212 = vperm.xlu1 %5080, %v5211_v20   ;;  %v1633_v48 = vmul.f32 %v5100_v50, %v7147_v10  ;;  %v1632_v11 = vmul.f32 %v5099_v36, %v7147_v10  ;;  %v1756_v50 = vsel %vm1720_vm5, 1.0, %v8703_v52  ;;  %v1757_v36 = vsel %vm1721_vm7, 1.0, %v8703_v52 }
 0x701   :  { %v5103_v63 = vpop.permute.xlu1 %5102  ;;  %v5121_v4 = vpack.i.bf16 %v1757_v36, %v1756_v50  ;;  %vm1365_vm14 = vcmp.eq.f32.partialorder %v7043_v44, %v6919_v1  ;;  %vm1724_vm15 = vcmp.eq.f32.partialorder %v7052_v45, %v6906_v61  ;;  %vm1725_vm1 = vcmp.eq.f32.partialorder %v7057_v46, %v6906_v61 }
 0x702   :  { %v5105_v40 = vunpack.i.h.bf16 %v5103_v63  ;;  %v5104_v3 = vunpack.i.l.bf16 %v5103_v63  ;;  %vm1366_vm2 = vcmp.eq.f32.partialorder %v7070_v58, %v6919_v1  ;;  %vm1367_vm3 = vcmp.eq.f32.partialorder %v7075_v5, %v6919_v1 }
 0x703   :  { %vm1726_vm4 = vcmp.eq.f32.partialorder %v7084_v6, %v6906_v61  ;;  %vm1727_vm5 = vcmp.eq.f32.partialorder %v7089_v7, %v6906_v61  ;;  %vm2044_vm9 = vcmp.eq.f32.partialorder %v6974_v22, %v7106_v21 }
 0x704   :  { %v1975_v51 = vmul.f32 %v5105_v40, %v7110_v24  ;;  %v1974_v53 = vmul.f32 %v5104_v3, %v7110_v24  ;;  %5222 = vperm.xlu1 %5080, %v5221_v37   ;;  %v1398_v37 = vsel %vm1362_vm8, 1.0, %v8703_v52 }
 0x705   :  { %v5113_v56 = vpop.permute.xlu1 %5112  ;;  %v5126_v47 = vpack.i.bf16 %v1399_v39, %v1398_v37  ;;  %v7264_v37 = vld [vmem:[%s8693_s6 + $0x50] sm:$0xff]  ;;  %v7269_v39 = vld [vmem:[%s8693_s6 + $0x58] sm:$0xff] }
 0x706   :  { %v7187_v14 = vadd.f32 %v1974_v53, %v1632_v11  ;;  %v7189_v15 = vadd.f32 %v1975_v51, %v1633_v48  ;;  %v5115_v16 = vunpack.i.h.bf16 %v5113_v56  ;;  %v5114_v17 = vunpack.i.l.bf16 %v5113_v56 }
 0x707   :  { %5076 = vperm.xlu0 %5074, %v5075_v57   ;;  %v1758_v48 = vsel %vm1722_vm11, 1.0, %v8703_v52  ;;  %v1759_v11 = vsel %vm1723_vm12, 1.0, %v8703_v52  ;;  %v1400_v56 = vsel %vm1364_vm13, 1.0, %v8703_v52  ;;  %v1401_v57 = vsel %vm1365_vm14, 1.0, %v8703_v52 }
 0x708   :  { %v7196_v18 = vmul.f32 %v5115_v16, %v7110_v24  ;;  %v7199_v20 = vmul.f32 %v5114_v17, %v7110_v24  ;;  %5232 = vperm.xlu1 %5080, %v5231_v8   ;;  %v5141_v35 = vpack.i.bf16 %v1759_v11, %v1758_v48  ;;  %v5146_v16 = vpack.i.bf16 %v1401_v57, %v1400_v56 }
 0x709   :  { %v7201_v29 = vpop.permute.xlu1 %5117  ;;  %v1760_v17 = vsel %vm1724_vm15, 1.0, %v8703_v52  ;;  %v1762_v48 = vsel %vm1726_vm4, 1.0, %v8703_v52  ;;  %v1763_v11 = vsel %vm1727_vm5, 1.0, %v8703_v52  ;;  %vm1368_vm7 = vcmp.eq.f32.partialorder %v7264_v37, %v6919_v1 }
 0x70a   :  { %vm1369_vm8 = vcmp.eq.f32.partialorder %v7269_v39, %v6919_v1  ;;  %vm2045_vm11 = vcmp.eq.f32.partialorder %v6979_v23, %v7106_v21  ;;  %v2080_v56 = vsel %vm2044_vm9, 1.0, %v8703_v52  ;;  %vm2046_vm12 = vcmp.eq.f32.partialorder %v7006_v32, %v7106_v21 }
 0x70b   :  { %5107 = vperm.xlu0 %5074, %v5106_v30   ;;  %v1761_v30 = vsel %vm1725_vm1, 1.0, %v8703_v52  ;;  %v2081_v57 = vsel %vm2045_vm11, 1.0, %v8703_v52  ;;  %vm2047_vm13 = vcmp.eq.f32.partialorder %v7011_v33, %v7106_v21  ;;  %vm2048_vm14 = vcmp.eq.f32.partialorder %v7038_v43, %v7106_v21 }
 0x70c   :  { %v5161_v46 = vpack.i.bf16 %v1761_v30, %v1760_v17  ;;  %v2082_v17 = vsel %vm2046_vm12, 1.0, %v8703_v52  ;;  %v2083_v22 = vsel %vm2047_vm13, 1.0, %v8703_v52  ;;  %vm2049_vm15 = vcmp.eq.f32.partialorder %v7043_v44, %v7106_v21 }
 0x70d   :  { %v5133_v31 = vpop.permute.xlu1 %5132  ;;  %v5216_v23 = vpack.i.bf16 %v2083_v22, %v2082_v17  ;;  %v2084_v30 = vsel %vm2048_vm14, 1.0, %v8703_v52  ;;  %v2085_v32 = vsel %vm2049_vm15, 1.0, %v8703_v52  ;;  %vm2050_vm1 = vcmp.eq.f32.partialorder %v7070_v58, %v7106_v21  ;;  %v7364_v17 = vld [vmem:[%s8693_s6 + $0x70] sm:$0xff]  ;;  %v7369_v22 = vld [vmem:[%s8693_s6 + $0x78] sm:$0xff] }
 0x70e   :  { %v5135_v62 = vunpack.i.h.bf16 %v5133_v31  ;;  %v5134_v63 = vunpack.i.l.bf16 %v5133_v31  ;;  %v1402_v31 = vsel %vm1366_vm2, 1.0, %v8703_v52  ;;  %vm2051_vm2 = vcmp.eq.f32.partialorder %v7075_v5, %v7106_v21  ;;  %v7312_v5 = vld [vmem:[%s8693_s6 + $0xe0] sm:$0xff] }
 0x70f   :  { %5122 = vperm.xlu0 %5074, %v5121_v4   ;;  %v1403_v4 = vsel %vm1367_vm3, 1.0, %v8703_v52  ;;  %v5226_v33 = vpack.i.bf16 %v2085_v32, %v2084_v30  ;;  %v2087_v43 = vsel %vm2051_vm2, 1.0, %v8703_v52  ;;  %vm2052_vm3 = vcmp.eq.f32.partialorder %v7264_v37, %v7106_v21 }
 0x710   :  { %v7216_v40 = vmul.f32 %v5135_v62, %v7110_v24  ;;  %v7219_v3 = vmul.f32 %v5134_v63, %v7110_v24  ;;  %vm2053_vm4 = vcmp.eq.f32.partialorder %v7269_v39, %v7106_v21  ;;  %vm1728_vm5 = vcmp.eq.f32.partialorder %v7312_v5, %v6906_v61 }
 0x711   :  { %v7221_v42 = vpop.permute.xlu1 %5137  ;;  %v2089_v58 = vsel %vm2053_vm4, 1.0, %v8703_v52  ;;  %vm1372_vm15 = vcmp.eq.f32.partialorder %v7364_v17, %v6919_v1  ;;  %vm2056_vm2 = vcmp.eq.f32.partialorder %v7364_v17, %v7106_v21 }
 0x713   :  { %5127 = vperm.xlu0 %5074, %v5126_v47   ;;  %v5166_v47 = vpack.i.bf16 %v1403_v4, %v1402_v31  ;;  %v7331_v31 = vld [vmem:[%s8693_s6 + $0x68] sm:$0xff] }
 0x714   :  { %vm1371_vm9 = vcmp.eq.f32.partialorder %v7331_v31, %v6919_v1  ;;  %vm2055_vm12 = vcmp.eq.f32.partialorder %v7331_v31, %v7106_v21 }
 0x715   :  { %v5153_v34 = vpop.permute.xlu1 %5152 }
 0x716   :  { %v5155_v51 = vunpack.i.h.bf16 %v5153_v34  ;;  %v5154_v53 = vunpack.i.l.bf16 %v5153_v34  ;;  %v5181_v34 = vpack.i.bf16 %v1763_v11, %v1762_v48 }
 0x717   :  { %5142 = vperm.xlu0 %5074, %v5141_v35   ;;  %v1404_v35 = vsel %vm1368_vm7, 1.0, %v8703_v52 }
 0x718   :  { %v7236_v8 = vmul.f32 %v5155_v51, %v7110_v24  ;;  %v7239_v9 = vmul.f32 %v5154_v53, %v7110_v24  ;;  %v1405_v51 = vsel %vm1369_vm8, 1.0, %v8703_v52 }
 0x719   :  { %v7241_v12 = vpop.permute.xlu1 %5157  ;;  %v5186_v53 = vpack.i.bf16 %v1405_v51, %v1404_v35  ;;  %v1407_v35 = vsel %vm1371_vm9, 1.0, %v8703_v52 }
 0x71b   :  { %5147 = vperm.xlu0 %5074, %v5146_v16   ;;  %v5206_v16 = vpack.i.bf16 %v2081_v57, %v2080_v56  ;;  %v2091_v56 = vsel %vm2055_vm12, 1.0, %v8703_v52  ;;  %v7350_v57 = vld [vmem:[%s8693_s6 + $0xf0] sm:$0xff]  ;;  %vm2068_vm12 = vcmp.eq.f32.partialorder %v7084_v6, %v7106_v21 }
 0x71c   :  { %vm1730_vm13 = vcmp.eq.f32.partialorder %v7350_v57, %v6906_v61 }
 0x71d   :  { %v5173_v45 = vpop.permute.xlu1 %5172  ;;  %v1766_v30 = vsel %vm1730_vm13, 1.0, %v8703_v52  ;;  %vm2069_vm13 = vcmp.eq.f32.partialorder %v7089_v7, %v7106_v21 }
 0x71e   :  { %v5175_v50 = vunpack.i.h.bf16 %v5173_v45  ;;  %v5174_v36 = vunpack.i.l.bf16 %v5173_v45  ;;  %v2086_v45 = vsel %vm2050_vm1, 1.0, %v8703_v52  ;;  %vm1373_vm1 = vcmp.eq.f32.partialorder %v7369_v22, %v6919_v1 }
 0x71f   :  { %5162 = vperm.xlu0 %5074, %v5161_v46   ;;  %v5236_v44 = vpack.i.bf16 %v2087_v43, %v2086_v45  ;;  %v2088_v46 = vsel %vm2052_vm3, 1.0, %v8703_v52  ;;  %v1408_v45 = vsel %vm1372_vm15, 1.0, %v8703_v52  ;;  %v1409_v43 = vsel %vm1373_vm1, 1.0, %v8703_v52 }
 0x720   :  { %v7256_v62 = vmul.f32 %v5175_v50, %v7110_v24  ;;  %v7259_v63 = vmul.f32 %v5174_v36, %v7110_v24  ;;  %v7317_v50 = vld [vmem:[%s8693_s6 + $0xe8] sm:$0xff]  ;;  %v7326_v36 = vld [vmem:[%s8693_s6 + $0x60] sm:$0xff]  ;;  %v5251_v4 = vpack.i.bf16 %v2089_v58, %v2088_v46  ;;  %vm2057_vm3 = vcmp.eq.f32.partialorder %v7369_v22, %v7106_v21 }
 0x721   :  { %vm1729_vm7 = vcmp.eq.f32.partialorder %v7317_v50, %v6906_v61  ;;  %vm1370_vm8 = vcmp.eq.f32.partialorder %v7326_v36, %v6919_v1  ;;  %vm2054_vm11 = vcmp.eq.f32.partialorder %v7326_v36, %v7106_v21  ;;  %v7391_v46 = vld [vmem:[%s8693_s6 + $0x108] sm:$0xff]  ;;  %v5296_v58 = vpack.i.bf16 %v1409_v43, %v1408_v45 }
 0x722   :  { %v1765_v48 = vsel %vm1729_vm7, 1.0, %v8703_v52  ;;  %vm1387_vm15 = vcmp.eq.f32.partialorder %v7317_v50, %v6919_v1  ;;  %vm1712_vm1 = vcmp.eq.f32.partialorder %v7326_v36, %v6906_v61 }
 0x723   :  { %5167 = vperm.xlu0 %5074, %v5166_v47   ;;  %v1764_v47 = vsel %vm1728_vm5, 1.0, %v8703_v52  ;;  %vm1391_vm5 = vcmp.eq.f32.partialorder %v7391_v46, %v6919_v1 }
 0x724   :  { %v5261_v11 = vpack.i.bf16 %v1765_v48, %v1764_v47  ;;  %v2093_v47 = vsel %vm2057_vm3, 1.0, %v8703_v52  ;;  %v7402_v48 = vld [vmem:[%s8693_s6 + $0x110] sm:$0xff]  ;;  %vm2070_vm3 = vcmp.eq.f32.partialorder %v7312_v5, %v7106_v21 }
 0x725   :  { %vm1392_vm7 = vcmp.eq.f32.partialorder %v7402_v48, %v6919_v1 }
 0x727   :  { %5182 = vperm.xlu0 %5074, %v5181_v34   ;;  %v1406_v34 = vsel %vm1370_vm8, 1.0, %v8703_v52 }
 0x728   :  { %v5266_v51 = vpack.i.bf16 %v1407_v35, %v1406_v34 }
 0x72b   :  { %5187 = vperm.xlu0 %5074, %v5186_v53   ;;  %v2090_v53 = vsel %vm2054_vm11, 1.0, %v8703_v52  ;;  %vm1711_vm11 = vcmp.eq.f32.partialorder %v7269_v39, %v6906_v61 }
 0x72f   :  { %5207 = vperm.xlu0 %5074, %v5206_v16   ;;  %v7355_v16 = vld [vmem:[%s8693_s6 + $0xf8] sm:$0xff] }
 0x730   :  { %vm1731_vm14 = vcmp.eq.f32.partialorder %v7355_v16, %v6906_v61 }
 0x731   :  { %v1767_v32 = vsel %vm1731_vm14, 1.0, %v8703_v52  ;;  %vm1386_vm14 = vcmp.eq.f32.partialorder %v7312_v5, %v6919_v1 }
 0x733   :  { %5217 = vperm.xlu0 %5074, %v5216_v23   ;;  %v5281_v23 = vpack.i.bf16 %v2091_v56, %v2090_v53  ;;  %v1428_v56 = vsel %vm1392_vm7, 1.0, %v8703_v52  ;;  %vm1389_vm7 = vcmp.eq.f32.partialorder %v7355_v16, %v6919_v1 }
 0x737   :  { %5227 = vperm.xlu0 %5074, %v5226_v33   ;;  %v5291_v33 = vpack.i.bf16 %v1767_v32, %v1766_v30  ;;  %v2296_v32 = vsub.s32 2, %v5686_v0 }
 0x739   :  { %v7421_v45 = vrot.slane %v7103_v27, %v2296_v32 }
 0x73b   :  { %5237 = vperm.xlu0 %5074, %v5236_v44   ;;  %v7386_v44 = vld [vmem:[%s8693_s6 + $0x100] sm:$0xff] }
 0x73c   :  { %vm1390_vm4 = vcmp.eq.f32.partialorder %v7386_v44, %v6919_v1 }
 0x73d   :  { %v1426_v35 = vsel %vm1390_vm4, 1.0, %v8703_v52  ;;  %vm2071_vm4 = vcmp.eq.f32.partialorder %v7317_v50, %v7106_v21 }
 0x73f   :  { %5252 = vperm.xlu0 %5074, %v5251_v4   ;;  %v2092_v4 = vsel %vm2056_vm2, 1.0, %v8703_v52  ;;  %vm1713_vm2 = vcmp.eq.f32.partialorder %v7331_v31, %v6906_v61 }
 0x740   :  { %v5311_v34 = vpack.i.bf16 %v2093_v47, %v2092_v4 }
 0x743   :  { %5262 = vperm.xlu0 %5074, %v5261_v11   ;;  %v7407_v11 = vld [vmem:[%s8693_s6 + $0x118] sm:$0xff] }
 0x744   :  { %vm1393_vm8 = vcmp.eq.f32.partialorder %v7407_v11, %v6919_v1 }
 0x747   :  { %5267 = vperm.xlu0 %5074, %v5266_v51   ;;  %v1427_v51 = vsel %vm1391_vm5, 1.0, %v8703_v52  ;;  %vm1388_vm5 = vcmp.eq.f32.partialorder %v7350_v57, %v6919_v1 }
 0x748   :  { %v5316_v53 = vpack.i.bf16 %v1427_v51, %v1426_v35 }
 0x74b   :  { %5282 = vperm.xlu0 %5074, %v5281_v23   ;;  %v1429_v23 = vsel %vm1393_vm8, 1.0, %v8703_v52  ;;  %vm1714_vm8 = vcmp.eq.f32.partialorder %v7364_v17, %v6906_v61 }
 0x74c   :  { %v5331_v30 = vpack.i.bf16 %v1429_v23, %v1428_v56 }
 0x74f   :  { %5292 = vperm.xlu0 %5074, %v5291_v33   ;;  %v7418_v33 = vpop.permute.xlu1 %5177 }
 0x753   :  { %5297 = vperm.xlu0 %5074, %v5296_v58  }
 0x757   :  { %5312 = vperm.xlu0 %5074, %v5311_v34  }
 0x75b   :  { %5317 = vperm.xlu0 %5074, %v5316_v53  }
 0x75f   :  { %5332 = vperm.xlu0 %5074, %v5331_v30  }
 0x773   :  { %v5193_v43 = vpop.permute.xlu1 %5192 }
 0x774   :  { %v5195_v58 = vunpack.i.h.bf16 %v5193_v43  ;;  %v5194_v4 = vunpack.i.l.bf16 %v5193_v43 }
 0x776   :  { %v2315_v47 = vmul.f32 %v5195_v58, %v7421_v45  ;;  %v2314_v34 = vmul.f32 %v5194_v4, %v7421_v45 }
 0x777   :  { %v5198_v35 = vpop.permute.xlu1 %5197 }
 0x778   :  { %v5200_v51 = vunpack.i.h.bf16 %v5198_v35  ;;  %v5199_v49 = vunpack.i.l.bf16 %v5198_v35 }
 0x77a   :  { %v2299_v53 = vmul.f32 %v5200_v51, %v7421_v45  ;;  %v2298_v56 = vmul.f32 %v5199_v49, %v7421_v45 }
 0x77b   :  { %v5203_v23 = vpop.permute.xlu1 %5202 }
 0x77c   :  { %v7428_v30 = vadd.f32 %v2298_v56, %v7163_v26  ;;  %v7431_v27 = vadd.f32 %v2299_v53, %v7165_v28  ;;  %v5205_v32 = vunpack.i.h.bf16 %v5203_v23  ;;  %v5204_v43 = vunpack.i.l.bf16 %v5203_v23 }
 0x77e   :  { %v2317_v58 = vmul.f32 %v5205_v32, %v7421_v45  ;;  %v2316_v4 = vmul.f32 %v5204_v43, %v7421_v45  ;;  %v2374_v52 = vpop.xlane.xlu0 %2373 }
 0x77f   :  { %vm2375_vm9 = vcmp.ge.f32.partialorder %v7113_v25, %v2374_v52  ;;  %v5213_v35 = vpop.permute.xlu1 %5212 }
 0x780   :  { %v7437_v51 = vadd.f32 %v2316_v4, %v7187_v14  ;;  %v7440_v49 = vadd.f32 %v2317_v58, %v7189_v15  ;;  %v5215_v26 = vunpack.i.h.bf16 %v5213_v35  ;;  %v5214_v56 = vunpack.i.l.bf16 %v5213_v35 }
 0x781   :  { %v2376_v28 = vsel %vm2375_vm9, %v6886_v38, 9.0  ;;  %vm1715_vm9 = vcmp.eq.f32.partialorder %v7369_v22, %v6906_v61 }
 0x782   :  { %v2319_v53 = vmul.f32 %v5215_v26, %v7421_v45  ;;  %v2318_v23 = vmul.f32 %v5214_v56, %v7421_v45  ;;  %v2377_v32 = vsel %vm1345_vm10, %v2376_v28, inf  ;;  %vm1710_vm10 = vcmp.eq.f32.partialorder %v7264_v37, %v6906_v61 }
 0x783   :  { %2378 = vmin.xlane.f32.xlu1 %v2377_v32  ;;  %v5223_v43 = vpop.permute.xlu1 %5222  ;;  %v1746_v55 = vsel %vm1710_vm10, 1.0, %v8717_v60  ;;  %vm2072_vm10 = vcmp.eq.f32.partialorder %v7350_v57, %v7106_v21 }
 0x784   :  { %v5225_v52 = vunpack.i.h.bf16 %v5223_v43  ;;  %v5224_v25 = vunpack.i.l.bf16 %v5223_v43 }
 0x786   :  { %v7447_v14 = vmul.f32 %v5225_v52, %v7421_v45  ;;  %v7450_v15 = vmul.f32 %v5224_v25, %v7421_v45  ;;  %v5077_v58 = vpop.permute.xlu0 %5076  ;;  %v5120_v25 = vunpack.i.h.bf16 %v7201_v29 }
 0x787   :  { %v5079_v4 = vunpack.i.h.bf16 %v5077_v58  ;;  %v5078_v35 = vunpack.i.l.bf16 %v5077_v58  ;;  %v5119_v58 = vunpack.i.l.bf16 %v7201_v29 }
 0x789   :  { %v1631_v38 = vmul.f32 %v5079_v4, %v7147_v10  ;;  %v1630_v26 = vmul.f32 %v5078_v35, %v7147_v10 }
 0x78a   :  { %v5108_v56 = vpop.permute.xlu0 %5107 }
 0x78b   :  { %v2009_v28 = vadd.f32 %v7134_v2, %v1631_v38  ;;  %v2008_v32 = vadd.f32 %v7137_v41, %v1630_v26  ;;  %v5110_v43 = vunpack.i.h.bf16 %v5108_v56  ;;  %v5109_v52 = vunpack.i.l.bf16 %v5108_v56 }
 0x78c   :  { %v1747_v2 = vsel %vm1711_vm11, 1.0, %v8717_v60  ;;  %v1635_v38 = vmul.f32 %v5120_v25, %v7147_v10  ;;  %v1634_v26 = vmul.f32 %v5119_v58, %v7147_v10  ;;  %v5140_v25 = vunpack.i.h.bf16 %v7221_v42 }
 0x78d   :  { %v1617_v4 = vmul.f32 %v5110_v43, %v7147_v10  ;;  %v1616_v35 = vmul.f32 %v5109_v52, %v7147_v10  ;;  %v7464_v13 = vadd.f32 %v2314_v34, %v2008_v32  ;;  %v7466_v19 = vadd.f32 %v2315_v47, %v2009_v28 }
 0x78e   :  { %v5123_v54 = vpop.permute.xlu0 %5122  ;;  %v5241_v28 = vpack.i.bf16 %v1747_v2, %v1746_v55  ;;  %v5139_v58 = vunpack.i.l.bf16 %v7221_v42  ;;  %v1422_v42 = vsel %vm1386_vm14, 1.0, %v8717_v60  ;;  %vm2073_vm11 = vcmp.eq.f32.partialorder %v7355_v16, %v7106_v21 }
 0x78f   :  { %v7475_v41 = vadd.f32 %v7199_v20, %v1616_v35  ;;  %v7478_v29 = vadd.f32 %v7196_v18, %v1617_v4  ;;  %v5125_v34 = vunpack.i.h.bf16 %v5123_v54  ;;  %v5124_v47 = vunpack.i.l.bf16 %v5123_v54 }
 0x790   :  { %v2104_v20 = vsel %vm2068_vm12, 1.0, %v8717_v60  ;;  %v2105_v18 = vsel %vm2069_vm13, 1.0, %v8717_v60  ;;  %vm1732_vm12 = vcmp.eq.f32.partialorder %v7386_v44, %v6906_v61  ;;  %vm1733_vm13 = vcmp.eq.f32.partialorder %v7391_v46, %v6906_v61 }
 0x791   :  { %v1977_v6 = vmul.f32 %v5125_v34, %v7110_v24  ;;  %v1976_v56 = vmul.f32 %v5124_v47, %v7110_v24  ;;  %v5246_v47 = vpack.i.bf16 %v2105_v18, %v2104_v20  ;;  %v1636_v20 = vmul.f32 %v5139_v58, %v7147_v10 }
 0x792   :  { %v5128_v7 = vpop.permute.xlu0 %5127  ;;  %vm2074_vm14 = vcmp.eq.f32.partialorder %v7386_v44, %v7106_v21 }
 0x793   :  { %v2012_v54 = vadd.f32 %v1976_v56, %v1634_v26  ;;  %v2013_v32 = vadd.f32 %v1977_v6, %v1635_v38  ;;  %v5130_v43 = vunpack.i.h.bf16 %v5128_v7  ;;  %v5129_v52 = vunpack.i.l.bf16 %v5128_v7 }
 0x794   :  { %5242 = vperm.xlu1 %5080, %v5241_v28   ;;  %v1423_v38 = vsel %vm1387_vm15, 1.0, %v8717_v60  ;;  %v1748_v56 = vsel %vm1712_vm1, 1.0, %v8717_v60  ;;  %v1749_v7 = vsel %vm1713_vm2, 1.0, %v8717_v60  ;;  %v1637_v28 = vmul.f32 %v5140_v25, %v7147_v10 }
 0x795   :  { %v1619_v55 = vmul.f32 %v5130_v43, %v7147_v10  ;;  %v1618_v4 = vmul.f32 %v5129_v52, %v7147_v10  ;;  %v7498_v35 = vadd.f32 %v2318_v23, %v2012_v54  ;;  %v7500_v2 = vadd.f32 %v2319_v53, %v2013_v32 }
 0x796   :  { %v5143_v34 = vpop.permute.xlu0 %5142  ;;  %v5256_v32 = vpack.i.bf16 %v1423_v38, %v1422_v42  ;;  %vm2075_vm15 = vcmp.eq.f32.partialorder %v7391_v46, %v7106_v21 }
 0x797   :  { %v7511_v26 = vadd.f32 %v7219_v3, %v1618_v4  ;;  %v7514_v23 = vadd.f32 %v7216_v40, %v1619_v55  ;;  %v5145_v53 = vunpack.i.h.bf16 %v5143_v34  ;;  %v5144_v6 = vunpack.i.l.bf16 %v5143_v34  ;;  %v5233_v40 = vpop.permute.xlu1 %5232 }
 0x798   :  { %5247 = vperm.xlu1 %5080, %v5246_v47   ;;  %v5160_v55 = vunpack.i.h.bf16 %v7241_v12  ;;  %v5159_v4 = vunpack.i.l.bf16 %v7241_v12  ;;  %v5271_v34 = vpack.i.bf16 %v1749_v7, %v1748_v56  ;;  %v2106_v12 = vsel %vm2070_vm3, 1.0, %v8717_v60 }
 0x799   :  { %v1979_v18 = vmul.f32 %v5145_v53, %v7110_v24  ;;  %v1978_v54 = vmul.f32 %v5144_v6, %v7110_v24  ;;  %v5235_v6 = vunpack.i.h.bf16 %v5233_v40  ;;  %v2107_v56 = vsel %vm2071_vm4, 1.0, %v8717_v60 }
 0x79a   :  { %v5148_v3 = vpop.permute.xlu0 %5147 }
 0x79b   :  { %v2014_v43 = vadd.f32 %v1978_v54, %v1636_v20  ;;  %v2015_v52 = vadd.f32 %v1979_v18, %v1637_v28  ;;  %v5150_v25 = vunpack.i.h.bf16 %v5148_v3  ;;  %v5149_v58 = vunpack.i.l.bf16 %v5148_v3 }
 0x79c   :  { %5257 = vperm.xlu1 %5080, %v5256_v32   ;;  %v5234_v28 = vunpack.i.l.bf16 %v5233_v40  ;;  %v1424_v54 = vsel %vm1388_vm5, 1.0, %v8717_v60  ;;  %v1425_v3 = vsel %vm1389_vm7, 1.0, %v8717_v60 }
 0x79d   :  { %v1621_v47 = vmul.f32 %v5150_v25, %v7147_v10  ;;  %v1620_v42 = vmul.f32 %v5149_v58, %v7147_v10  ;;  %v7535_v38 = vadd.f32 %v7450_v15, %v2014_v43  ;;  %v7538_v53 = vadd.f32 %v7447_v14, %v2015_v52 }
 0x79e   :  { %v5163_v20 = vpop.permute.xlu0 %5162  ;;  %v2323_v43 = vmul.f32 %v5235_v6, %v7421_v45  ;;  %v2322_v52 = vmul.f32 %v5234_v28, %v7421_v45  ;;  %v5276_v58 = vpack.i.bf16 %v2107_v56, %v2106_v12  ;;  %v5286_v28 = vpack.i.bf16 %v1425_v3, %v1424_v54 }
 0x79f   :  { %v7549_v7 = vadd.f32 %v7239_v9, %v1620_v42  ;;  %v7552_v15 = vadd.f32 %v7236_v8, %v1621_v47  ;;  %v5165_v14 = vunpack.i.h.bf16 %v5163_v20  ;;  %v5164_v18 = vunpack.i.l.bf16 %v5163_v20 }
 0x7a0   :  { %5272 = vperm.xlu1 %5080, %v5271_v34   ;;  %v1639_v9 = vmul.f32 %v5160_v55, %v7147_v10  ;;  %v1638_v8 = vmul.f32 %v5159_v4, %v7147_v10  ;;  %v1750_v12 = vsel %vm1714_vm8, 1.0, %v8717_v60  ;;  %v1751_v56 = vsel %vm1715_vm9, 1.0, %v8717_v60 }
 0x7a1   :  { %v1981_v32 = vmul.f32 %v5165_v14, %v7110_v24  ;;  %v1980_v40 = vmul.f32 %v5164_v18, %v7110_v24 }
 0x7a2   :  { %v5168_v25 = vpop.permute.xlu0 %5167 }
 0x7a3   :  { %v2016_v1 = vadd.f32 %v1980_v40, %v1638_v8  ;;  %v2017_v34 = vadd.f32 %v1981_v32, %v1639_v9  ;;  %v5170_v47 = vunpack.i.h.bf16 %v5168_v25  ;;  %v5169_v42 = vunpack.i.l.bf16 %v5168_v25 }
 0x7a4   :  { %5277 = vperm.xlu1 %5080, %v5276_v58   ;;  %v1768_v58 = vsel %vm1732_vm12, 1.0, %v8717_v60 }
 0x7a5   :  { %v1623_v55 = vmul.f32 %v5170_v47, %v7147_v10  ;;  %v1622_v4 = vmul.f32 %v5169_v42, %v7147_v10  ;;  %v7574_v20 = vadd.f32 %v2322_v52, %v2016_v1  ;;  %v7576_v14 = vadd.f32 %v2323_v43, %v2017_v34 }
 0x7a6   :  { %v5183_v6 = vpop.permute.xlu0 %5182  ;;  %v5301_v43 = vpack.i.bf16 %v1751_v56, %v1750_v12  ;;  %v2108_v52 = vsel %vm2072_vm10, 1.0, %v8717_v60  ;;  %v1769_v1 = vsel %vm1733_vm13, 1.0, %v8717_v60  ;;  %v2111_v12 = vsel %vm2075_vm15, 1.0, %v8717_v60 }
 0x7a7   :  { %8718 = vst [vmem:[#allocation10_spill] sm:$0xff] %v7574_v20  ;;  %8719 = vst [vmem:[#allocation11_spill] sm:$0xff] %v7576_v14  ;;  %v2000_v18 = vadd.f32 %v7259_v63, %v1622_v4  ;;  %v2001_v9 = vadd.f32 %v7256_v62, %v1623_v55  ;;  %v5185_v8 = vunpack.i.h.bf16 %v5183_v6  ;;  %v5184_v32 = vunpack.i.l.bf16 %v5183_v6 }
 0x7a8   :  { %5287 = vperm.xlu1 %5080, %v5286_v28   ;;  %v2109_v63 = vsel %vm2073_vm11, 1.0, %v8717_v60  ;;  %v5321_v6 = vpack.i.bf16 %v1769_v1, %v1768_v58  ;;  %v2110_v28 = vsel %vm2074_vm14, 1.0, %v8717_v60 }
 0x7a9   :  { %v1983_v54 = vmul.f32 %v5185_v8, %v7110_v24  ;;  %v1982_v3 = vmul.f32 %v5184_v32, %v7110_v24  ;;  %v5306_v25 = vpack.i.bf16 %v2109_v63, %v2108_v52 }
 0x7aa   :  { %v5188_v40 = vpop.permute.xlu0 %5187 }
 0x7ac   :  { %5302 = vperm.xlu1 %5080, %v5301_v43  }
 0x7ae   :  { %v5208_v62 = vpop.permute.xlu0 %5207 }
 0x7af   :  { %v5210_v34 = vunpack.i.h.bf16 %v5208_v62  ;;  %v5209_v47 = vunpack.i.l.bf16 %v5208_v62 }
 0x7b0   :  { %5307 = vperm.xlu1 %5080, %v5306_v25   ;;  %v5326_v25 = vpack.i.bf16 %v2111_v12, %v2110_v28 }
 0x7b1   :  { %v2301_v42 = vmul.f32 %v5210_v34, %v7421_v45  ;;  %v2300_v55 = vmul.f32 %v5209_v47, %v7421_v45 }
 0x7b2   :  { %v5218_v4 = vpop.permute.xlu0 %5217 }
 0x7b3   :  { %v7608_v56 = vadd.f32 %v2300_v55, %v7475_v41  ;;  %v7611_v8 = vadd.f32 %v2301_v42, %v7478_v29  ;;  %v5220_v32 = vunpack.i.h.bf16 %v5218_v4  ;;  %v5219_v43 = vunpack.i.l.bf16 %v5218_v4 }
 0x7b4   :  { %5322 = vperm.xlu1 %5080, %v5321_v6  }
 0x7b5   :  { %v2303_v52 = vmul.f32 %v5220_v32, %v7421_v45  ;;  %v2302_v63 = vmul.f32 %v5219_v43, %v7421_v45  ;;  %v5180_v43 = vunpack.i.h.bf16 %v7418_v33 }
 0x7b6   :  { %v5228_v62 = vpop.permute.xlu0 %5227 }
 0x7b7   :  { %v7616_v58 = vadd.f32 %v2302_v63, %v7511_v26  ;;  %v7619_v1 = vadd.f32 %v2303_v52, %v7514_v23  ;;  %v5230_v41 = vunpack.i.h.bf16 %v5228_v62  ;;  %v5229_v34 = vunpack.i.l.bf16 %v5228_v62 }
 0x7b8   :  { %5327 = vperm.xlu1 %5080, %v5326_v25   ;;  %v5179_v52 = vunpack.i.l.bf16 %v7418_v33  ;;  %v5190_v63 = vunpack.i.h.bf16 %v5188_v40  ;;  %v1641_v62 = vmul.f32 %v5180_v43, %v7147_v10  ;;  %v5443_v33 = vld [vmem:[%s8693_s6 + $0x80] sm:$0xff] }
 0x7b9   :  { %v2305_v29 = vmul.f32 %v5230_v41, %v7421_v45  ;;  %v2304_v47 = vmul.f32 %v5229_v34, %v7421_v45 }
 0x7ba   :  { %v5238_v42 = vpop.permute.xlu0 %5237 }
 0x7bb   :  { %v7624_v55 = vadd.f32 %v2304_v47, %v7549_v7  ;;  %v7627_v4 = vadd.f32 %v2305_v29, %v7552_v15  ;;  %v5240_v6 = vunpack.i.h.bf16 %v5238_v42  ;;  %v5239_v26 = vunpack.i.l.bf16 %v5238_v42 }
 0x7bc   :  { %v5189_v7 = vunpack.i.l.bf16 %v5188_v40  ;;  %v1640_v15 = vmul.f32 %v5179_v52, %v7147_v10  ;;  %v2019_v29 = vadd.f32 %v1983_v54, %v1641_v62  ;;  %v5444_v40 = vld [vmem:[%s8693_s6 + $0x88] sm:$0xff]  ;;  %v5449_v62 = vld [vmem:[%s8693_s6 + $0x10] sm:$0xff] }
 0x7bd   :  { %v2307_v28 = vmul.f32 %v5240_v6, %v7421_v45  ;;  %v2306_v23 = vmul.f32 %v5239_v26, %v7421_v45  ;;  %v5446_v54 = vld [vmem:[%s8693_s6 + $0x8] sm:$0xff] }
 0x7be   :  { %v2018_v34 = vadd.f32 %v1982_v3, %v1640_v15  ;;  %v5450_v15 = vld [vmem:[%s8693_s6 + $0x18] sm:$0xff] }
 0x7bf   :  { %v7631_v12 = vadd.f32 %v2306_v23, %v2000_v18  ;;  %v7633_v32 = vadd.f32 %v2307_v28, %v2001_v9  ;;  %v1625_v18 = vmul.f32 %v5190_v63, %v7147_v10  ;;  %v1624_v9 = vmul.f32 %v5189_v7, %v7147_v10  ;;  %v5447_v63 = vld [vmem:[%s8693_s6 + $0x90] sm:$0xff]  ;;  %v5448_v7 = vld [vmem:[%s8693_s6 + $0x98] sm:$0xff] }
 0x7c1   :  { %8720 = vst [vmem:[#allocation12_spill] sm:$0xff] %v7631_v12  ;;  %8721 = vst [vmem:[#allocation13_spill] sm:$0xff] %v7633_v32 }
 0x810   :  { %v2379_v25 = vpop.xlane.xlu1 %2378 }
 0x811   :  { %v7640_v41 = vrot.slane %v2379_v25, %v6903_v59  ;;  %v5445_v59 = vld [vmem:[%s8693_s6] sm:$0xff] }
 0x813   :  { %vm2400_vm1 = vcmp.eq.f32.partialorder %v5443_v33, %v7640_v41  ;;  %vm2401_vm2 = vcmp.eq.f32.partialorder %v5444_v40, %v7640_v41  ;;  %vm2384_vm3 = vcmp.eq.f32.partialorder %v5445_v59, %v7640_v41  ;;  %vm2385_vm4 = vcmp.eq.f32.partialorder %v5446_v54, %v7640_v41 }
 0x814   :  { %v5243_v3 = vpop.permute.xlu1 %5242  ;;  %v2436_v47 = vsel %vm2400_vm1, 1.0, %v8717_v60  ;;  %v2437_v42 = vsel %vm2401_vm2, 1.0, %v8717_v60  ;;  %v2420_v6 = vsel %vm2384_vm3, 1.0, %v8717_v60  ;;  %v2421_v26 = vsel %vm2385_vm4, 1.0, %v8717_v60 }
 0x815   :  { %v5245_v28 = vunpack.i.h.bf16 %v5243_v3  ;;  %v5244_v23 = vunpack.i.l.bf16 %v5243_v3  ;;  %v5336_v43 = vpack.i.bf16 %v2437_v42, %v2436_v47  ;;  %v5341_v52 = vpack.i.bf16 %v2421_v26, %v2420_v6  ;;  %v5451_v6 = vld [vmem:[%s8693_s6 + $0xa0] sm:$0xff] }
 0x816   :  { %vm2402_vm5 = vcmp.eq.f32.partialorder %v5447_v63, %v7640_v41  ;;  %vm2403_vm7 = vcmp.eq.f32.partialorder %v5448_v7, %v7640_v41  ;;  %vm2386_vm8 = vcmp.eq.f32.partialorder %v5449_v62, %v7640_v41  ;;  %vm2387_vm9 = vcmp.eq.f32.partialorder %v5450_v15, %v7640_v41  ;;  %v5452_v63 = vld [vmem:[%s8693_s6 + $0xa8] sm:$0xff]  ;;  %v5453_v62 = vld [vmem:[%s8693_s6 + $0x20] sm:$0xff] }
 0x817   :  { %v1967_v25 = vmul.f32 %v5245_v28, %v7110_v24  ;;  %v1966_v33 = vmul.f32 %v5244_v23, %v7110_v24  ;;  %5337 = vperm.xlu1 %5080, %v5336_v43   ;;  %5342 = vperm.xlu0 %5074, %v5341_v52   ;;  %v2438_v40 = vsel %vm2402_vm5, 1.0, %v8717_v60  ;;  %v2439_v59 = vsel %vm2403_vm7, 1.0, %v8717_v60 }
 0x818   :  { %v5248_v54 = vpop.permute.xlu1 %5247  ;;  %v5346_v3 = vpack.i.bf16 %v2439_v59, %v2438_v40  ;;  %v2422_v47 = vsel %vm2386_vm8, 1.0, %v8717_v60  ;;  %v2423_v42 = vsel %vm2387_vm9, 1.0, %v8717_v60  ;;  %vm2404_vm10 = vcmp.eq.f32.partialorder %v5451_v6, %v7640_v41  ;;  %v5455_v59 = vld [vmem:[%s8693_s6 + $0xb0] sm:$0xff]  ;;  %v5456_v6 = vld [vmem:[%s8693_s6 + $0xb8] sm:$0xff] }
 0x819   :  { %v7690_v26 = vadd.f32 %v1967_v25, %v1625_v18  ;;  %v7692_v28 = vadd.f32 %v1966_v33, %v1624_v9  ;;  %v5250_v23 = vunpack.i.h.bf16 %v5248_v54  ;;  %v5249_v43 = vunpack.i.l.bf16 %v5248_v54  ;;  %v5454_v25 = vld [vmem:[%s8693_s6 + $0x28] sm:$0xff] }
 0x81a   :  { %v5351_v52 = vpack.i.bf16 %v2423_v42, %v2422_v47  ;;  %vm2405_vm11 = vcmp.eq.f32.partialorder %v5452_v63, %v7640_v41  ;;  %v2440_v7 = vsel %vm2404_vm10, 1.0, %v8717_v60  ;;  %vm2388_vm12 = vcmp.eq.f32.partialorder %v5453_v62, %v7640_v41 }
 0x81b   :  { %v2325_v18 = vmul.f32 %v5250_v23, %v7421_v45  ;;  %v2324_v9 = vmul.f32 %v5249_v43, %v7421_v45  ;;  %5347 = vperm.xlu1 %5080, %v5346_v3   ;;  %v2441_v15 = vsel %vm2405_vm11, 1.0, %v8717_v60  ;;  %vm2389_vm13 = vcmp.eq.f32.partialorder %v5454_v25, %v7640_v41  ;;  %v5457_v43 = vld [vmem:[%s8693_s6 + $0x30] sm:$0xff]  ;;  %v5461_v25 = vld [vmem:[%s8693_s6 + $0x40] sm:$0xff] }
 0x81c   :  { %5352 = vperm.xlu0 %5074, %v5351_v52   ;;  %v2424_v33 = vsel %vm2388_vm12, 1.0, %v8717_v60  ;;  %v2425_v40 = vsel %vm2389_vm13, 1.0, %v8717_v60  ;;  %vm2406_vm14 = vcmp.eq.f32.partialorder %v5455_v59, %v7640_v41  ;;  %v5356_v47 = vpack.i.bf16 %v2441_v15, %v2440_v7  ;;  %v5459_v7 = vld [vmem:[%s8693_s6 + $0xc0] sm:$0xff] }
 0x81d   :  { %v7716_v54 = vadd.f32 %v2324_v9, %v2018_v34  ;;  %v7718_v3 = vadd.f32 %v2325_v18, %v2019_v29  ;;  %v5361_v42 = vpack.i.bf16 %v2425_v40, %v2424_v33  ;;  %vm2407_vm15 = vcmp.eq.f32.partialorder %v5456_v6, %v7640_v41  ;;  %v5458_v29 = vld [vmem:[%s8693_s6 + $0x38] sm:$0xff]  ;;  %v5460_v9 = vld [vmem:[%s8693_s6 + $0xc8] sm:$0xff] }
 0x81e   :  { %v2442_v23 = vsel %vm2406_vm14, 1.0, %v8717_v60  ;;  %vm2390_vm1 = vcmp.eq.f32.partialorder %v5457_v43, %v7640_v41  ;;  %v2443_v34 = vsel %vm2407_vm15, 1.0, %v8717_v60  ;;  %vm2391_vm2 = vcmp.eq.f32.partialorder %v5458_v29, %v7640_v41  ;;  %v5462_v40 = vld [vmem:[%s8693_s6 + $0x48] sm:$0xff]  ;;  %v5464_v43 = vld [vmem:[%s8693_s6 + $0xd8] sm:$0xff] }
 0x81f   :  { %8722 = vst [vmem:[#allocation14_spill] sm:$0xff] %v7716_v54  ;;  %8723 = vst [vmem:[#allocation15_spill] sm:$0xff] %v7718_v3  ;;  %5357 = vperm.xlu1 %5080, %v5356_v47   ;;  %v2426_v52 = vsel %vm2390_vm1, 1.0, %v8717_v60  ;;  %v2427_v63 = vsel %vm2391_vm2, 1.0, %v8717_v60  ;;  %vm2408_vm3 = vcmp.eq.f32.partialorder %v5459_v7, %v7640_v41  ;;  %v5366_v62 = vpack.i.bf16 %v2443_v34, %v2442_v23 }
 0x820   :  { %5362 = vperm.xlu0 %5074, %v5361_v42   ;;  %v5371_v18 = vpack.i.bf16 %v2427_v63, %v2426_v52  ;;  %vm2409_vm4 = vcmp.eq.f32.partialorder %v5460_v9, %v7640_v41  ;;  %v2444_v15 = vsel %vm2408_vm3, 1.0, %v8717_v60  ;;  %vm2392_vm5 = vcmp.eq.f32.partialorder %v5461_v25, %v7640_v41  ;;  %v5463_v42 = vld [vmem:[%s8693_s6 + $0xd0] sm:$0xff] }
 0x821   :  { %v2445_v33 = vsel %vm2409_vm4, 1.0, %v8717_v60  ;;  %vm2393_vm7 = vcmp.eq.f32.partialorder %v5462_v40, %v7640_v41  ;;  %v2428_v59 = vsel %vm2392_vm5, 1.0, %v8717_v60  ;;  %vm2410_vm8 = vcmp.eq.f32.partialorder %v5463_v42, %v7640_v41 }
 0x822   :  { %v2429_v47 = vsel %vm2393_vm7, 1.0, %v8717_v60  ;;  %v5376_v6 = vpack.i.bf16 %v2445_v33, %v2444_v15  ;;  %vm2411_vm9 = vcmp.eq.f32.partialorder %v5464_v43, %v7640_v41  ;;  %v2446_v34 = vsel %vm2410_vm8, 1.0, %v8717_v60 }
 0x823   :  { %5367 = vperm.xlu1 %5080, %v5366_v62   ;;  %v5381_v23 = vpack.i.bf16 %v2429_v47, %v2428_v59  ;;  %vm2394_vm10 = vcmp.eq.f32.partialorder %v7264_v37, %v7640_v41  ;;  %v2447_v29 = vsel %vm2411_vm9, 1.0, %v8717_v60  ;;  %vm2395_vm11 = vcmp.eq.f32.partialorder %v7269_v39, %v7640_v41  ;;  %v5253_v62 = vpop.permute.xlu0 %5252 }
 0x824   :  { %5372 = vperm.xlu0 %5074, %v5371_v18   ;;  %v2430_v52 = vsel %vm2394_vm10, 1.0, %v8717_v60  ;;  %v2431_v63 = vsel %vm2395_vm11, 1.0, %v8717_v60  ;;  %vm2412_vm12 = vcmp.eq.f32.partialorder %v7312_v5, %v7640_v41  ;;  %v5386_v7 = vpack.i.bf16 %v2447_v29, %v2446_v34 }
 0x825   :  { %v5391_v18 = vpack.i.bf16 %v2431_v63, %v2430_v52  ;;  %vm2413_vm13 = vcmp.eq.f32.partialorder %v7317_v50, %v7640_v41  ;;  %v2448_v37 = vsel %vm2412_vm12, 1.0, %v8717_v60  ;;  %vm2396_vm14 = vcmp.eq.f32.partialorder %v7326_v36, %v7640_v41  ;;  %v5258_v63 = vpop.permute.xlu1 %5257 }
 0x826   :  { %v2449_v39 = vsel %vm2413_vm13, 1.0, %v8717_v60  ;;  %vm2397_vm15 = vcmp.eq.f32.partialorder %v7331_v31, %v7640_v41  ;;  %v2432_v5 = vsel %vm2396_vm14, 1.0, %v8717_v60  ;;  %vm2414_vm1 = vcmp.eq.f32.partialorder %v7350_v57, %v7640_v41 }
 0x827   :  { %5377 = vperm.xlu1 %5080, %v5376_v6   ;;  %v2433_v9 = vsel %vm2397_vm15, 1.0, %v8717_v60  ;;  %v5254_v50 = vunpack.i.l.bf16 %v5253_v62  ;;  %v5396_v15 = vpack.i.bf16 %v2449_v39, %v2448_v37  ;;  %vm1734_vm2 = vcmp.eq.f32.partialorder %v7402_v48, %v6906_v61 }
 0x828   :  { %5382 = vperm.xlu0 %5074, %v5381_v23   ;;  %v5401_v36 = vpack.i.bf16 %v2433_v9, %v2432_v5  ;;  %vm2415_vm3 = vcmp.eq.f32.partialorder %v7355_v16, %v7640_v41  ;;  %v2450_v25 = vsel %vm2414_vm1, 1.0, %v8717_v60  ;;  %vm2398_vm4 = vcmp.eq.f32.partialorder %v7364_v17, %v7640_v41 }
 0x829   :  { %v2451_v31 = vsel %vm2415_vm3, 1.0, %v8717_v60  ;;  %vm2399_vm5 = vcmp.eq.f32.partialorder %v7369_v22, %v7640_v41  ;;  %vm1735_vm7 = vcmp.eq.f32.partialorder %v7407_v11, %v6906_v61  ;;  %v5255_v57 = vunpack.i.h.bf16 %v5253_v62  ;;  %v5273_v62 = vpop.permute.xlu1 %5272 }
 0x82a   :  { %v2434_v33 = vsel %vm2398_vm4, 1.0, %v8717_v60  ;;  %v2435_v16 = vsel %vm2399_vm5, 1.0, %v8717_v60  ;;  %vm2416_vm8 = vcmp.eq.f32.partialorder %v7386_v44, %v7640_v41  ;;  %v5406_v40 = vpack.i.bf16 %v2451_v31, %v2450_v25 }
 0x82b   :  { %5387 = vperm.xlu1 %5080, %v5386_v7   ;;  %v1770_v17 = vsel %vm1734_vm2, 1.0, %v8717_v60  ;;  %v2308_v59 = vmul.f32 %v5254_v50, %v7421_v45  ;;  %v5416_v47 = vpack.i.bf16 %v2435_v16, %v2434_v33  ;;  %v1771_v22 = vsel %vm1735_vm7, 1.0, %v8717_v60 }
 0x82c   :  { %5392 = vperm.xlu0 %5074, %v5391_v18   ;;  %vm2417_vm9 = vcmp.eq.f32.partialorder %v7391_v46, %v7640_v41  ;;  %v2452_v61 = vsel %vm2416_vm8, 1.0, %v8717_v60  ;;  %vm2076_vm10 = vcmp.eq.f32.partialorder %v7402_v48, %v7106_v21  ;;  %vm2077_vm11 = vcmp.eq.f32.partialorder %v7407_v11, %v7106_v21 }
 0x82d   :  { %v2453_v42 = vsel %vm2417_vm9, 1.0, %v8717_v60  ;;  %v2309_v44 = vmul.f32 %v5255_v57, %v7421_v45  ;;  %vm2418_vm12 = vcmp.eq.f32.partialorder %v7402_v48, %v7640_v41  ;;  %vm2419_vm13 = vcmp.eq.f32.partialorder %v7407_v11, %v7640_v41  ;;  %v5263_v41 = vpop.permute.xlu0 %5262  ;;  %v5278_v37 = vpop.permute.xlu1 %5277 }
 0x82e   :  { %v7819_v46 = vadd.f32 %v2308_v59, %v7692_v28  ;;  %v5411_v6 = vpack.i.bf16 %v1771_v22, %v1770_v17  ;;  %v5421_v23 = vpack.i.bf16 %v2453_v42, %v2452_v61  ;;  %v2112_v43 = vsel %vm2076_vm10, 1.0, %v8717_v60  ;;  %v5465_v61 = vld [vmem:[%s8695_s8] sm:$0xf] }
 0x82f   :  { %5397 = vperm.xlu1 %5080, %v5396_v15   ;;  %v2113_v34 = vsel %vm2077_vm11, 1.0, %v8717_v60  ;;  %v7824_v21 = vadd.f32 %v2309_v44, %v7690_v26  ;;  %v2454_v29 = vsel %vm2418_vm12, 1.0, %v8717_v60  ;;  %v2455_v48 = vsel %vm2419_vm13, 1.0, %v8717_v60 }
 0x830   :  { %5402 = vperm.xlu0 %5074, %v5401_v36   ;;  %8724 = vst [vmem:[#allocation16_spill] sm:$0xff] %v7819_v46  ;;  %v5426_v52 = vpack.i.bf16 %v2113_v34, %v2112_v43  ;;  %v5431_v11 = vpack.i.bf16 %v2455_v48, %v2454_v29  ;;  %v2638_v50 = vsub.s32 3, %v5686_v0  ;;  %v5265_v15 = vunpack.i.h.bf16 %v5263_v41 }
 0x831   :  { %8725 = vst [vmem:[#allocation17_spill] sm:$0xff] %v7824_v21  ;;  %v5268_v28 = vpop.permute.xlu0 %5267  ;;  %v5288_v26 = vpop.permute.xlu1 %5287  ;;  %v5264_v36 = vunpack.i.l.bf16 %v5263_v41 }
 0x832   :  { %v5270_v25 = vunpack.i.h.bf16 %v5268_v28  ;;  %v5269_v31 = vunpack.i.l.bf16 %v5268_v28  ;;  %v7832_v42 = vrot.slane %v5465_v61, %v2638_v50  ;;  %v1985_v0 = vmul.f32 %v5265_v15, %v7110_v24 }
 0x833   :  { %5407 = vperm.xlu1 %5080, %v5406_v40   ;;  %v5260_v50 = vunpack.i.h.bf16 %v5258_v63  ;;  %v5259_v15 = vunpack.i.l.bf16 %v5258_v63  ;;  %v5279_v61 = vunpack.i.l.bf16 %v5278_v37 }
 0x834   :  { %5417 = vperm.xlu0 %5074, %v5416_v47   ;;  %v1626_v43 = vmul.f32 %v5269_v31, %v7147_v10  ;;  %v5274_v31 = vunpack.i.l.bf16 %v5273_v62 }
 0x835   :  { %v5283_v7 = vpop.permute.xlu0 %5282  ;;  %v5303_v9 = vpop.permute.xlu1 %5302  ;;  %v1643_v63 = vmul.f32 %v5260_v50, %v7147_v10  ;;  %v1642_v21 = vmul.f32 %v5259_v15, %v7147_v10 }
 0x836   :  { %v5285_v57 = vunpack.i.h.bf16 %v5283_v7  ;;  %v5284_v33 = vunpack.i.l.bf16 %v5283_v7  ;;  %v5305_v60 = vunpack.i.h.bf16 %v5303_v9 }
 0x837   :  { %5412 = vperm.xlu1 %5080, %v5411_v6   ;;  %v1984_v6 = vmul.f32 %v5264_v36, %v7110_v24  ;;  %v5275_v36 = vunpack.i.h.bf16 %v5273_v62 }
 0x838   :  { %5422 = vperm.xlu0 %5074, %v5421_v23   ;;  %v1627_v23 = vmul.f32 %v5270_v25, %v7147_v10  ;;  %v7839_v29 = vmul.f32 %v5285_v57, %v7421_v45  ;;  %v7842_v48 = vmul.f32 %v5284_v33, %v7421_v45  ;;  %v5289_v57 = vunpack.i.l.bf16 %v5288_v26 }
 0x839   :  { %v5293_v18 = vpop.permute.xlu0 %5292  ;;  %v5308_v22 = vpop.permute.xlu1 %5307  ;;  %v5304_v33 = vunpack.i.l.bf16 %v5303_v9  ;;  %v1969_v62 = vmul.f32 %v5275_v36, %v7110_v24 }
 0x83a   :  { %v5295_v16 = vunpack.i.h.bf16 %v5293_v18  ;;  %v5294_v40 = vunpack.i.l.bf16 %v5293_v18  ;;  %v5309_v54 = vunpack.i.l.bf16 %v5308_v22  ;;  %v1644_v46 = vmul.f32 %v5289_v57, %v7147_v10 }
 0x83b   :  { %5427 = vperm.xlu1 %5080, %v5426_v52  }
 0x83c   :  { %5432 = vperm.xlu0 %5074, %v5431_v11   ;;  %v1987_v52 = vmul.f32 %v5295_v16, %v7110_v24  ;;  %v1986_v11 = vmul.f32 %v5294_v40, %v7110_v24  ;;  %v5280_v40 = vunpack.i.h.bf16 %v5278_v37  ;;  %v1970_v37 = vmul.f32 %v5304_v33, %v7110_v24 }
 0x83d   :  { %v5298_v39 = vpop.permute.xlu0 %5297  ;;  %v5323_v16 = vpop.permute.xlu1 %5322  ;;  %v2328_v15 = vmul.f32 %v5309_v54, %v7421_v45  ;;  %v2020_v33 = vadd.f32 %v1984_v6, %v1642_v21 }
 0x83e   :  { %v5300_v59 = vunpack.i.h.bf16 %v5298_v39  ;;  %v5299_v47 = vunpack.i.l.bf16 %v5298_v39  ;;  %v2327_v9 = vmul.f32 %v5280_v40, %v7421_v45  ;;  %v5325_v36 = vunpack.i.h.bf16 %v5323_v16 }
 0x83f   :  { %v2005_v40 = vadd.f32 %v1969_v62, %v1627_v23  ;;  %v2022_v32 = vadd.f32 %v1986_v11, %v1644_v46 }
 0x840   :  { %v1629_v41 = vmul.f32 %v5300_v59, %v7147_v10  ;;  %v1628_v28 = vmul.f32 %v5299_v47, %v7147_v10  ;;  %v5290_v59 = vunpack.i.h.bf16 %v5288_v26  ;;  %v5310_v26 = vunpack.i.h.bf16 %v5308_v22 }
 0x841   :  { %v5313_v5 = vpop.permute.xlu0 %5312  ;;  %v7868_v20 = vpop.permute.xlu1 %5327  ;;  %v2021_v22 = vadd.f32 %v1985_v0, %v1643_v63  ;;  %v1989_v14 = vmul.f32 %v5325_v36, %v7110_v24 }
 0x842   :  { %v5315_v44 = vunpack.i.h.bf16 %v5313_v5  ;;  %v5314_v34 = vunpack.i.l.bf16 %v5313_v5 }
 0x844   :  { %v7849_v39 = vmul.f32 %v5315_v44, %v7421_v45  ;;  %v2312_v25 = vmul.f32 %v5314_v34, %v7421_v45  ;;  %v1968_v34 = vmul.f32 %v5274_v31, %v7110_v24  ;;  %v5324_v31 = vunpack.i.l.bf16 %v5323_v16 }
 0x845   :  { %v5318_v17 = vpop.permute.xlu0 %5317  ;;  %v7878_v16 = vadd.f32 %v2328_v15, %v2022_v32  ;;  %v7889_v32 = vadd.f32 %v7839_v29, %v2005_v40 }
 0x846   :  { %v5320_v7 = vunpack.i.h.bf16 %v5318_v17  ;;  %v5319_v18 = vunpack.i.l.bf16 %v5318_v17 }
 0x848   :  { %v1647_v47 = vmul.f32 %v5320_v7, %v7147_v10  ;;  %v1646_v17 = vmul.f32 %v5319_v18, %v7147_v10  ;;  %v2326_v7 = vmul.f32 %v5279_v61, %v7421_v45  ;;  %v1645_v18 = vmul.f32 %v5290_v59, %v7147_v10 }
 0x849   :  { %v5333_v5 = vpop.permute.xlu0 %5332  ;;  %v2004_v61 = vadd.f32 %v1968_v34, %v1626_v43  ;;  %v2006_v59 = vadd.f32 %v1970_v37, %v1628_v28 }
 0x84a   :  { %v5335_v44 = vunpack.i.h.bf16 %v5333_v5  ;;  %v5334_v3 = vunpack.i.l.bf16 %v5333_v5  ;;  %v1971_v5 = vmul.f32 %v5305_v60, %v7110_v24  ;;  %v2329_v60 = vmul.f32 %v5310_v26, %v7421_v45 }
 0x84b   :  { %v7874_v12 = vadd.f32 %v2326_v7, %v2020_v33  ;;  %v2023_v54 = vadd.f32 %v1987_v52, %v1645_v18  ;;  %v7886_v28 = vadd.f32 %v7842_v48, %v2004_v61  ;;  %v7891_v52 = vadd.f32 %v2312_v25, %v2006_v59  ;;  %v2713_v25 = vld [vmem:[%s8694_s7 + $0x8] sm:$0xff]  ;;  %v2728_v7 = vld [vmem:[%s8694_s7 + $0x80] sm:$0xff] }
 0x84c   :  { %v7865_v50 = vmul.f32 %v5335_v44, %v7147_v10  ;;  %v7871_v57 = vmul.f32 %v5334_v3, %v7147_v10  ;;  %v7876_v44 = vadd.f32 %v2327_v9, %v2021_v22  ;;  %v1988_v10 = vmul.f32 %v5324_v31, %v7110_v24  ;;  %v2729_v18 = vld [vmem:[%s8694_s7 + $0x88] sm:$0xff] }
 0x84d   :  { %v5329_v3 = vunpack.i.l.bf16 %v7868_v20  ;;  %v7883_v11 = vadd.f32 %v2329_v60, %v2023_v54  ;;  %v7900_v26 = vadd.f32 %v1989_v14, %v1647_v47 }
 0x84e   :  { %8726 = vst [vmem:[#allocation18_spill] sm:$0xff] %v7865_v50  ;;  %v2007_v50 = vadd.f32 %v1971_v5, %v1629_v41  ;;  %v2712_v41 = vld [vmem:[%s8694_s7] sm:$0xff]  ;;  %v7902_v48 = vadd.f32 %v1988_v10, %v1646_v17  ;;  %v2715_v10 = vld [vmem:[%s8694_s7 + $0x18] sm:$0xff] }
 0x84f   :  { %v7905_v29 = vmul.f32 %v5329_v3, %v7421_v45 }
 0x850   :  { %v7917_v14 = vadd.f32 %v7849_v39, %v2007_v50 }
 0x896   :  { %v5343_v21 = vpop.permute.xlu0 %5342  ;;  %v5338_v0 = vpop.permute.xlu1 %5337 }
 0x897   :  { %v5345_v46 = vunpack.i.h.bf16 %v5343_v21  ;;  %v5344_v6 = vunpack.i.l.bf16 %v5343_v21  ;;  %v5340_v23 = vunpack.i.h.bf16 %v5338_v0  ;;  %v5339_v43 = vunpack.i.l.bf16 %v5338_v0 }
 0x899   :  { %v2641_v63 = vmul.f32 %v5345_v46, %v7832_v42  ;;  %v2640_v62 = vmul.f32 %v5344_v6, %v7832_v42  ;;  %v2657_v34 = vmul.f32 %v5340_v23, %v7832_v42  ;;  %v2656_v37 = vmul.f32 %v5339_v43, %v7832_v42  ;;  %v2730_v23 = vld [vmem:[%s8694_s7 + $0x90] sm:$0xff] }
 0x89a   :  { %v5348_v9 = vpop.permute.xlu1 %5347 }
 0x89b   :  { %v2676_v47 = vadd.f32 %v2640_v62, %v7428_v30  ;;  %v2677_v17 = vadd.f32 %v2641_v63, %v7431_v27  ;;  %v2692_v5 = vadd.f32 %v2656_v37, %v7464_v13  ;;  %v2693_v15 = vadd.f32 %v2657_v34, %v7466_v19  ;;  %v5353_v36 = vpop.permute.xlu0 %5352  ;;  %v2714_v19 = vld [vmem:[%s8694_s7 + $0x10] sm:$0xff] }
 0x89c   :  { %v5355_v31 = vunpack.i.h.bf16 %v5353_v36  ;;  %v5354_v22 = vunpack.i.l.bf16 %v5353_v36  ;;  %v5350_v33 = vunpack.i.h.bf16 %v5348_v9  ;;  %v5349_v40 = vunpack.i.l.bf16 %v5348_v9 }
 0x89d   :  { %v2748_v61 = vmul.f32 %v2712_v41, %v2676_v47  ;;  %v2749_v59 = vmul.f32 %v2713_v25, %v2677_v17  ;;  %v2764_v60 = vmul.f32 %v2728_v7, %v2692_v5  ;;  %v2765_v54 = vmul.f32 %v2729_v18, %v2693_v15 }
 0x89e   :  { %v2643_v39 = vmul.f32 %v5355_v31, %v7832_v42  ;;  %v2642_v50 = vmul.f32 %v5354_v22, %v7832_v42  ;;  %v2659_v30 = vmul.f32 %v5350_v33, %v7832_v42  ;;  %v2658_v27 = vmul.f32 %v5349_v40, %v7832_v42  ;;  %v5358_v13 = vpop.permute.xlu1 %5357 }
 0x89f   :  { %v5363_v3 = vpop.permute.xlu0 %5362  ;;  %v5360_v21 = vunpack.i.h.bf16 %v5358_v13  ;;  %v5359_v0 = vunpack.i.l.bf16 %v5358_v13  ;;  %v4757_v46 = vpack.c.bf16 %v2765_v54, %v2764_v60  ;;  %v4759_v6 = vpack.c.bf16 %v2749_v59, %v2748_v61 }
 0x8a0   :  { %v2678_v43 = vadd.f32 %v2642_v50, %v7608_v56  ;;  %v2679_v41 = vadd.f32 %v2643_v39, %v7611_v8  ;;  %v2694_v63 = vadd.f32 %v2658_v27, %v7437_v51  ;;  %v2695_v62 = vadd.f32 %v2659_v30, %v7440_v49  ;;  %v2731_v51 = vld [vmem:[%s8694_s7 + $0x98] sm:$0xff] }
 0x8a1   :  { %v5365_v34 = vunpack.i.h.bf16 %v5363_v3  ;;  %v5364_v37 = vunpack.i.l.bf16 %v5363_v3  ;;  %v2661_v25 = vmul.f32 %v5360_v21, %v7832_v42  ;;  %v2660_v9 = vmul.f32 %v5359_v0, %v7832_v42  ;;  %4758 = vmatprep.subr.bf16.mxu1 %v4757_v46  ;;  %4796 = vmatprep.subr.bf16.mxu0 %v4757_v46  ;;  %v2732_v3 = vld [vmem:[%s8694_s7 + $0xa0] sm:$0xff] }
 0x8a2   :  { %v5330_v7 = vunpack.i.h.bf16 %v7868_v20  ;;  %v2750_v18 = vmul.f32 %v2714_v19, %v2678_v43  ;;  %v2751_v47 = vmul.f32 %v2715_v10, %v2679_v41  ;;  %v5368_v17 = vpop.permute.xlu1 %5367  ;;  %4760 = vmatpush3.bf16.msra.mxu1 %v4759_v6  ;;  %4798 = vmatpush3.bf16.msra.mxu0 %v4759_v6  ;;  %v2766_v49 = vmul.f32 %v2730_v23, %v2694_v63  ;;  %v2733_v41 = vld [vmem:[%s8694_s7 + $0xa8] sm:$0xff] }
 0x8a3   :  { %v2645_v56 = vmul.f32 %v5365_v34, %v7832_v42  ;;  %v2644_v8 = vmul.f32 %v5364_v37, %v7832_v42  ;;  %v2696_v5 = vadd.f32 %v2660_v9, %v7498_v35  ;;  %v2697_v15 = vadd.f32 %v2661_v25, %v7500_v2  ;;  %v5373_v36 = vpop.permute.xlu0 %5372  ;;  %v8727_v37 = vld [vmem:[#allocation11_spill] sm:$0xff] }
 0x8a4   :  { %v5375_v20 = vunpack.i.h.bf16 %v5373_v36  ;;  %v5374_v31 = vunpack.i.l.bf16 %v5373_v36  ;;  %v5370_v22 = vunpack.i.h.bf16 %v5368_v17  ;;  %v5369_v33 = vunpack.i.l.bf16 %v5368_v17 }
 0x8a5   :  { %v2680_v40 = vadd.f32 %v2644_v8, %v7616_v58  ;;  %v2681_v61 = vadd.f32 %v2645_v56, %v7619_v1  ;;  %v2767_v59 = vmul.f32 %v2731_v51, %v2695_v62  ;;  %v4763_v60 = vpack.c.bf16 %v2751_v47, %v2750_v18  ;;  %v2716_v58 = vld [vmem:[%s8694_s7 + $0x20] sm:$0xff]  ;;  %v2717_v1 = vld [vmem:[%s8694_s7 + $0x28] sm:$0xff]  ;;  %v2719_v18 = vld [vmem:[%s8694_s7 + $0x38] sm:$0xff] }
 0x8a6   :  { %v2647_v54 = vmul.f32 %v5375_v20, %v7832_v42  ;;  %v2646_v39 = vmul.f32 %v5374_v31, %v7832_v42  ;;  %v2663_v50 = vmul.f32 %v5370_v22, %v7832_v42  ;;  %v2662_v35 = vmul.f32 %v5369_v33, %v7832_v42  ;;  %v5378_v2 = vpop.permute.xlu1 %5377  ;;  %v8728_v56 = vld [vmem:[#allocation12_spill] sm:$0xff]  ;;  %v8730_v20 = vld [vmem:[#allocation10_spill] sm:$0xff] }
 0x8a7   :  { %v7957_v30 = vmul.f32 %v5330_v7, %v7421_v45  ;;  %v7961_v27 = vadd.f32 %v7905_v29, %v7902_v48  ;;  %v4761_v13 = vpack.c.bf16 %v2767_v59, %v2766_v49  ;;  %v5383_v19 = vpop.permute.xlu0 %5382  ;;  %v5380_v10 = vunpack.i.h.bf16 %v5378_v2  ;;  %v2718_v7 = vld [vmem:[%s8694_s7 + $0x30] sm:$0xff] }
 0x8a8   :  { %v2682_v21 = vadd.f32 %v2646_v39, %v7624_v55  ;;  %v2683_v48 = vadd.f32 %v2647_v54, %v7627_v4  ;;  %v2698_v29 = vadd.f32 %v2662_v35, %v7535_v38  ;;  %v2699_v0 = vadd.f32 %v2663_v50, %v7538_v53  ;;  %v2720_v35 = vld [vmem:[%s8694_s7 + $0x40] sm:$0xff] }
 0x8a9   :  { %4762 = vmatprep.subr.bf16.mxu1 %v4761_v13  ;;  %4800 = vmatprep.subr.bf16.mxu0 %v4761_v13  ;;  %v5385_v46 = vunpack.i.h.bf16 %v5383_v19  ;;  %v5384_v6 = vunpack.i.l.bf16 %v5383_v19  ;;  %v2665_v23 = vmul.f32 %v5380_v10, %v7832_v42  ;;  %v5379_v43 = vunpack.i.l.bf16 %v5378_v2  ;;  %v2721_v2 = vld [vmem:[%s8694_s7 + $0x48] sm:$0xff]  ;;  %v8731_v19 = vld [vmem:[#allocation16_spill] sm:$0xff] }
 0x8aa   :  { %v2752_v63 = vmul.f32 %v2716_v58, %v2680_v40  ;;  %v2753_v62 = vmul.f32 %v2717_v1, %v2681_v61  ;;  %4764 = vmatpush3.bf16.msra.mxu1 %v4763_v60  ;;  %4802 = vmatpush3.bf16.msra.mxu0 %v4763_v60  ;;  %v2768_v55 = vmul.f32 %v2732_v3, %v2696_v5  ;;  %v5388_v4 = vpop.permute.xlu1 %5387  ;;  %v8729_v5 = vld [vmem:[#allocation13_spill] sm:$0xff]  ;;  %v2735_v60 = vld [vmem:[%s8694_s7 + $0xb8] sm:$0xff] }
 0x8ab   :  { %v2649_v38 = vmul.f32 %v5385_v46, %v7832_v42  ;;  %v2648_v53 = vmul.f32 %v5384_v6, %v7832_v42  ;;  %v2664_v34 = vmul.f32 %v5379_v43, %v7832_v42  ;;  %v2701_v25 = vadd.f32 %v2665_v23, %v8727_v37  ;;  %v5393_v9 = vpop.permute.xlu0 %5392  ;;  %v8732_v3 = vld [vmem:[#allocation17_spill] sm:$0xff]  ;;  %v8734_v23 = vld [vmem:[#allocation14_spill] sm:$0xff] }
 0x8ac   :  { %v2769_v47 = vmul.f32 %v2733_v41, %v2697_v15  ;;  %v5395_v17 = vunpack.i.h.bf16 %v5393_v9  ;;  %v5394_v51 = vunpack.i.l.bf16 %v5393_v9  ;;  %v5390_v49 = vunpack.i.h.bf16 %v5388_v4  ;;  %v2734_v15 = vld [vmem:[%s8694_s7 + $0xb0] sm:$0xff] }
 0x8ad   :  { %v2684_v8 = vadd.f32 %v2648_v53, %v8728_v56  ;;  %v2685_v36 = vadd.f32 %v2649_v38, %v8729_v5  ;;  %v2700_v31 = vadd.f32 %v2664_v34, %v8730_v20  ;;  %v5389_v22 = vunpack.i.l.bf16 %v5388_v4 }
 0x8ae   :  { %v4765_v33 = vpack.c.bf16 %v2769_v47, %v2768_v55  ;;  %v2651_v40 = vmul.f32 %v5395_v17, %v7832_v42  ;;  %v2650_v61 = vmul.f32 %v5394_v51, %v7832_v42  ;;  %v2667_v59 = vmul.f32 %v5390_v49, %v7832_v42  ;;  %v5398_v54 = vpop.permute.xlu1 %5397  ;;  %v2725_v49 = vld [vmem:[%s8694_s7 + $0x68] sm:$0xff] }
 0x8af   :  { %v2754_v39 = vmul.f32 %v2718_v7, %v2682_v21  ;;  %v2755_v50 = vmul.f32 %v2719_v18, %v2683_v48  ;;  %v2666_v58 = vmul.f32 %v5389_v22, %v7832_v42  ;;  %v4767_v1 = vpack.c.bf16 %v2753_v62, %v2752_v63  ;;  %v5403_v13 = vpop.permute.xlu0 %5402  ;;  %v8733_v21 = vld [vmem:[#allocation15_spill] sm:$0xff]  ;;  %v2736_v63 = vld [vmem:[%s8694_s7 + $0xc0] sm:$0xff]  ;;  %v2737_v62 = vld [vmem:[%s8694_s7 + $0xc8] sm:$0xff] }
 0x8b0   :  { %4766 = vmatprep.subr.bf16.mxu1 %v4765_v33  ;;  %4804 = vmatprep.subr.bf16.mxu0 %v4765_v33  ;;  %v2686_v10 = vadd.f32 %v2650_v61, %v8731_v19  ;;  %v2687_v46 = vadd.f32 %v2651_v40, %v8732_v3  ;;  %v2703_v48 = vadd.f32 %v2667_v59, %v8733_v21  ;;  %v5405_v6 = vunpack.i.h.bf16 %v5403_v13  ;;  %v2738_v61 = vld [vmem:[%s8694_s7 + $0xd0] sm:$0xff] }
 0x8b1   :  { %v2702_v43 = vadd.f32 %v2666_v58, %v8734_v23  ;;  %4768 = vmatpush3.bf16.msra.mxu1 %v4767_v1  ;;  %4806 = vmatpush3.bf16.msra.mxu0 %v4767_v1  ;;  %v2770_v41 = vmul.f32 %v2734_v15, %v2698_v29  ;;  %v2771_v55 = vmul.f32 %v2735_v60, %v2699_v0  ;;  %v5404_v4 = vunpack.i.l.bf16 %v5403_v13  ;;  %v2722_v29 = vld [vmem:[%s8694_s7 + $0x50] sm:$0xff]  ;;  %v2723_v0 = vld [vmem:[%s8694_s7 + $0x58] sm:$0xff] }
 0x8b2   :  { %v2756_v38 = vmul.f32 %v2720_v35, %v2684_v8  ;;  %v2757_v53 = vmul.f32 %v2721_v2, %v2685_v36  ;;  %v2653_v34 = vmul.f32 %v5405_v6, %v7832_v42  ;;  %v5400_v37 = vunpack.i.h.bf16 %v5398_v54  ;;  %v5408_v9 = vpop.permute.xlu1 %5407  ;;  %v2724_v35 = vld [vmem:[%s8694_s7 + $0x60] sm:$0xff] }
 0x8b3   :  { %v4769_v7 = vpack.c.bf16 %v2771_v55, %v2770_v41  ;;  %v2652_v18 = vmul.f32 %v5404_v4, %v7832_v42  ;;  %v5399_v47 = vunpack.i.l.bf16 %v5398_v54  ;;  %v4771_v17 = vpack.c.bf16 %v2755_v50, %v2754_v39  ;;  %v5418_v51 = vpop.permute.xlu0 %5417  ;;  %v2741_v55 = vld [vmem:[%s8694_s7 + $0xe8] sm:$0xff] }
 0x8b4   :  { %v2689_v56 = vadd.f32 %v2653_v34, %v7889_v32  ;;  %v2669_v8 = vmul.f32 %v5400_v37, %v7832_v42  ;;  %v2772_v5 = vmul.f32 %v2736_v63, %v2700_v31  ;;  %v2773_v36 = vmul.f32 %v2737_v62, %v2701_v25  ;;  %v2727_v63 = vld [vmem:[%s8694_s7 + $0x78] sm:$0xff]  ;;  %v2745_v37 = vld [vmem:[%s8694_s7 + $0x108] sm:$0xff] }
 0x8b5   :  { %v2367_v20 = vadd.f32 %v7957_v30, %v7900_v26  ;;  %4770 = vmatprep.subr.bf16.mxu1 %v4769_v7  ;;  %4808 = vmatprep.subr.bf16.mxu0 %v4769_v7  ;;  %v2668_v22 = vmul.f32 %v5399_v47, %v7832_v42  ;;  %v5420_v33 = vunpack.i.h.bf16 %v5418_v51  ;;  %v5419_v40 = vunpack.i.l.bf16 %v5418_v51  ;;  %v2739_v26 = vld [vmem:[%s8694_s7 + $0xd8] sm:$0xff]  ;;  %v2742_v51 = vld [vmem:[%s8694_s7 + $0xf0] sm:$0xff] }
 0x8b6   :  { %v2758_v59 = vmul.f32 %v2722_v29, %v2686_v10  ;;  %v2759_v15 = vmul.f32 %v2723_v0, %v2687_v46  ;;  %4772 = vmatpush3.bf16.msra.mxu1 %v4771_v17  ;;  %4810 = vmatpush3.bf16.msra.mxu0 %v4771_v17  ;;  %v4773_v32 = vpack.c.bf16 %v2773_v36, %v2772_v5  ;;  %v5410_v31 = vunpack.i.h.bf16 %v5408_v9  ;;  %v5413_v30 = vpop.permute.xlu1 %5412 }
 0x8b7   :  { %v2688_v25 = vadd.f32 %v2652_v18, %v7886_v28  ;;  %v2761_v60 = vmul.f32 %v2725_v49, %v2689_v56  ;;  %v2655_v54 = vmul.f32 %v5420_v33, %v7832_v42  ;;  %v2654_v39 = vmul.f32 %v5419_v40, %v7832_v42  ;;  %v5423_v50 = vpop.permute.xlu0 %5422 }
 0x8b8   :  { %v2705_v2 = vadd.f32 %v2669_v8, %v7876_v44  ;;  %4774 = vmatprep.subr.bf16.mxu1 %v4773_v32  ;;  %4812 = vmatprep.subr.bf16.mxu0 %v4773_v32  ;;  %v5409_v58 = vunpack.i.l.bf16 %v5408_v9  ;;  %v4775_v1 = vpack.c.bf16 %v2757_v53, %v2756_v38  ;;  %v2774_v13 = vmul.f32 %v2738_v61, %v2702_v43  ;;  %v2740_v44 = vld [vmem:[%s8694_s7 + $0xe0] sm:$0xff]  ;;  %v8735_v8 = vld [vmem:[#allocation18_spill] sm:$0xff] }
 0x8b9   :  { %v2704_v19 = vadd.f32 %v2668_v22, %v7874_v12  ;;  %v2671_v28 = vmul.f32 %v5410_v31, %v7832_v42  ;;  %v2775_v10 = vmul.f32 %v2739_v26, %v2703_v48  ;;  %v5425_v3 = vunpack.i.h.bf16 %v5423_v50  ;;  %v2726_v12 = vld [vmem:[%s8694_s7 + $0x70] sm:$0xff] }
 0x8ba   :  { %v2690_v46 = vadd.f32 %v2654_v39, %v7891_v52  ;;  %v2670_v21 = vmul.f32 %v5409_v58, %v7832_v42  ;;  %4776 = vmatpush3.bf16.msra.mxu1 %v4775_v1  ;;  %4814 = vmatpush3.bf16.msra.mxu0 %v4775_v1  ;;  %v5424_v6 = vunpack.i.l.bf16 %v5423_v50  ;;  %v5415_v23 = vunpack.i.h.bf16 %v5413_v30  ;;  %v2747_v50 = vld [vmem:[%s8694_s7 + $0x118] sm:$0xff]  ;;  %v3157_v58 = vld [vmem:[%s8697_s10 + $0x8] sm:$0xff] }
 0x8bb   :  { %v2760_v41 = vmul.f32 %v2724_v35, %v2688_v25  ;;  %v2691_v48 = vadd.f32 %v2655_v54, %v7917_v14  ;;  %v4777_v43 = vpack.c.bf16 %v2775_v10, %v2774_v13  ;;  %v2673_v52 = vmul.f32 %v5425_v3, %v7832_v42  ;;  %v5433_v4 = vpop.permute.xlu0 %5432  ;;  %v5428_v14 = vpop.permute.xlu1 %5427  ;;  %v3158_v3 = vld [vmem:[%s8697_s10 + $0x10] sm:$0xff] }
 0x8bc   :  { %v2706_v62 = vadd.f32 %v2670_v21, %v7878_v16  ;;  %v2672_v38 = vmul.f32 %v5424_v6, %v7832_v42  ;;  %v1991_v53 = vmul.f32 %v5415_v23, %v7110_v24  ;;  %v5414_v34 = vunpack.i.l.bf16 %v5413_v30  ;;  %v8737_v21 = vld [vmem:[#allocation7_spill] sm:$0xff]  ;;  %v8738_v6 = vld [vmem:[#allocation8_spill] sm:$0xff] }
 0x8bd   :  { %4778 = vmatprep.subr.bf16.mxu1 %v4777_v43  ;;  %4816 = vmatprep.subr.bf16.mxu0 %v4777_v43  ;;  %v2709_v9 = vadd.f32 %v2673_v52, %v2367_v20  ;;  %v4779_v29 = vpack.c.bf16 %v2759_v15, %v2758_v59  ;;  %v2776_v0 = vmul.f32 %v2740_v44, %v2704_v19  ;;  %v5435_v7 = vunpack.i.h.bf16 %v5433_v4  ;;  %v2743_v20 = vld [vmem:[%s8694_s7 + $0xf8] sm:$0xff]  ;;  %v8740_v52 = vld [vmem:[#allocation6_spill] sm:$0xff] }
 0x8be   :  { %v2762_v18 = vmul.f32 %v2726_v12, %v2690_v46  ;;  %v2707_v47 = vadd.f32 %v2671_v28, %v7883_v11  ;;  %v1990_v16 = vmul.f32 %v5414_v34, %v7110_v24  ;;  %v2777_v17 = vmul.f32 %v2741_v55, %v2705_v2  ;;  %v2744_v24 = vld [vmem:[%s8694_s7 + $0x100] sm:$0xff]  ;;  %v3159_v46 = vld [vmem:[%s8697_s10 + $0x18] sm:$0xff] }
 0x8bf   :  { %v2763_v49 = vmul.f32 %v2727_v63, %v2691_v48  ;;  %v2708_v56 = vadd.f32 %v2672_v38, %v7961_v27  ;;  %v2027_v5 = vadd.f32 %v1991_v53, %v8735_v8  ;;  %4780 = vmatpush3.bf16.msra.mxu1 %v4779_v29  ;;  %4818 = vmatpush3.bf16.msra.mxu0 %v4779_v29  ;;  %v5430_v36 = vunpack.i.h.bf16 %v5428_v14  ;;  %v3160_v12 = vld [vmem:[%s8697_s10 + $0x20] sm:$0xff]  ;;  %v3161_v48 = vld [vmem:[%s8697_s10 + $0x28] sm:$0xff]  ;;  %v3073_v38 = vld [vmem:[%s8696_s9 + $0x18] sm:$0xff] }
 0x8c0   :  { %v2781_v11 = vmul.f32 %v2745_v37, %v2709_v9  ;;  %v4781_v22 = vpack.c.bf16 %v2777_v17, %v2776_v0  ;;  %v5434_v33 = vunpack.i.l.bf16 %v5433_v4  ;;  %v5429_v40 = vunpack.i.l.bf16 %v5428_v14  ;;  %v3070_v55 = vld [vmem:[%s8696_s9] sm:$0xff]  ;;  %v3071_v4 = vld [vmem:[%s8696_s9 + $0x8] sm:$0xff]  ;;  %v3076_v29 = vld [vmem:[%s8696_s9 + $0x30] sm:$0xff] }
 0x8c1   :  { %v2675_v61 = vmul.f32 %v5435_v7, %v7832_v42  ;;  %v2333_v27 = vmul.f32 %v5430_v36, %v7421_v45  ;;  %v4783_v59 = vpack.c.bf16 %v2761_v60, %v2760_v41  ;;  %v2778_v15 = vmul.f32 %v2742_v51, %v2706_v62  ;;  %v3072_v62 = vld [vmem:[%s8696_s9 + $0x10] sm:$0xff]  ;;  %v8741_v53 = vld [vmem:[#allocation9_spill] sm:$0xff]  ;;  %v3075_v37 = vld [vmem:[%s8696_s9 + $0x28] sm:$0xff] }
 0x8c2   :  { %v2026_v32 = vadd.f32 %v1990_v16, %v7871_v57  ;;  %4782 = vmatprep.subr.bf16.mxu1 %v4781_v22  ;;  %4820 = vmatprep.subr.bf16.mxu0 %v4781_v22  ;;  %v2332_v31 = vmul.f32 %v5429_v40, %v7421_v45  ;;  %v2779_v26 = vmul.f32 %v2743_v20, %v2707_v47  ;;  %v2746_v57 = vld [vmem:[%s8694_s7 + $0x110] sm:$0xff]  ;;  %v3156_v45 = vld [vmem:[%s8697_s10] sm:$0xff]  ;;  %v8736_v28 = vmov 0.0|0.0   ;;  %v3077_v0 = vld [vmem:[%s8696_s9 + $0x38] sm:$0xff] }
 0x8c3   :  { %v2780_v30 = vmul.f32 %v2744_v24, %v2708_v56  ;;  %v2369_v25 = vadd.f32 %v2333_v27, %v2027_v5  ;;  %4784 = vmatpush3.bf16.msra.mxu1 %v4783_v59  ;;  %4822 = vmatpush3.bf16.msra.mxu0 %v4783_v59  ;;  %v4787_v54 = vpack.c.bf16 %v2763_v49, %v2762_v18  ;;  %v8739_v44 = vmov 0.0   ;;  %v3074_v14 = vld [vmem:[%s8696_s9 + $0x20] sm:$0xff]  ;;  %v3079_v47 = vld [vmem:[%s8696_s9 + $0x48] sm:$0xff]  ;;  %v3080_v17 = vld [vmem:[%s8696_s9 + $0x50] sm:$0xff] }
 0x8c4   :  { %v2674_v39 = vmul.f32 %v5434_v33, %v7832_v42  ;;  %v2368_v60 = vadd.f32 %v2332_v31, %v2026_v32  ;;  %v4785_v35 = vpack.c.bf16 %v2779_v26, %v2778_v15  ;;  %v8104_v10 = vpack.c.bf16 %v3157_v58, %v3156_v45  ;;  %v3078_v18 = vld [vmem:[%s8696_s9 + $0x40] sm:$0xff]  ;;  %v3081_v51 = vld [vmem:[%s8696_s9 + $0x58] sm:$0xff]  ;;  %v3162_v56 = vld [vmem:[%s8697_s10 + $0x30] sm:$0xff] }
 0x8c5   :  { %v2711_v2 = vadd.f32 %v2675_v61, %v2369_v25  ;;  %v4790_v13 = vpack.c.bf16 %v2781_v11, %v2780_v30  ;;  %v8118_v41 = vpack.c.bf16 %v3159_v46, %v3158_v3  ;;  %v8131_v43 = vpack.c.bf16 %v3161_v48, %v3160_v12  ;;  %v3163_v8 = vld [vmem:[%s8697_s10 + $0x38] sm:$0xff]  ;;  %v3082_v5 = vld [vmem:[%s8696_s9 + $0x60] sm:$0xff]  ;;  %v3083_v20 = vld [vmem:[%s8696_s9 + $0x68] sm:$0xff] }
 0x8c6   :  { %v2710_v42 = vadd.f32 %v2674_v39, %v2368_v60  ;;  %4786 = vmatprep.subr.bf16.mxu1 %v4785_v35  ;;  %4824 = vmatprep.subr.bf16.mxu0 %v4785_v35  ;;  %v8147_v63 = vpack.c.bf16 %v3071_v4, %v3070_v55  ;;  %v8159_v34 = vpack.c.bf16 %v3073_v38, %v3072_v62  ;;  %v3164_v24 = vld [vmem:[%s8697_s10 + $0x40] sm:$0xff]  ;;  %v3165_v11 = vld [vmem:[%s8697_s10 + $0x48] sm:$0xff]  ;;  %v3084_v33 = vld [vmem:[%s8696_s9 + $0x70] sm:$0xff] }
 0x8c7   :  { %v2783_v1 = vmul.f32 %v2747_v50, %v2711_v2  ;;  %4788 = vmatpush3.bf16.msra.mxu1 %v4787_v54  ;;  %4826 = vmatpush3.bf16.msra.mxu0 %v4787_v54  ;;  %v8171_v9 = vpack.c.bf16 %v3075_v37, %v3074_v14  ;;  %v8181_v7 = vpack.c.bf16 %v3077_v0, %v3076_v29  ;;  %v3085_v40 = vld [vmem:[%s8696_s9 + $0x78] sm:$0xff]  ;;  %v3166_v59 = vld [vmem:[%s8697_s10 + $0x50] sm:$0xff]  ;;  %v3168_v31 = vld [vmem:[%s8697_s10 + $0x60] sm:$0xff] }
 0x8c8   :  { %v2782_v19 = vmul.f32 %v2746_v57, %v2710_v42  ;;  %4789 = vmatprep.subr.bf16.mxu1 %v8736_v28  ;;  %4857 = vmatprep.subr.bf16.mxu0 %v8736_v28  ;;  %v8191_v16 = vpack.c.bf16 %v3079_v47, %v3078_v18  ;;  %v4849_v49 = vpack.c.bf16 %v3081_v51, %v3080_v17  ;;  %v3167_v15 = vld [vmem:[%s8697_s10 + $0x58] sm:$0xff]  ;;  %v3169_v26 = vld [vmem:[%s8697_s10 + $0x68] sm:$0xff]  ;;  %v3170_v25 = vld [vmem:[%s8697_s10 + $0x70] sm:$0xff] }
 0x8c9   :  { %v8211_v36 = vpack.c.bf16 %v3163_v8, %v3162_v56  ;;  %v4852_v22 = vpack.c.bf16 %v3083_v20, %v3082_v5  ;;  %v8230_v61 = vpack.c.bf16 %v3165_v11, %v3164_v24  ;;  %v4855_v27 = vpack.c.bf16 %v3085_v40, %v3084_v33  ;;  %v3171_v54 = vld [vmem:[%s8697_s10 + $0x78] sm:$0xff]  ;;  %v3452_v46 = vld [vmem:[%s8699_s12 + $0x28] sm:$0xff]  ;;  %v3463_v38 = vld [vmem:[%s8699_s12 + $0x80] sm:$0xff] }
 0x8ca   :  { %2852 = vmatmul.mubr.f32.vlgmr.msra.gmra.mrb[12].mxu1 %v8737_v21  ;;  %2995 = vmatmul.mubr.f32.vlgmr.msra.gmra.mrb[6].mxu0 %v8738_v6  ;;  %v4793_v23 = vpack.c.bf16 %v2783_v1, %v2782_v19  ;;  %v4873_v32 = vpack.c.bf16 %v3167_v15, %v3166_v59  ;;  %v4876_v30 = vpack.c.bf16 %v3169_v26, %v3168_v31  ;;  %v3447_v21 = vld [vmem:[%s8699_s12] sm:$0xff]  ;;  %v3464_v55 = vld [vmem:[%s8699_s12 + $0x88] sm:$0xff] }
 0x8cb   :  { %4791 = vmatpush3.bf16.msra.mxu1 %v4790_v13  ;;  %4181 = vmatprep.mubr.msk.f32.mxu1 %vm5483_vm0, %v8739_v44  ;;  %v4879_v39 = vpack.c.bf16 %v3171_v54, %v3170_v25  ;;  %v3468_v4 = vld [vmem:[%s8699_s12 + $0xa8] sm:$0xff]  ;;  %v3471_v29 = vld [vmem:[%s8699_s12 + $0xc0] sm:$0xff]  ;;  %v3450_v25 = vld [vmem:[%s8699_s12 + $0x18] sm:$0xff] }
 0x8cc   :  { %4792 = vmatprep.subr.bf16.mxu1 %v8736_v28  ;;  %4859 = vmatpush3.bf16.msra.mxu0 %v8104_v10  ;;  %v4937_v62 = vpack.c.bf16 %v3468_v4, %v3464_v55  ;;  %v3476_v14 = vld [vmem:[%s8699_s12 + $0xe8] sm:$0xff]  ;;  %v3475_v0 = vld [vmem:[%s8699_s12 + $0xe0] sm:$0xff]  ;;  %v3454_v54 = vld [vmem:[%s8699_s12 + $0x38] sm:$0xff] }
 0x8cd   :  { %4860 = vmatprep.subr.bf16.mxu0 %v8736_v28  ;;  %4262 = vmatprep.mubr.msk.f32.mxu0 %vm5483_vm0, %v8739_v44  ;;  %v3484_v18 = vld [vmem:[%s8699_s12 + $0x128] sm:$0xff]  ;;  %v4943_v47 = vpack.c.bf16 %v3475_v0, %v3471_v29  ;;  %v3479_v17 = vld [vmem:[%s8699_s12 + $0x100] sm:$0xff]  ;;  %v3490_v29 = vld [vmem:[%s8699_s12 + $0x158] sm:$0xff] }
 0x8ce   :  { %v3483_v51 = vld [vmem:[%s8699_s12 + $0x120] sm:$0xff]  ;;  %v3492_v56 = vld [vmem:[%s8699_s12 + $0x168] sm:$0xff]  ;;  %v3494_v0 = vld [vmem:[%s8699_s12 + $0x178] sm:$0xff] }
 0x8cf   :  { %4794 = vmatpush3.bf16.msra.mxu1 %v4793_v23  ;;  %v4947_v8 = vpack.c.bf16 %v3483_v51, %v3479_v17  ;;  %v3491_v20 = vld [vmem:[%s8699_s12 + $0x160] sm:$0xff]  ;;  %v3496_v24 = vld [vmem:[%s8699_s12 + $0x188] sm:$0xff]  ;;  %v3498_v17 = vld [vmem:[%s8699_s12 + $0x198] sm:$0xff] }
 0x8d0   :  { %4827 = vmatprep.subr.bf16.mxu1 %v8736_v28  ;;  %4862 = vmatpush3.bf16.msra.mxu0 %v8118_v41  ;;  %v3500_v11 = vld [vmem:[%s8699_s12 + $0x1a8] sm:$0xff]  ;;  %v3495_v40 = vld [vmem:[%s8699_s12 + $0x180] sm:$0xff]  ;;  %v3502_v51 = vld [vmem:[%s8699_s12 + $0x1b8] sm:$0xff] }
 0x8d1   :  { %4863 = vmatprep.subr.bf16.mxu0 %v8736_v28  ;;  %v4953_v33 = vpack.c.bf16 %v3500_v11, %v3496_v24  ;;  %v3508_v59 = vld [vmem:[%s8699_s12 + $0x1e8] sm:$0xff]  ;;  %v3503_v31 = vld [vmem:[%s8699_s12 + $0x1c0] sm:$0xff] }
 0x8d2   :  { %4182 = vmatmul.mubr.msk.f32.vlgmr.msra.gmra.mrb[14].mxu1 %vm1122_vm6, %v8740_v52  ;;  %v3459_v52 = vld [vmem:[%s8699_s12 + $0x60] sm:$0xff] }
 0x8d3   :  { %4829 = vmatpush3.bf16.msra.mxu1 %v4790_v13  ;;  %4192 = vmatprep.mubr.msk.f32.mxu1 %vm5483_vm0, %v8739_v44  ;;  %v3507_v26 = vld [vmem:[%s8699_s12 + $0x1e0] sm:$0xff] }
 0x8d4   :  { %4830 = vmatprep.subr.bf16.mxu1 %v8736_v28  ;;  %4865 = vmatpush3.bf16.msra.mxu0 %v8131_v43 }
 0x8d5   :  { %4866 = vmatprep.subr.bf16.mxu0 %v8736_v28 }
 0x8d7   :  { %4832 = vmatpush3.bf16.msra.mxu1 %v4793_v23  ;;  %v3451_v23 = vld [vmem:[%s8699_s12 + $0x20] sm:$0xff] }
 0x8d8   :  { %4833 = vmatprep.subr.bf16.mxu1 %v8736_v28  ;;  %4868 = vmatpush3.bf16.msra.mxu0 %v8211_v36  ;;  %v4931_v12 = vpack.c.bf16 %v3451_v23, %v3447_v21  ;;  %v3466_v21 = vld [vmem:[%s8699_s12 + $0x98] sm:$0xff] }
 0x8d9   :  { %4869 = vmatprep.subr.bf16.mxu0 %v8736_v28 }
 0x8da   :  { %4193 = vmatmul.mubr.msk.f32.vlgmr.msra.gmra.mrb[16].mxu1 %vm1122_vm6, %v8741_v53  ;;  %v3467_v53 = vld [vmem:[%s8699_s12 + $0xa0] sm:$0xff] }
 0x8db   :  { %4835 = vmatpush3.bf16.msra.mxu1 %v8147_v63  ;;  %4227 = vmatprep.mubr.msk.f32.mxu1 %vm5483_vm0, %v8739_v44  ;;  %v4939_v37 = vpack.c.bf16 %v3467_v53, %v3463_v38  ;;  %v3482_v38 = vld [vmem:[%s8699_s12 + $0x118] sm:$0xff] }
 0x8dc   :  { %4836 = vmatprep.subr.bf16.mxu1 %v8736_v28  ;;  %4871 = vmatpush3.bf16.msra.mxu0 %v8230_v61  ;;  %v3486_v53 = vld [vmem:[%s8699_s12 + $0x138] sm:$0xff] }
 0x8dd   :  { %4872 = vmatprep.subr.bf16.mxu0 %v8736_v28 }
 0x8df   :  { %4838 = vmatpush3.bf16.msra.mxu1 %v8159_v34 }
 0x8e0   :  { %4839 = vmatprep.subr.bf16.mxu1 %v8736_v28  ;;  %4874 = vmatpush3.bf16.msra.mxu0 %v4873_v32 }
 0x8e1   :  { %4875 = vmatprep.subr.bf16.mxu0 %v8736_v28 }
 0x8e3   :  { %4841 = vmatpush3.bf16.msra.mxu1 %v8171_v9 }
 0x8e4   :  { %4842 = vmatprep.subr.bf16.mxu1 %v8736_v28  ;;  %4877 = vmatpush3.bf16.msra.mxu0 %v4876_v30 }
 0x8e5   :  { %4878 = vmatprep.subr.bf16.mxu0 %v8736_v28 }
 0x8e7   :  { %4844 = vmatpush3.bf16.msra.mxu1 %v8181_v7 }
 0x8e8   :  { %4845 = vmatprep.subr.bf16.mxu1 %v8736_v28  ;;  %4880 = vmatpush3.bf16.msra.mxu0 %v4879_v39 }
 0x8eb   :  { %4847 = vmatpush3.bf16.msra.mxu1 %v8191_v16 }
 0x8ec   :  { %4848 = vmatprep.subr.bf16.mxu1 %v8736_v28 }
 0x8ef   :  { %4850 = vmatpush3.bf16.msra.mxu1 %v4849_v49 }
 0x8f0   :  { %4851 = vmatprep.subr.bf16.mxu1 %v8736_v28 }
 0x8f3   :  { %4853 = vmatpush3.bf16.msra.mxu1 %v4852_v22 }
 0x8f4   :  { %4854 = vmatprep.subr.bf16.mxu1 %v8736_v28 }
 0x8f7   :  { %4856 = vmatpush3.bf16.msra.mxu1 %v4855_v27 }
 0x8f8   :  { %4881 = vmatprep.subr.bf16.mxu1 %v8736_v28 }
 0x99d   :  { %v4041_v50 = vpop.f32.mrb[12].mxu1  ;;  %v4081_v60 = vpop.f32.mrb[6].mxu0 }
 0x99e   :  { %v4042_v35 = vpop.f32.mrb[13].mxu1  ;;  %v4082_v57 = vpop.f32.mrb[7].mxu0 }
 0x99f   :  { %v4043_v2 = vadd.f32 %v4042_v35, %v4041_v50  ;;  %v4083_v45 = vadd.f32 %v4082_v57, %v4081_v60 }
 0x9a5   :  { %v2923_v58 = vpop.f32.mrb[14].mxu1 }
 0x9a6   :  { %v2924_v42 = vadd.f32 %v4043_v2, %v2923_v58  ;;  %v4183_v1 = vpop.f32.mrb[15].mxu1  ;;  %v3453_v58 = vld [vmem:[%s8699_s12 + $0x30] sm:$0xff] }
 0x9a7   :  { %v3462_v1 = vld [vmem:[%s8699_s12 + $0x78] sm:$0xff] }
 0x9a8   :  { %4228 = vmatmul.mubr.f32.vlgmr.msra.gmra.mrb[18].mxu1 %v2924_v42 }
 0x9a9   :  { %4883 = vmatpush3.bf16.msra.mxu1 %v8147_v63  ;;  %4297 = vmatprep.mubr.msk.f32.mxu1 %vm5483_vm0, %v8739_v44 }
 0x9aa   :  { %4884 = vmatprep.subr.bf16.mxu1 %v8736_v28 }
 0x9ad   :  { %4886 = vmatpush3.bf16.msra.mxu1 %v8159_v34  ;;  %v3066_v13 = vpop.f32.mrb[16].mxu1  ;;  %v3472_v34 = vld [vmem:[%s8699_s12 + $0xc8] sm:$0xff] }
 0x9ae   :  { %v3067_v19 = vadd.f32 %v4083_v45, %v3066_v13  ;;  %v4194_v3 = vpop.f32.mrb[17].mxu1  ;;  %4887 = vmatprep.subr.bf16.mxu1 %v8736_v28  ;;  %v3449_v45 = vld [vmem:[%s8699_s12 + $0x10] sm:$0xff] }
 0x9af   :  { %v4963_v13 = vpack.c.bf16 %v3453_v58, %v3449_v45  ;;  %v3457_v3 = vld [vmem:[%s8699_s12 + $0x50] sm:$0xff]  ;;  %v3399_v45 = vld [vmem:[%s8698_s11 + $0x80] sm:$0xff] }
 0x9b0   :  { %4263 = vmatmul.mubr.f32.vlgmr.msra.gmra.mrb[8].mxu0 %v3067_v19  ;;  %v3403_v58 = vld [vmem:[%s8698_s11 + $0xa0] sm:$0xff] }
 0x9b1   :  { %4889 = vmatpush3.bf16.msra.mxu1 %v8171_v9  ;;  %3575 = vmatprep.mubr.f32.mxu0 %v8739_v44  ;;  %v4941_v9 = vpack.c.bf16 %v3476_v14, %v3472_v34  ;;  %v4977_v14 = vpack.c.bf16 %v3486_v53, %v3482_v38 }
 0x9b2   :  { %4890 = vmatprep.subr.bf16.mxu1 %v8736_v28 }
 0x9b5   :  { %4892 = vmatpush3.bf16.msra.mxu1 %v8181_v7  ;;  %v3480_v7 = vld [vmem:[%s8699_s12 + $0x108] sm:$0xff] }
 0x9b6   :  { %4893 = vmatprep.subr.bf16.mxu1 %v8736_v28 }
 0x9b9   :  { %4895 = vmatpush3.bf16.msra.mxu1 %v8191_v16  ;;  %v4945_v16 = vpack.c.bf16 %v3484_v18, %v3480_v7  ;;  %v4981_v18 = vpack.c.bf16 %v3494_v0, %v3490_v29 }
 0x9ba   :  { %4896 = vmatprep.subr.bf16.mxu1 %v8736_v28 }
 0x9bd   :  { %4898 = vmatpush3.bf16.msra.mxu1 %v4849_v49  ;;  %v3488_v49 = vld [vmem:[%s8699_s12 + $0x148] sm:$0xff] }
 0x9be   :  { %4899 = vmatprep.subr.bf16.mxu1 %v8736_v28  ;;  %v4949_v5 = vpack.c.bf16 %v3492_v56, %v3488_v49  ;;  %v4985_v56 = vpack.c.bf16 %v3502_v51, %v3498_v17 }
 0x9c1   :  { %4901 = vmatpush3.bf16.msra.mxu1 %v4852_v22 }
 0x9c2   :  { %4902 = vmatprep.subr.bf16.mxu1 %v8736_v28 }
 0x9c5   :  { %4904 = vmatpush3.bf16.msra.mxu1 %v4855_v27  ;;  %v3504_v27 = vld [vmem:[%s8699_s12 + $0x1c8] sm:$0xff] }
 0x9c6   :  { %4905 = vmatprep.subr.bf16.mxu1 %v8736_v28 }
 0x9c8   :  { %4298 = vmatmul.mubr.f32.vlgmr.msra.gmra.mrb[20].mxu1 %v3067_v19 }
 0x9c9   :  { %4907 = vmatpush3.bf16.msra.mxu1 %v8104_v10  ;;  %4332 = vmatprep.mubr.msk.f32.mxu1 %vm5483_vm0, %v8739_v44  ;;  %v3448_v10 = vld [vmem:[%s8699_s12 + $0x8] sm:$0xff] }
 0x9ca   :  { %4908 = vmatprep.subr.bf16.mxu1 %v8736_v28  ;;  %v4929_v6 = vpack.c.bf16 %v3452_v46, %v3448_v10  ;;  %v3461_v10 = vld [vmem:[%s8699_s12 + $0x70] sm:$0xff] }
 0x9cc   :  { %4930 = vmatprep.subr.bf16.mxu0 %v4929_v6  ;;  %v3470_v6 = vld [vmem:[%s8699_s12 + $0xb8] sm:$0xff] }
 0x9cd   :  { %4910 = vmatpush3.bf16.msra.mxu1 %v8118_v41  ;;  %v3460_v41 = vld [vmem:[%s8699_s12 + $0x68] sm:$0xff]  ;;  %4932 = vmatpush1.bf16.msra.mxu0 %v4931_v12  ;;  %v3465_v12 = vld [vmem:[%s8699_s12 + $0x90] sm:$0xff] }
 0x9ce   :  { %4911 = vmatprep.subr.bf16.mxu1 %v8736_v28 }
 0x9d1   :  { %4913 = vmatpush3.bf16.msra.mxu1 %v8131_v43  ;;  %v3455_v43 = vld [vmem:[%s8699_s12 + $0x40] sm:$0xff] }
 0x9d2   :  { %4914 = vmatprep.subr.bf16.mxu1 %v8736_v28  ;;  %v4935_v63 = vpack.c.bf16 %v3459_v52, %v3455_v43  ;;  %v3474_v43 = vld [vmem:[%s8699_s12 + $0xd8] sm:$0xff] }
 0x9d3   :  { %v3478_v52 = vld [vmem:[%s8699_s12 + $0xf8] sm:$0xff] }
 0x9d4   :  { %v4973_v4 = vpack.c.bf16 %v3478_v52, %v3474_v43 }
 0x9d5   :  { %4916 = vmatpush3.bf16.msra.mxu1 %v8211_v36  ;;  %v3487_v36 = vld [vmem:[%s8699_s12 + $0x140] sm:$0xff] }
 0x9d6   :  { %4917 = vmatprep.subr.bf16.mxu1 %v8736_v28  ;;  %v4951_v22 = vpack.c.bf16 %v3491_v20, %v3487_v36  ;;  %v3506_v36 = vld [vmem:[%s8699_s12 + $0x1d8] sm:$0xff] }
 0x9d7   :  { %v3510_v20 = vld [vmem:[%s8699_s12 + $0x1f8] sm:$0xff] }
 0x9d8   :  { %v4989_v11 = vpack.c.bf16 %v3510_v20, %v3506_v36 }
 0x9d9   :  { %4919 = vmatpush3.bf16.msra.mxu1 %v8230_v61  ;;  %v3499_v61 = vld [vmem:[%s8699_s12 + $0x1a0] sm:$0xff] }
 0x9da   :  { %4920 = vmatprep.subr.bf16.mxu1 %v8736_v28  ;;  %v4955_v15 = vpack.c.bf16 %v3499_v61, %v3495_v40  ;;  %v3384_v40 = vld [vmem:[%s8698_s11 + $0x8] sm:$0xff] }
 0x9db   :  { %v3388_v61 = vld [vmem:[%s8698_s11 + $0x28] sm:$0xff] }
 0x9dd   :  { %4922 = vmatpush3.bf16.msra.mxu1 %v4873_v32  ;;  %v4957_v32 = vpack.c.bf16 %v3508_v59, %v3504_v27  ;;  %v4993_v59 = vpack.c.bf16 %v3388_v61, %v3384_v40 }
 0x9de   :  { %4923 = vmatprep.subr.bf16.mxu1 %v8736_v28 }
 0x9e1   :  { %4925 = vmatpush3.bf16.msra.mxu1 %v4876_v30  ;;  %v4959_v30 = vpack.c.bf16 %v3507_v26, %v3503_v31  ;;  %v3392_v31 = vld [vmem:[%s8698_s11 + $0x48] sm:$0xff] }
 0x9e2   :  { %4926 = vmatprep.subr.bf16.mxu1 %v8736_v28  ;;  %v3456_v28 = vld [vmem:[%s8699_s12 + $0x48] sm:$0xff] }
 0x9e3   :  { %v4933_v48 = vpack.c.bf16 %v3460_v41, %v3456_v28  ;;  %v4967_v28 = vpack.c.bf16 %v3461_v10, %v3457_v3  ;;  %v4969_v41 = vpack.c.bf16 %v3470_v6, %v3466_v21  ;;  %v3396_v26 = vld [vmem:[%s8698_s11 + $0x68] sm:$0xff]  ;;  %v3407_v3 = vld [vmem:[%s8698_s11 + $0xc0] sm:$0xff] }
 0x9e4   :  { %v3411_v10 = vld [vmem:[%s8698_s11 + $0xe0] sm:$0xff]  ;;  %v3420_v21 = vld [vmem:[%s8698_s11 + $0x128] sm:$0xff] }
 0x9e5   :  { %4928 = vmatpush3.bf16.msra.mxu1 %v4879_v39  ;;  %4934 = vmatprep.subr.bf16.mxu0 %v4933_v48  ;;  %v4961_v39 = vpack.c.bf16 %v3454_v54, %v3450_v25  ;;  %v3469_v48 = vld [vmem:[%s8699_s12 + $0xb0] sm:$0xff]  ;;  %v4997_v25 = vpack.c.bf16 %v3396_v26, %v3392_v31  ;;  %v3391_v54 = vld [vmem:[%s8698_s11 + $0x40] sm:$0xff]  ;;  %v5007_v6 = vpack.c.bf16 %v3411_v10, %v3407_v3  ;;  %v3438_v3 = vld [vmem:[%s8698_s11 + $0x1b8] sm:$0xff] }
 0x9e6   :  { %4936 = vmatpush1.bf16.msra.mxu0 %v4935_v63  ;;  %v4971_v55 = vpack.c.bf16 %v3469_v48, %v3465_v12  ;;  %v3473_v63 = vld [vmem:[%s8699_s12 + $0xd0] sm:$0xff]  ;;  %v3424_v12 = vld [vmem:[%s8698_s11 + $0x148] sm:$0xff] }
 0x9e7   :  { %4938 = vmatprep.subr.bf16.mxu0 %v4937_v62  ;;  %v3477_v62 = vld [vmem:[%s8699_s12 + $0xf0] sm:$0xff]  ;;  %v3428_v48 = vld [vmem:[%s8698_s11 + $0x168] sm:$0xff] }
 0x9e8   :  { %4333 = vmatmul.mubr.f32.vlgmr.msra.gmra.mrb[20].mxu1 %v2924_v42  ;;  %v3458_v42 = vld [vmem:[%s8699_s12 + $0x58] sm:$0xff]  ;;  %v4975_v34 = vpack.c.bf16 %v3477_v62, %v3473_v63  ;;  %v5013_v52 = vpack.c.bf16 %v3428_v48, %v3424_v12  ;;  %v3432_v63 = vld [vmem:[%s8698_s11 + $0x188] sm:$0xff]  ;;  %v3409_v26 = vld [vmem:[%s8698_s11 + $0xd0] sm:$0xff] }
 0x9e9   :  { %v4965_v19 = vpack.c.bf16 %v3462_v1, %v3458_v42  ;;  %v3408_v42 = vld [vmem:[%s8698_s11 + $0xc8] sm:$0xff]  ;;  %v3441_v48 = vld [vmem:[%s8698_s11 + $0x1d0] sm:$0xff] }
 0x9ea   :  { %4940 = vmatpush1.bf16.msra.mxu0 %v4939_v37  ;;  %v3481_v37 = vld [vmem:[%s8699_s12 + $0x110] sm:$0xff]  ;;  %v3412_v1 = vld [vmem:[%s8698_s11 + $0xe8] sm:$0xff] }
 0x9eb   :  { %4942 = vmatprep.subr.bf16.mxu0 %v4941_v9  ;;  %v3485_v9 = vld [vmem:[%s8699_s12 + $0x130] sm:$0xff]  ;;  %v3436_v62 = vld [vmem:[%s8698_s11 + $0x1a8] sm:$0xff] }
 0x9ec   :  { %v4979_v7 = vpack.c.bf16 %v3485_v9, %v3481_v37  ;;  %v5017_v53 = vpack.c.bf16 %v3436_v62, %v3432_v63  ;;  %v3440_v37 = vld [vmem:[%s8698_s11 + $0x1c8] sm:$0xff] }
 0x9ed   :  { %v3444_v9 = vld [vmem:[%s8698_s11 + $0x1e8] sm:$0xff] }
 0x9ee   :  { %4944 = vmatpush1.bf16.msra.mxu0 %v4943_v47  ;;  %v3489_v47 = vld [vmem:[%s8699_s12 + $0x150] sm:$0xff]  ;;  %v5021_v0 = vpack.c.bf16 %v3444_v9, %v3440_v37 }
 0x9ef   :  { %4946 = vmatprep.subr.bf16.mxu0 %v4945_v16  ;;  %v3493_v16 = vld [vmem:[%s8699_s12 + $0x170] sm:$0xff] }
 0x9f0   :  { %v4983_v49 = vpack.c.bf16 %v3493_v16, %v3489_v47  ;;  %v3386_v47 = vld [vmem:[%s8698_s11 + $0x18] sm:$0xff] }
 0x9f1   :  { %v3390_v16 = vld [vmem:[%s8698_s11 + $0x38] sm:$0xff] }
 0x9f2   :  { %4948 = vmatpush1.bf16.msra.mxu0 %v4947_v8  ;;  %v3497_v8 = vld [vmem:[%s8699_s12 + $0x190] sm:$0xff]  ;;  %v5025_v51 = vpack.c.bf16 %v3390_v16, %v3386_v47 }
 0x9f3   :  { %4950 = vmatprep.subr.bf16.mxu0 %v4949_v5  ;;  %v3501_v5 = vld [vmem:[%s8699_s12 + $0x1b0] sm:$0xff] }
 0x9f4   :  { %v4987_v24 = vpack.c.bf16 %v3501_v5, %v3497_v8  ;;  %v3394_v8 = vld [vmem:[%s8698_s11 + $0x58] sm:$0xff] }
 0x9f5   :  { %v3398_v5 = vld [vmem:[%s8698_s11 + $0x78] sm:$0xff] }
 0x9f6   :  { %4952 = vmatpush1.bf16.msra.mxu0 %v4951_v22  ;;  %v3505_v22 = vld [vmem:[%s8699_s12 + $0x1d0] sm:$0xff]  ;;  %v5029_v20 = vpack.c.bf16 %v3398_v5, %v3394_v8 }
 0x9f7   :  { %4954 = vmatprep.subr.bf16.mxu0 %v4953_v33  ;;  %v3509_v33 = vld [vmem:[%s8699_s12 + $0x1f0] sm:$0xff] }
 0x9f8   :  { %v4991_v27 = vpack.c.bf16 %v3509_v33, %v3505_v22  ;;  %v3402_v22 = vld [vmem:[%s8698_s11 + $0x98] sm:$0xff] }
 0x9f9   :  { %v3406_v33 = vld [vmem:[%s8698_s11 + $0xb8] sm:$0xff] }
 0x9fa   :  { %4956 = vmatpush1.bf16.msra.mxu0 %v4955_v15  ;;  %v3383_v15 = vld [vmem:[%s8698_s11] sm:$0xff]  ;;  %v5033_v61 = vpack.c.bf16 %v3406_v33, %v3402_v22 }
 0x9fb   :  { %4958 = vmatprep.subr.bf16.mxu0 %v4957_v32  ;;  %v3387_v32 = vld [vmem:[%s8698_s11 + $0x20] sm:$0xff] }
 0x9fe   :  { %4960 = vmatpush1.bf16.msra.mxu0 %v4959_v30  ;;  %v4995_v30 = vpack.c.bf16 %v3387_v32, %v3383_v15  ;;  %v3410_v15 = vld [vmem:[%s8698_s11 + $0xd8] sm:$0xff] }
 0x9ff   :  { %4962 = vmatprep.subr.bf16.mxu0 %v4961_v39  ;;  %v3395_v39 = vld [vmem:[%s8698_s11 + $0x60] sm:$0xff]  ;;  %v3414_v32 = vld [vmem:[%s8698_s11 + $0xf8] sm:$0xff] }
 0xa00   :  { %v5037_v31 = vpack.c.bf16 %v3414_v32, %v3410_v15 }
 0xa7b   :  { %v3152_v50 = vpop.f32.mrb[18].mxu1 }
 0xa7c   :  { %v4229_v60 = vpop.f32.mrb[19].mxu1 }
 0xa7d   :  { %v3404_v60 = vld [vmem:[%s8698_s11 + $0xa8] sm:$0xff] }
 0xa83   :  { %v3238_v35 = vpop.f32.mrb[8].mxu0 }
 0xa84   :  { %v8389_v57 = vsub.f32 %v3152_v50, %v3238_v35  ;;  %v4264_v2 = vpop.f32.mrb[9].mxu0  ;;  %v3400_v50 = vld [vmem:[%s8698_s11 + $0x88] sm:$0xff]  ;;  %v4999_v35 = vpack.c.bf16 %v3395_v39, %v3391_v54  ;;  %v3422_v54 = vld [vmem:[%s8698_s11 + $0x138] sm:$0xff] }
 0xa85   :  { %v5001_v2 = vpack.c.bf16 %v3404_v60, %v3400_v50  ;;  %v3417_v60 = vld [vmem:[%s8698_s11 + $0x110] sm:$0xff] }
 0xabb   :  { %v8409_v46 = vpop.f32.mrb[20].mxu1 }
 0xabc   :  { %v4334_v23 = vpop.f32.mrb[21].mxu1  ;;  %3576 = vmatmul.mubr.f32.vlgmr.msra.gmra.mrb[10].mxu0 %v8409_v46 }
 0xabd   :  { %4964 = vmatpush1.bf16.msra.mxu0 %v4963_v13  ;;  %3646 = vmatprep.mubr.f32.mxu0 %v8739_v44  ;;  %v5003_v13 = vpack.c.bf16 %v3403_v58, %v3399_v45  ;;  %v3430_v45 = vld [vmem:[%s8698_s11 + $0x178] sm:$0xff] }
 0xabe   :  { %4966 = vmatprep.subr.bf16.mxu0 %v4965_v19  ;;  %v5005_v19 = vpack.c.bf16 %v3412_v1, %v3408_v42  ;;  %v3425_v1 = vld [vmem:[%s8698_s11 + $0x150] sm:$0xff] }
 0xac1   :  { %4968 = vmatpush1.bf16.msra.mxu0 %v4967_v28  ;;  %v3415_v28 = vld [vmem:[%s8698_s11 + $0x100] sm:$0xff] }
 0xac2   :  { %4970 = vmatprep.subr.bf16.mxu0 %v4969_v41  ;;  %v3419_v41 = vld [vmem:[%s8698_s11 + $0x120] sm:$0xff] }
 0xac3   :  { %v5011_v43 = vpack.c.bf16 %v3419_v41, %v3415_v28  ;;  %v3446_v28 = vld [vmem:[%s8698_s11 + $0x1f8] sm:$0xff] }
 0xac5   :  { %4972 = vmatpush1.bf16.msra.mxu0 %v4971_v55  ;;  %v3423_v55 = vld [vmem:[%s8698_s11 + $0x140] sm:$0xff] }
 0xac6   :  { %4974 = vmatprep.subr.bf16.mxu0 %v4973_v4  ;;  %v3427_v4 = vld [vmem:[%s8698_s11 + $0x160] sm:$0xff] }
 0xac7   :  { %v5015_v38 = vpack.c.bf16 %v3427_v4, %v3423_v55 }
 0xac9   :  { %4976 = vmatpush1.bf16.msra.mxu0 %v4975_v34  ;;  %v3431_v34 = vld [vmem:[%s8698_s11 + $0x180] sm:$0xff] }
 0xaca   :  { %4978 = vmatprep.subr.bf16.mxu0 %v4977_v14  ;;  %v3435_v14 = vld [vmem:[%s8698_s11 + $0x1a0] sm:$0xff] }
 0xacb   :  { %v5019_v29 = vpack.c.bf16 %v3435_v14, %v3431_v34  ;;  %v8742_v34 = vld [vmem:[#allocation5_spill] sm:$0xff] }
 0xacd   :  { %4980 = vmatpush1.bf16.msra.mxu0 %v4979_v7  ;;  %v3439_v7 = vld [vmem:[%s8698_s11 + $0x1c0] sm:$0xff] }
 0xace   :  { %4982 = vmatprep.subr.bf16.mxu0 %v4981_v18  ;;  %v3443_v18 = vld [vmem:[%s8698_s11 + $0x1e0] sm:$0xff] }
 0xacf   :  { %v5023_v17 = vpack.c.bf16 %v3443_v18, %v3439_v7 }
 0xad1   :  { %4984 = vmatpush1.bf16.msra.mxu0 %v4983_v49  ;;  %v3385_v49 = vld [vmem:[%s8698_s11 + $0x10] sm:$0xff] }
 0xad2   :  { %4986 = vmatprep.subr.bf16.mxu0 %v4985_v56  ;;  %v3389_v56 = vld [vmem:[%s8698_s11 + $0x30] sm:$0xff] }
 0xad3   :  { %v5027_v36 = vpack.c.bf16 %v3389_v56, %v3385_v49 }
 0xad5   :  { %4988 = vmatpush1.bf16.msra.mxu0 %v4987_v24  ;;  %v3393_v24 = vld [vmem:[%s8698_s11 + $0x50] sm:$0xff] }
 0xad6   :  { %4990 = vmatprep.subr.bf16.mxu0 %v4989_v11  ;;  %v3397_v11 = vld [vmem:[%s8698_s11 + $0x70] sm:$0xff] }
 0xad7   :  { %v5031_v40 = vpack.c.bf16 %v3397_v11, %v3393_v24 }
 0xad9   :  { %4992 = vmatpush1.bf16.msra.mxu0 %v4991_v27  ;;  %v3401_v27 = vld [vmem:[%s8698_s11 + $0x90] sm:$0xff] }
 0xada   :  { %4994 = vmatprep.subr.bf16.mxu0 %v4993_v59  ;;  %v3405_v59 = vld [vmem:[%s8698_s11 + $0xb0] sm:$0xff] }
 0xadc   :  { %3647 = vmatmul.mubr.f32.vlgmr.msra.gmra.mrb[12].mxu0 %v8409_v46  ;;  %v3416_v46 = vld [vmem:[%s8698_s11 + $0x108] sm:$0xff] }
 0xadd   :  { %4996 = vmatpush1.bf16.msra.mxu0 %v4995_v30  ;;  %3717 = vmatprep.mubr.f32.mxu0 %v8739_v44  ;;  %v5009_v23 = vpack.c.bf16 %v3420_v21, %v3416_v46  ;;  %v3413_v30 = vld [vmem:[%s8698_s11 + $0xf0] sm:$0xff] }
 0xade   :  { %4998 = vmatprep.subr.bf16.mxu0 %v4997_v25  ;;  %v3418_v25 = vld [vmem:[%s8698_s11 + $0x118] sm:$0xff]  ;;  %v5039_v39 = vpack.c.bf16 %v3413_v30, %v3409_v26  ;;  %v3433_v21 = vld [vmem:[%s8698_s11 + $0x190] sm:$0xff] }
 0xadf   :  { %v5041_v50 = vpack.c.bf16 %v3422_v54, %v3418_v25 }
 0xae1   :  { %5000 = vmatpush1.bf16.msra.mxu0 %v4999_v35  ;;  %v3421_v35 = vld [vmem:[%s8698_s11 + $0x130] sm:$0xff] }
 0xae2   :  { %5002 = vmatprep.subr.bf16.mxu0 %v5001_v2  ;;  %v3426_v2 = vld [vmem:[%s8698_s11 + $0x158] sm:$0xff]  ;;  %v5043_v58 = vpack.c.bf16 %v3421_v35, %v3417_v60 }
 0xae3   :  { %v5045_v42 = vpack.c.bf16 %v3430_v45, %v3426_v2 }
 0xae5   :  { %5004 = vmatpush1.bf16.msra.mxu0 %v5003_v13  ;;  %v3429_v13 = vld [vmem:[%s8698_s11 + $0x170] sm:$0xff] }
 0xae6   :  { %5006 = vmatprep.subr.bf16.mxu0 %v5005_v19  ;;  %v3434_v19 = vld [vmem:[%s8698_s11 + $0x198] sm:$0xff]  ;;  %v5047_v10 = vpack.c.bf16 %v3429_v13, %v3425_v1 }
 0xae7   :  { %v5049_v46 = vpack.c.bf16 %v3438_v3, %v3434_v19 }
 0xae9   :  { %5008 = vmatpush1.bf16.msra.mxu0 %v5007_v6  ;;  %v3437_v6 = vld [vmem:[%s8698_s11 + $0x1b0] sm:$0xff] }
 0xaea   :  { %5010 = vmatprep.subr.bf16.mxu0 %v5009_v23  ;;  %v3442_v23 = vld [vmem:[%s8698_s11 + $0x1d8] sm:$0xff]  ;;  %v5051_v41 = vpack.c.bf16 %v3437_v6, %v3433_v21 }
 0xaeb   :  { %v5053_v12 = vpack.c.bf16 %v3446_v28, %v3442_v23 }
 0xaed   :  { %5012 = vmatpush1.bf16.msra.mxu0 %v5011_v43  ;;  %v3445_v43 = vld [vmem:[%s8698_s11 + $0x1f0] sm:$0xff] }
 0xaee   :  { %5014 = vmatprep.subr.bf16.mxu0 %v5013_v52  ;;  %v5055_v52 = vpack.c.bf16 %v3445_v43, %v3441_v48 }
 0xaf1   :  { %5016 = vmatpush1.bf16.msra.mxu0 %v5015_v38 }
 0xaf2   :  { %5018 = vmatprep.subr.bf16.mxu0 %v5017_v53 }
 0xaf5   :  { %5020 = vmatpush1.bf16.msra.mxu0 %v5019_v29 }
 0xaf6   :  { %5022 = vmatprep.subr.bf16.mxu0 %v5021_v0 }
 0xaf9   :  { %5024 = vmatpush1.bf16.msra.mxu0 %v5023_v17 }
 0xafa   :  { %5026 = vmatprep.subr.bf16.mxu0 %v5025_v51 }
 0xafc   :  { %3718 = vmatmul.mubr.f32.vlgmr.msra.gmra.mrb[10].mxu0 %v8389_v57 }
 0xafd   :  { %5028 = vmatpush1.bf16.msra.mxu0 %v5027_v36  ;;  %3788 = vmatprep.mubr.f32.mxu0 %v8739_v44  ;;  %v5035_v44 = vpack.c.bf16 %v3405_v59, %v3401_v27 }
 0xafe   :  { %5030 = vmatprep.subr.bf16.mxu0 %v5029_v20 }
 0xb01   :  { %5032 = vmatpush1.bf16.msra.mxu0 %v5031_v40 }
 0xb02   :  { %5034 = vmatprep.subr.bf16.mxu0 %v5033_v61 }
 0xb05   :  { %5036 = vmatpush1.bf16.msra.mxu0 %v5035_v44 }
 0xb06   :  { %5038 = vmatprep.subr.bf16.mxu0 %v5037_v31 }
 0xb09   :  { %5040 = vmatpush1.bf16.msra.mxu0 %v5039_v39 }
 0xb0a   :  { %5042 = vmatprep.subr.bf16.mxu0 %v5041_v50 }
 0xb0d   :  { %5044 = vmatpush1.bf16.msra.mxu0 %v5043_v58 }
 0xb0e   :  { %5046 = vmatprep.subr.bf16.mxu0 %v5045_v42 }
 0xb11   :  { %5048 = vmatpush1.bf16.msra.mxu0 %v5047_v10 }
 0xb12   :  { %5050 = vmatprep.subr.bf16.mxu0 %v5049_v46 }
 0xb15   :  { %5052 = vmatpush1.bf16.msra.mxu0 %v5051_v41 }
 0xb16   :  { %5054 = vmatprep.subr.bf16.mxu0 %v5053_v12 }
 0xb19   :  { %5056 = vmatpush1.bf16.msra.mxu0 %v5055_v52 }
 0xb1c   :  { %3789 = vmatmul.mubr.f32.vlgmr.msra.gmra.mrb[12].mxu0 %v8389_v57 }
 0xbcf   :  { %v3719_v55 = vpop.f32.mrb[10].mxu0 }
 0xbd0   :  { %v3721_v4 = vpop.f32.mrb[11].mxu0 }
 0xbd1   :  { %v3799_v63 = vcombine.low %v3719_v55, %v3721_v4 }
 0xbd3   :  { %v3807_v14 = vrot.slane %v3799_v63, %v8742_v34 }
 0xbef   :  { %v3790_v62 = vpop.f32.mrb[12].mxu0 }
 0xbf0   :  { %v3792_v38 = vpop.f32.mrb[13].mxu0 }
 0xbf1   :  { %v3800_v53 = vcombine.low %v3790_v62, %v3792_v38 }
 0xbf3   :  { %v3814_v37 = vrot.slane %v3800_v53, %v8742_v34 }
 0xbf5   :  { %v3815_v9 = vcombine.low %v3807_v14, %v3814_v37 }
 0xbf7   :  { %3817 = vst [vmem:[%s8700_s13] sm:$0xff] %v3815_v9 }

</bundles_post_ra>
